<compile_context>
chip_gen: v7x
topology: tpu7x:2x2x1
jax: 0.10.0
libtpu: 0.0.40
codegen_flags: <defaults>
</compile_context>

<pallas_src>
import functools

import jax
import jax.numpy as jnp
from jax.experimental import pallas as pl
from jax.experimental.pallas import tpu as pltpu


_LANE_WIDTHS = (1024, 896, 768, 640, 512, 384, 256, 128)   # lane-dense last dims
_MAX_TILE_BYTES = 2 * 1024 * 1024   # per-tile cap -> ~8 MiB of pipeline buffers
_TWO_PI = 6.283185307179586
_EXP_ONE = 0x3F800000               # f32 bit pattern of 1.0


def _cdiv(a, b):
    return -(-a // b)


def _to_u32(bits):
    """Reinterpret PRNG bits as uint32 regardless of the dtype they come in."""
    if bits.dtype == jnp.uint32:
        return bits
    return pltpu.bitcast(bits, jnp.uint32)


def _bits_to_mantissa_f32(bits_u32):
    """Top-23-bit exponent trick: uint32 bits -> f32 uniformly in [1, 2)."""
    return pltpu.bitcast((bits_u32 >> 9) | jnp.uint32(_EXP_ONE), jnp.float32)


def _hash_u32(x_u32, seed_u32):
    """lowbias32 counter hash (portable fallback path only)."""
    v = x_u32 ^ (seed_u32 * jnp.uint32(0x9E3779B9))
    v = v ^ (v >> 16)
    v = v * jnp.uint32(0x7FEB352D)
    v = v ^ (v >> 15)
    v = v * jnp.uint32(0x846CA68B)
    return v ^ (v >> 16)


def _gaussian_noise_kernel(seed_ref, x_ref, o_ref, *, stddev, use_hw_prng):
    tm, lanes = x_ref.shape

    if use_hw_prng:
        # Hardware PRNG: reseed per grid step so tiles draw independent streams.
        pltpu.prng_seed(seed_ref[0] + pl.program_id(0) * 1000003)
        b1 = _to_u32(pltpu.prng_random_bits((tm, lanes)))
        b2 = _to_u32(pltpu.prng_random_bits((tm, lanes)))
    else:
        # Portable counter-based fallback (interpret mode / PRNG-less backends).
        row = jax.lax.broadcasted_iota(jnp.int32, (tm, lanes), 0)
        col = jax.lax.broadcasted_iota(jnp.int32, (tm, lanes), 1)
        idx = ((pl.program_id(0) * tm + row) * lanes + col).astype(jnp.uint32)
        s = seed_ref[0].astype(jnp.uint32)
        b1 = _hash_u32(idx, s)
        b2 = _hash_u32(idx, s ^ jnp.uint32(0x85EBCA6B))

    m1 = _bits_to_mantissa_f32(b1)            # [1, 2)
    m2 = _bits_to_mantissa_f32(b2)            # [1, 2)
    u1 = 2.0 - m1                             # (0, 1]  -> log(u1) is finite
    u2 = m2 - 1.0                             # [0, 1)

    # Box-Muller: exact N(0,1); log/sqrt/cos ride the EUP, off the VALU slot.
    r = jnp.sqrt(-2.0 * jnp.log(u1))
    z = r * jnp.cos(jnp.float32(_TWO_PI) * u2)

    out = x_ref[...].astype(jnp.float32) + z * jnp.float32(stddev)
    o_ref[...] = out.astype(o_ref.dtype)


def _plan(total, itemsize):
    """Pick (lanes, padded_rows, tile_rows) with no padding in the common case."""
    lanes = next((l for l in _LANE_WIDTHS if total % l == 0), 128)
    rows = _cdiv(total, lanes)
    max_rows = max(_MAX_TILE_BYTES // (lanes * itemsize), 8)

    # Exact divisors of `rows` that satisfy the (8,128) rule (multiple of 8 or
    # the full dim), largest first.
    cands = [t for t in range(min(rows, max_rows), 0, -1)
             if rows % t == 0 and (t % 8 == 0 or t == rows)]
    if cands:
        # Prefer the largest tile that still yields grid >= 2 (v7x megacore);
        # on v5e/v6e the extra grid step is ~0.35us and otherwise neutral.
        tm = next((t for t in cands if rows // t >= 2), cands[0])
        padded_rows = rows
    else:
        tm = min(max_rows, _cdiv(rows, 8) * 8)
        padded_rows = _cdiv(rows, tm) * tm
    return lanes, padded_rows, tm


def _launch(x, stddev, seed, use_hw_prng):
    orig_shape = x.shape
    total = x.size
    lanes, prows, tm = _plan(total, x.dtype.itemsize)
    padded_total = prows * lanes

    flat = x.reshape(-1)
    if padded_total != total:
        # TODO(synk): irregular sizes still pay a pad + slice pass; a masked
        # final tile inside the kernel would avoid the extra HBM traffic.
        flat = jnp.pad(flat, (0, padded_total - total))
    x2 = flat.reshape(prows, lanes)

    seed_arr = jnp.asarray(seed, dtype=jnp.int32).reshape((1,))
    grid = prows // tm

    cost = pl.CostEstimate(
        flops=12 * padded_total,
        transcendentals=3 * padded_total,            # log + sqrt + cos per elem
        bytes_accessed=2 * padded_total * x2.dtype.itemsize,
    )

    out2 = pl.pallas_call(
        functools.partial(_gaussian_noise_kernel, stddev=float(stddev),
                          use_hw_prng=use_hw_prng),
        grid=(grid,),
        in_specs=[
            pl.BlockSpec(memory_space=pltpu.SMEM),           # seed scalar
            pl.BlockSpec((tm, lanes), lambda i: (i, 0)),     # input tile
        ],
        out_specs=pl.BlockSpec((tm, lanes), lambda i: (i, 0)),
        out_shape=jax.ShapeDtypeStruct(x2.shape, x2.dtype),
        input_output_aliases={1: 0},                         # donate the slab
        compiler_params=pltpu.CompilerParams(
            dimension_semantics=("parallel",)),
        cost_estimate=cost,
    )(seed_arr, x2)

    if padded_total != total:
        out2 = out2.reshape(-1)[:total]
    return out2.reshape(orig_shape)


_hw_prng_ok = None   # resolved on the first training-mode call, then cached


def gaussian_noise(x, stddev, seed, *, training=True):
    """Pallas equivalent of GaussianNoise.forward (any shape, NCHW expected)."""
    if not training:
        return x

    global _hw_prng_ok
    if _hw_prng_ok is None:
        try:
            out = jax.block_until_ready(_launch(x, stddev, seed, True))
            _hw_prng_ok = True
            return out
        except Exception:
            _hw_prng_ok = False     # hardware PRNG unavailable -> portable path
    return _launch(x, stddev, seed, _hw_prng_ok)


if __name__ == "__main__":
    key = jax.random.PRNGKey(0)
    # Small NCHW input consistent with a conv-LSTM feature map.
    x = jax.random.normal(key, (2, 4, 16, 16), dtype=jnp.float32)
    stddev = 0.1

    # Training mode: noise generated and added inside the Pallas kernel.
    y_train = jax.block_until_ready(gaussian_noise(x, stddev, seed=1234))
    assert y_train.shape == x.shape and y_train.dtype == x.dtype

    noise = y_train - x
    max_abs = float(jnp.max(jnp.abs(noise)))
    assert max_abs > 0.0, "noise was not added"
    assert max_abs < 10.0 * stddev, "noise magnitude implausibly large"
    assert abs(float(jnp.mean(noise))) < 0.02, "noise mean too far from 0"
    assert 0.06 < float(jnp.std(noise)) < 0.14, "noise std too far from stddev"

    # A different seed must give a different noise realization.
    y_train2 = jax.block_until_ready(gaussian_noise(x, stddev, seed=4321))
    assert float(jnp.max(jnp.abs(y_train2 - y_train))) > 0.0

    # Eval mode: identity (no kernel launch).
    y_eval = jax.block_until_ready(
        gaussian_noise(x, stddev, seed=1234, training=False))
    assert bool(jnp.all(y_eval == x))

    print("KERNEL_OK")
</pallas_src>

<mosaic_0001>
module attributes {stable_mosaic.version = 11 : i64} {
  func.func @_gaussian_noise_kernel(%arg0: i32, %arg1: memref<1xi32, #tpu.memory_space<smem>>, %arg2: memref<2x1024xf32, #tpu.memory_space<vmem>>, %arg3: memref<2x1024xf32, #tpu.memory_space<vmem>>) attributes {dimension_semantics = [#tpu.dimension_semantics<parallel>], iteration_bounds = array<i64: 1>, scalar_prefetch = 0 : i64, scratch_operands = 0 : i64, tpu.core_type = #tpu.core_type<tc>, window_params = [{transform_indices = @transform_0, window_bounds = array<i64: 1>}, {transform_indices = @transform_1, window_bounds = array<i64: 2, 1024>}, {transform_indices = @transform_2, window_bounds = array<i64: 2, 1024>}]} {
    %c0 = arith.constant 0 : index
    %0 = memref.load %arg1[%c0] : memref<1xi32, #tpu.memory_space<smem>>
    %c1000003_i32 = arith.constant 1000003 : i32
    %1 = arith.muli %arg0, %c1000003_i32 : i32
    %2 = arith.addi %0, %1 : i32
    "tpu.prng_set_seed_32"(%2) : (i32) -> ()
    %3 = "tpu.prng_random_bits"() : () -> vector<2x1024xi32>
    %4 = tpu.bitcast %3 : vector<2x1024xi32> -> vector<2x1024xi32>
    %5 = "tpu.prng_random_bits"() : () -> vector<2x1024xi32>
    %6 = tpu.bitcast %5 : vector<2x1024xi32> -> vector<2x1024xi32>
    %c9_i32 = arith.constant 9 : i32
    %7 = vector.broadcast %c9_i32 : i32 to vector<2x1024xi32>
    %8 = arith.shrui %4, %7 : vector<2x1024xi32>
    %c1065353216_i32 = arith.constant 1065353216 : i32
    %9 = vector.broadcast %c1065353216_i32 : i32 to vector<2x1024xi32>
    %10 = arith.ori %8, %9 : vector<2x1024xi32>
    %11 = tpu.bitcast %10 : vector<2x1024xi32> -> vector<2x1024xf32>
    %c9_i32_0 = arith.constant 9 : i32
    %12 = vector.broadcast %c9_i32_0 : i32 to vector<2x1024xi32>
    %13 = arith.shrui %6, %12 : vector<2x1024xi32>
    %c1065353216_i32_1 = arith.constant 1065353216 : i32
    %14 = vector.broadcast %c1065353216_i32_1 : i32 to vector<2x1024xi32>
    %15 = arith.ori %13, %14 : vector<2x1024xi32>
    %16 = tpu.bitcast %15 : vector<2x1024xi32> -> vector<2x1024xf32>
    %cst = arith.constant 2.000000e+00 : f32
    %17 = vector.broadcast %cst : f32 to vector<2x1024xf32>
    %18 = arith.subf %17, %11 : vector<2x1024xf32>
    %cst_2 = arith.constant 1.000000e+00 : f32
    %19 = vector.broadcast %cst_2 : f32 to vector<2x1024xf32>
    %20 = arith.subf %16, %19 : vector<2x1024xf32>
    %21 = math.log %18 : vector<2x1024xf32>
    %cst_3 = arith.constant -2.000000e+00 : f32
    %22 = vector.broadcast %cst_3 : f32 to vector<2x1024xf32>
    %23 = arith.mulf %22, %21 : vector<2x1024xf32>
    %24 = math.sqrt %23 : vector<2x1024xf32>
    %cst_4 = arith.constant 6.28318548 : f32
    %25 = vector.broadcast %cst_4 : f32 to vector<2x1024xf32>
    %26 = arith.mulf %25, %20 : vector<2x1024xf32>
    %27 = math.cos %26 : vector<2x1024xf32>
    %28 = arith.mulf %24, %27 : vector<2x1024xf32>
    %c0_5 = arith.constant 0 : index
    %c0_6 = arith.constant 0 : index
    %29 = vector.load %arg2[%c0_5, %c0_6] : memref<2x1024xf32, #tpu.memory_space<vmem>>, vector<2x1024xf32>
    %cst_7 = arith.constant 1.000000e-01 : f32
    %30 = vector.broadcast %cst_7 : f32 to vector<2x1024xf32>
    %31 = arith.mulf %28, %30 : vector<2x1024xf32>
    %32 = arith.addf %29, %31 : vector<2x1024xf32>
    %c0_8 = arith.constant 0 : index
    %c0_9 = arith.constant 0 : index
    %33 = vector.load %arg3[%c0_8, %c0_9] : memref<2x1024xf32, #tpu.memory_space<vmem>>, vector<2x1024xf32>
    tpu.vector_store %arg3[%c0_8, %c0_9], %32 {strides = array<i32>} : memref<2x1024xf32, #tpu.memory_space<vmem>>, vector<2x1024xf32>,
    return
  }
  func.func @transform_0(%arg0: i32) -> i32 {
    %c0_i32 = arith.constant 0 : i32
    %c0_i32_0 = arith.constant 0 : i32
    return %c0_i32 : i32
  }
  func.func @transform_1(%arg0: i32) -> (i32, i32) {
    %c0_i32 = arith.constant 0 : i32
    %c0_i32_0 = arith.constant 0 : i32
    return %arg0, %c0_i32 : i32, i32
  }
  func.func @transform_2(%arg0: i32) -> (i32, i32) {
    %c0_i32 = arith.constant 0 : i32
    %c0_i32_0 = arith.constant 0 : i32
    return %arg0, %c0_i32 : i32, i32
  }
}

module attributes {stable_mosaic.version = 11 : i64} {
  func.func @_gaussian_noise_kernel(%arg0: i32, %arg1: memref<1xi32, #tpu.memory_space<smem>>, %arg2: memref<2x1024xf32, #tpu.memory_space<vmem>>, %arg3: memref<2x1024xf32, #tpu.memory_space<vmem>>) attributes {dimension_semantics = [#tpu.dimension_semantics<parallel>], iteration_bounds = array<i64: 1>, scalar_prefetch = 0 : i64, scratch_operands = 0 : i64, tpu.core_type = #tpu.core_type<tc>, window_params = [{transform_indices = @transform_0, window_bounds = array<i64: 1>}, {transform_indices = @transform_1, window_bounds = array<i64: 2, 1024>}, {transform_indices = @transform_2, window_bounds = array<i64: 2, 1024>}]} {
    %0 = tpu.iota {dimensions = array<i32: 0>} : vector<2x1024xi32>
    %1 = tpu.iota {dimensions = array<i32: 1>} : vector<2x1024xi32>
    %c2_i32 = arith.constant 2 : i32
    %2 = arith.muli %arg0, %c2_i32 : i32
    %3 = vector.broadcast %2 : i32 to vector<2x1024xi32>
    %4 = arith.addi %3, %0 : vector<2x1024xi32>
    %c1024_i32 = arith.constant 1024 : i32
    %5 = vector.broadcast %c1024_i32 : i32 to vector<2x1024xi32>
    %6 = arith.muli %4, %5 : vector<2x1024xi32>
    %7 = arith.addi %6, %1 : vector<2x1024xi32>
    %c0 = arith.constant 0 : index
    %8 = memref.load %arg1[%c0] : memref<1xi32, #tpu.memory_space<smem>>
    %c-1640531527_i32 = arith.constant -1640531527 : i32
    %9 = arith.muli %8, %c-1640531527_i32 : i32
    %10 = vector.broadcast %9 : i32 to vector<2x1024xi32>
    %11 = arith.xori %7, %10 : vector<2x1024xi32>
    %c16_i32 = arith.constant 16 : i32
    %12 = vector.broadcast %c16_i32 : i32 to vector<2x1024xi32>
    %13 = arith.shrui %11, %12 : vector<2x1024xi32>
    %14 = arith.xori %11, %13 : vector<2x1024xi32>
    %c2146121005_i32 = arith.constant 2146121005 : i32
    %15 = vector.broadcast %c2146121005_i32 : i32 to vector<2x1024xi32>
    %16 = arith.muli %14, %15 : vector<2x1024xi32>
    %c15_i32 = arith.constant 15 : i32
    %17 = vector.broadcast %c15_i32 : i32 to vector<2x1024xi32>
    %18 = arith.shrui %16, %17 : vector<2x1024xi32>
    %19 = arith.xori %16, %18 : vector<2x1024xi32>
    %c-2073254261_i32 = arith.constant -2073254261 : i32
    %20 = vector.broadcast %c-2073254261_i32 : i32 to vector<2x1024xi32>
    %21 = arith.muli %19, %20 : vector<2x1024xi32>
    %c16_i32_0 = arith.constant 16 : i32
    %22 = vector.broadcast %c16_i32_0 : i32 to vector<2x1024xi32>
    %23 = arith.shrui %21, %22 : vector<2x1024xi32>
    %24 = arith.xori %21, %23 : vector<2x1024xi32>
    %c-2048144789_i32 = arith.constant -2048144789 : i32
    %25 = arith.xori %8, %c-2048144789_i32 : i32
    %c-1640531527_i32_1 = arith.constant -1640531527 : i32
    %26 = arith.muli %25, %c-1640531527_i32_1 : i32
    %27 = vector.broadcast %26 : i32 to vector<2x1024xi32>
    %28 = arith.xori %7, %27 : vector<2x1024xi32>
    %c16_i32_2 = arith.constant 16 : i32
    %29 = vector.broadcast %c16_i32_2 : i32 to vector<2x1024xi32>
    %30 = arith.shrui %28, %29 : vector<2x1024xi32>
    %31 = arith.xori %28, %30 : vector<2x1024xi32>
    %c2146121005_i32_3 = arith.constant 2146121005 : i32
    %32 = vector.broadcast %c2146121005_i32_3 : i32 to vector<2x1024xi32>
    %33 = arith.muli %31, %32 : vector<2x1024xi32>
    %c15_i32_4 = arith.constant 15 : i32
    %34 = vector.broadcast %c15_i32_4 : i32 to vector<2x1024xi32>
    %35 = arith.shrui %33, %34 : vector<2x1024xi32>
    %36 = arith.xori %33, %35 : vector<2x1024xi32>
    %c-2073254261_i32_5 = arith.constant -2073254261 : i32
    %37 = vector.broadcast %c-2073254261_i32_5 : i32 to vector<2x1024xi32>
    %38 = arith.muli %36, %37 : vector<2x1024xi32>
    %c16_i32_6 = arith.constant 16 : i32
    %39 = vector.broadcast %c16_i32_6 : i32 to vector<2x1024xi32>
    %40 = arith.shrui %38, %39 : vector<2x1024xi32>
    %41 = arith.xori %38, %40 : vector<2x1024xi32>
    %c9_i32 = arith.constant 9 : i32
    %42 = vector.broadcast %c9_i32 : i32 to vector<2x1024xi32>
    %43 = arith.shrui %24, %42 : vector<2x1024xi32>
    %c1065353216_i32 = arith.constant 1065353216 : i32
    %44 = vector.broadcast %c1065353216_i32 : i32 to vector<2x1024xi32>
    %45 = arith.ori %43, %44 : vector<2x1024xi32>
    %46 = tpu.bitcast %45 : vector<2x1024xi32> -> vector<2x1024xf32>
    %c9_i32_7 = arith.constant 9 : i32
    %47 = vector.broadcast %c9_i32_7 : i32 to vector<2x1024xi32>
    %48 = arith.shrui %41, %47 : vector<2x1024xi32>
    %c1065353216_i32_8 = arith.constant 1065353216 : i32
    %49 = vector.broadcast %c1065353216_i32_8 : i32 to vector<2x1024xi32>
    %50 = arith.ori %48, %49 : vector<2x1024xi32>
    %51 = tpu.bitcast %50 : vector<2x1024xi32> -> vector<2x1024xf32>
    %cst = arith.constant 2.000000e+00 : f32
    %52 = vector.broadcast %cst : f32 to vector<2x1024xf32>
    %53 = arith.subf %52, %46 : vector<2x1024xf32>
    %cst_9 = arith.constant 1.000000e+00 : f32
    %54 = vector.broadcast %cst_9 : f32 to vector<2x1024xf32>
    %55 = arith.subf %51, %54 : vector<2x1024xf32>
    %56 = math.log %53 : vector<2x1024xf32>
    %cst_10 = arith.constant -2.000000e+00 : f32
    %57 = vector.broadcast %cst_10 : f32 to vector<2x1024xf32>
    %58 = arith.mulf %57, %56 : vector<2x1024xf32>
    %59 = math.sqrt %58 : vector<2x1024xf32>
    %cst_11 = arith.constant 6.28318548 : f32
    %60 = vector.broadcast %cst_11 : f32 to vector<2x1024xf32>
    %61 = arith.mulf %60, %55 : vector<2x1024xf32>
    %62 = math.cos %61 : vector<2x1024xf32>
    %63 = arith.mulf %59, %62 : vector<2x1024xf32>
    %c0_12 = arith.constant 0 : index
    %c0_13 = arith.constant 0 : index
    %64 = vector.load %arg2[%c0_12, %c0_13] : memref<2x1024xf32, #tpu.memory_space<vmem>>, vector<2x1024xf32>
    %cst_14 = arith.constant 1.000000e-01 : f32
    %65 = vector.broadcast %cst_14 : f32 to vector<2x1024xf32>
    %66 = arith.mulf %63, %65 : vector<2x1024xf32>
    %67 = arith.addf %64, %66 : vector<2x1024xf32>
    %c0_15 = arith.constant 0 : index
    %c0_16 = arith.constant 0 : index
    %68 = vector.load %arg3[%c0_15, %c0_16] : memref<2x1024xf32, #tpu.memory_space<vmem>>, vector<2x1024xf32>
    tpu.vector_store %arg3[%c0_15, %c0_16], %67 {strides = array<i32>} : memref<2x1024xf32, #tpu.memory_space<vmem>>, vector<2x1024xf32>,
    return
  }
  func.func @transform_0(%arg0: i32) -> i32 {
    %c0_i32 = arith.constant 0 : i32
    %c0_i32_0 = arith.constant 0 : i32
    return %c0_i32 : i32
  }
  func.func @transform_1(%arg0: i32) -> (i32, i32) {
    %c0_i32 = arith.constant 0 : i32
    %c0_i32_0 = arith.constant 0 : i32
    return %arg0, %c0_i32 : i32, i32
  }
  func.func @transform_2(%arg0: i32) -> (i32, i32) {
    %c0_i32 = arith.constant 0 : i32
    %c0_i32_0 = arith.constant 0 : i32
    return %arg0, %c0_i32 : i32, i32
  }
}

</mosaic_0001>

<bundles_post_ra>
// kernel: tpu_custom_call.1
= control target key start
LH: loop header
LB: loop body
LE: loop exit
PB: predicated region body
PF: predicated region fallthrough
CT: control target
= control target key end

     0   :  { %8 = vsyncpa [#allocation4], 0  ;;  %s2337_s0 = inlined_call_operand.<no memory space> [shape: s32[1], index: 0, kind: input, shape index: {}]   ;;  %s2338_s1 = inlined_call_operand.hbm [shape: f32[2,1024], index: 1, kind: input, shape index: {}, may-alias: {1,2}]   ;;  %s2339_s2 = inlined_call_operand.hbm [shape: f32[2,1024], index: 2, kind: output, shape index: {}, may-alias: {1,2}]  }
   0x1   :  { %9 = vsyncpa [#allocation5], 0  ;;  %s1416_s9 = smov [#allocation3]   ;;  %s1368_s13 = scalar_lea.hbm %s2338_s1, 256 }
   0x2   :  { %s18_s10 = sshll.u32 %s1416_s9, 4  ;;  %p1369_p0 = scmp.ne.s32.totalorder %s2338_s1, %s1368_s13  ;;  %s19_s10 = int_to_ptr.vmem [resolvable:$true] %s18_s10 }
   0x3   :  { %p1372_p1 = scmp.lt.u32.totalorder %s1368_s13, %s2338_s1 }
   0x5   :  { %p1374_p2 = pnand %p1372_p1, %p1369_p0 }
   0x7   :  { %1377 = shalt.err (!%p1374_p2)
}
   0x8   :  { %s1378_s18 = scalar_lea.vmem %s19_s10, 256  ;;  %p1383_p4 = scmp.lt.s32.totalorder %s19_s10, %s19_s10 }
   0x9   :  { %p1379_p3 = scmp.ne.s32.totalorder %s19_s10, %s1378_s18  ;;  %p1384_p5 = scmp.lt.s32.totalorder %s1378_s18, %s1378_s18 }
   0xb   :  { %p1385_p6 = por %p1384_p5, %p1383_p4 }
   0xd   :  { %p1386_p7 = pnand %p1385_p6, %p1379_p3 }
   0xf   :  { %1389 = shalt.err (!%p1386_p7)
}
  0x10   :  { %21 = dma.hbm_to_vmem [thread:$0]  %s2338_s1, 256, %s19_s10, [#allocation4]   ;;  %v2340_v0 = vlaneseq  ;;  %v1455_v1 = vstv %s2337_s0 }
  0x11   :  { %1412 = dma.done.wait [#allocation4], 256  }
  0x12   :  { %1413 = vsyncadd [#allocation4], 4294967040  ;;  %v32_v2 = vadd.s32 %v1455_v1, %v2340_v0  ;;  %v30_v17 = vxor.u32 %v1455_v1, %v1455_v1  ;;  %s1424_s0 = smov [#allocation6]  }
  0x13   :  { %s1214_s1 = sshll.u32 %s1424_s0, 4  ;;  %s1215_s1 = int_to_ptr.vmem [resolvable:$true] %s1214_s1 }
  0x14   :  { %v33_v3 = vadd.s32 %v32_v2, %v32_v2  ;;  %v34_v4 = vshll.u32 %v32_v2, 13  ;;  %v35_v5 = vshrl.u32 %v32_v2, 19  ;;  %v1461_v22 = vxor.u32 466688986, %v30_v17  ;;  %s1390_s23 = scalar_lea.vmem %s1215_s1, 256  ;;  %p1395_p9 = scmp.lt.s32.totalorder %s1215_s1, %s1215_s1 }
  0x15   :  { %p1391_p8 = scmp.ne.s32.totalorder %s1215_s1, %s1390_s23  ;;  %p1396_p10 = scmp.lt.s32.totalorder %s1390_s23, %s1390_s23 }
  0x16   :  { %v36_v6 = vor.u32 %v35_v5, %v34_v4 }
  0x17   :  { %p1397_p11 = por %p1396_p10, %p1395_p9 }
  0x18   :  { %v37_v7 = vxor.u32 %v36_v6, %v33_v3 }
  0x19   :  { %p1398_p12 = pnand %p1397_p11, %p1391_p8 }
  0x1a   :  { %v38_v8 = vadd.s32 %v37_v7, %v33_v3  ;;  %v39_v9 = vshll.u32 %v37_v7, 15  ;;  %v40_v10 = vshrl.u32 %v37_v7, 17 }
  0x1c   :  { %v41_v11 = vor.u32 %v40_v10, %v39_v9 }
  0x1e   :  { %v42_v12 = vxor.u32 %v41_v11, %v38_v8 }
  0x20   :  { %v43_v13 = vadd.s32 %v42_v12, %v38_v8  ;;  %v44_v14 = vshll.u32 %v42_v12, 26  ;;  %v45_v15 = vshrl.u32 %v42_v12, 6 }
  0x22   :  { %v46_v16 = vor.u32 %v45_v15, %v44_v14 }
  0x24   :  { %v47_v18 = vxor.u32 %v46_v16, %v43_v13 }
  0x26   :  { %v48_v19 = vadd.s32 %v47_v18, %v43_v13  ;;  %v49_v20 = vshll.u32 %v47_v18, 6  ;;  %v50_v21 = vshrl.u32 %v47_v18, 26 }
  0x28   :  { %v51_v23 = vor.u32 %v50_v21, %v49_v20  ;;  %v53_v25 = vadd.s32 %v48_v19, %v1455_v1 }
  0x2a   :  { %v52_v24 = vxor.u32 %v51_v23, %v48_v19 }
  0x2c   :  { %v54_v26 = vadd.s32 %v52_v24, %v1461_v22 }
  0x2e   :  { %v55_v27 = vadd.s32 1, %v54_v26 }
  0x30   :  { %v56_v28 = vadd.s32 %v55_v27, %v53_v25  ;;  %v57_v29 = vshll.u32 %v55_v27, 17  ;;  %v58_v30 = vshrl.u32 %v55_v27, 15 }
  0x32   :  { %v59_v31 = vor.u32 %v58_v30, %v57_v29 }
  0x34   :  { %v60_v32 = vxor.u32 %v59_v31, %v56_v28 }
  0x36   :  { %v61_v33 = vadd.s32 %v60_v32, %v56_v28  ;;  %v62_v34 = vshll.u32 %v60_v32, 29  ;;  %v63_v35 = vshrl.u32 %v60_v32, 3 }
  0x38   :  { %v64_v36 = vor.u32 %v63_v35, %v62_v34 }
  0x3a   :  { %v65_v37 = vxor.u32 %v64_v36, %v61_v33 }
  0x3c   :  { %v66_v38 = vadd.s32 %v65_v37, %v61_v33  ;;  %v67_v39 = vshll.u32 %v65_v37, 16  ;;  %v68_v40 = vshrl.u32 %v65_v37, 16 }
  0x3e   :  { %v69_v41 = vor.u32 %v68_v40, %v67_v39 }
  0x40   :  { %v70_v42 = vxor.u32 %v69_v41, %v66_v38 }
  0x42   :  { %v71_v43 = vadd.s32 %v70_v42, %v66_v38  ;;  %v72_v44 = vshll.u32 %v70_v42, 24  ;;  %v73_v45 = vshrl.u32 %v70_v42, 8 }
  0x44   :  { %v74_v46 = vor.u32 %v73_v45, %v72_v44  ;;  %v76_v48 = vadd.s32 %v71_v43, %v1461_v22 }
  0x46   :  { %v75_v47 = vxor.u32 %v74_v46, %v71_v43 }
  0x48   :  { %v77_v49 = vadd.s32 %v75_v47, %v1455_v1 }
  0x4a   :  { %v78_v50 = vadd.s32 2, %v77_v49 }
  0x4c   :  { %v79_v51 = vadd.s32 %v78_v50, %v76_v48  ;;  %v80_v52 = vshll.u32 %v78_v50, 13  ;;  %v81_v53 = vshrl.u32 %v78_v50, 19 }
  0x4e   :  { %v82_v54 = vor.u32 %v81_v53, %v80_v52 }
  0x50   :  { %v83_v55 = vxor.u32 %v82_v54, %v79_v51 }
  0x52   :  { %v84_v56 = vadd.s32 %v83_v55, %v79_v51  ;;  %v85_v57 = vshll.u32 %v83_v55, 15  ;;  %v86_v58 = vshrl.u32 %v83_v55, 17 }
  0x54   :  { %v87_v59 = vor.u32 %v86_v58, %v85_v57 }
  0x56   :  { %v88_v60 = vxor.u32 %v87_v59, %v84_v56 }
  0x58   :  { %v89_v61 = vadd.s32 %v88_v60, %v84_v56  ;;  %v90_v62 = vshll.u32 %v88_v60, 26  ;;  %v91_v63 = vshrl.u32 %v88_v60, 6 }
  0x5a   :  { %v92_v2 = vor.u32 %v91_v63, %v90_v62 }
  0x5c   :  { %v93_v3 = vxor.u32 %v92_v2, %v89_v61 }
  0x5e   :  { %v94_v4 = vadd.s32 %v93_v3, %v89_v61  ;;  %v95_v5 = vshll.u32 %v93_v3, 6  ;;  %v96_v6 = vshrl.u32 %v93_v3, 26 }
  0x60   :  { %v97_v7 = vor.u32 %v96_v6, %v95_v5  ;;  %v99_v9 = vadd.s32 %v94_v4, %v1455_v1 }
  0x62   :  { %v98_v8 = vxor.u32 %v97_v7, %v94_v4 }
  0x64   :  { %v100_v10 = vadd.s32 %v98_v8, %v1455_v1 }
  0x66   :  { %v101_v11 = vadd.s32 3, %v100_v10 }
  0x68   :  { %v102_v12 = vadd.s32 %v101_v11, %v99_v9  ;;  %v103_v13 = vshll.u32 %v101_v11, 17  ;;  %v104_v14 = vshrl.u32 %v101_v11, 15 }
  0x6a   :  { %v105_v15 = vor.u32 %v104_v14, %v103_v13 }
  0x6c   :  { %v106_v16 = vxor.u32 %v105_v15, %v102_v12 }
  0x6e   :  { %v107_v17 = vadd.s32 %v106_v16, %v102_v12  ;;  %v108_v18 = vshll.u32 %v106_v16, 29  ;;  %v109_v19 = vshrl.u32 %v106_v16, 3 }
  0x70   :  { %v110_v20 = vor.u32 %v109_v19, %v108_v18 }
  0x72   :  { %v111_v21 = vxor.u32 %v110_v20, %v107_v17 }
  0x74   :  { %v112_v23 = vadd.s32 %v111_v21, %v107_v17  ;;  %v113_v24 = vshll.u32 %v111_v21, 16  ;;  %v114_v25 = vshrl.u32 %v111_v21, 16 }
  0x76   :  { %v115_v26 = vor.u32 %v114_v25, %v113_v24 }
  0x78   :  { %v116_v27 = vxor.u32 %v115_v26, %v112_v23 }
  0x7a   :  { %v117_v28 = vadd.s32 %v116_v27, %v112_v23  ;;  %v118_v29 = vshll.u32 %v116_v27, 24  ;;  %v119_v30 = vshrl.u32 %v116_v27, 8 }
  0x7c   :  { %v120_v31 = vor.u32 %v119_v30, %v118_v29  ;;  %v122_v33 = vadd.s32 %v117_v28, %v1455_v1 }
  0x7e   :  { %v121_v32 = vxor.u32 %v120_v31, %v117_v28 }
  0x80   :  { %v123_v34 = vadd.s32 %v121_v32, %v1461_v22 }
  0x82   :  { %v124_v35 = vadd.s32 4, %v123_v34 }
  0x84   :  { %v125_v36 = vadd.s32 %v124_v35, %v122_v33  ;;  %v126_v37 = vshll.u32 %v124_v35, 13  ;;  %v127_v38 = vshrl.u32 %v124_v35, 19 }
  0x86   :  { %v128_v39 = vor.u32 %v127_v38, %v126_v37 }
  0x88   :  { %v129_v40 = vxor.u32 %v128_v39, %v125_v36 }
  0x8a   :  { %v130_v41 = vadd.s32 %v129_v40, %v125_v36  ;;  %v131_v42 = vshll.u32 %v129_v40, 15  ;;  %v132_v43 = vshrl.u32 %v129_v40, 17 }
  0x8c   :  { %v133_v44 = vor.u32 %v132_v43, %v131_v42 }
  0x8e   :  { %v134_v45 = vxor.u32 %v133_v44, %v130_v41 }
  0x90   :  { %v135_v46 = vadd.s32 %v134_v45, %v130_v41  ;;  %v136_v47 = vshll.u32 %v134_v45, 26  ;;  %v137_v48 = vshrl.u32 %v134_v45, 6 }
  0x92   :  { %v138_v49 = vor.u32 %v137_v48, %v136_v47 }
  0x94   :  { %v139_v50 = vxor.u32 %v138_v49, %v135_v46 }
  0x96   :  { %v140_v51 = vadd.s32 %v139_v50, %v135_v46  ;;  %v141_v52 = vshll.u32 %v139_v50, 6  ;;  %v142_v53 = vshrl.u32 %v139_v50, 26 }
  0x98   :  { %v143_v54 = vor.u32 %v142_v53, %v141_v52  ;;  %v145_v56 = vadd.s32 %v140_v51, %v1461_v22 }
  0x9a   :  { %v144_v55 = vxor.u32 %v143_v54, %v140_v51 }
  0x9c   :  { %v146_v57 = vadd.s32 %v144_v55, %v1455_v1 }
  0x9e   :  { %v147_v58 = vadd.s32 5, %v146_v57 }
  0xa0   :  { %v148_v59 = vxor.u32 %v147_v58, %v145_v56 }
  0xa2   :  { %149 = set.rngseed %v148_v59 }
  0xa3   :  { %v150_v60 = vrng }
  0xa4   :  { %v151_v61 = vrng  ;;  %v166_v9 = vshrl.u32 %v150_v60, 9 }
  0xa5   :  { %v152_v62 = vrng  ;;  %v167_v11 = vshrl.u32 %v151_v61, 9 }
  0xa6   :  { %v153_v63 = vrng  ;;  %v168_v12 = vshrl.u32 %v152_v62, 9  ;;  %v174_v15 = vor.u32 1065353216, %v166_v9 }
  0xa7   :  { %v154_v2 = vrng  ;;  %v169_v13 = vshrl.u32 %v153_v63, 9  ;;  %v175_v18 = vor.u32 1065353216, %v167_v11  ;;  %v2352_v63 = vmov 683565275  }
  0xa8   :  { %v155_v3 = vrng  ;;  %v170_v16 = vshrl.u32 %v154_v2, 9  ;;  %v176_v21 = vor.u32 1065353216, %v168_v12  ;;  %v214_v27 = vsub.f32 2.0, %v174_v15  ;;  %v2354_v15 = vmov 1326507024  }
  0xa9   :  { %v156_v4 = vrng  ;;  %v171_v19 = vshrl.u32 %v155_v3, 9  ;;  %v177_v24 = vor.u32 1065353216, %v169_v13  ;;  %v215_v30 = vsub.f32 2.0, %v175_v18  ;;  %v2347_v3 = vmov 2475754826  }
  0xaa   :  { %v157_v5 = vrng  ;;  %v178_v28 = vor.u32 1065353216, %v170_v16  ;;  %v172_v32 = vshrl.u32 %v156_v4, 9  ;;  %v216_v34 = vsub.f32 2.0, %v176_v21  ;;  %1304 = vlog2.f32 %v214_v27 }
  0xab   :  { %v158_v6 = vrng  ;;  %v179_v31 = vor.u32 1065353216, %v171_v19  ;;  %v173_v35 = vshrl.u32 %v157_v5, 9  ;;  %v217_v37 = vsub.f32 2.0, %v177_v24  ;;  %1306 = vlog2.f32 %v215_v30 }
  0xac   :  { %v190_v7 = vshrl.u32 %v158_v6, 9  ;;  %v159_v8 = vrng  ;;  %v218_v41 = vsub.f32 2.0, %v178_v28  ;;  %v1480_v44 = vor.u32 1065353216, %v172_v32  ;;  %1308 = vlog2.f32 %v216_v34 }
  0xad   :  { %v191_v10 = vshrl.u32 %v159_v8, 9  ;;  %v160_v26 = vrng  ;;  %v219_v43 = vsub.f32 2.0, %v179_v31  ;;  %v1482_v46 = vor.u32 1065353216, %v173_v35  ;;  %1310 = vlog2.f32 %v217_v37 }
  0xae   :  { %v198_v22 = vor.u32 1065353216, %v190_v7  ;;  %v192_v36 = vshrl.u32 %v160_v26, 9  ;;  %v161_v40 = vrng  ;;  %1312 = vlog2.f32 %v218_v41  ;;  %v220_v53 = vsub.f32 2.0, %v1480_v44 }
  0xaf   :  { %v199_v1 = vor.u32 1065353216, %v191_v10  ;;  %v193_v48 = vshrl.u32 %v161_v40, 9  ;;  %1314 = vlog2.f32 %v219_v43  ;;  %v221_v55 = vsub.f32 2.0, %v1482_v46 }
  0xb0   :  { %v1223_v14 = vadd.f32 -1.0, %v198_v22  ;;  %v200_v47 = vor.u32 1065353216, %v192_v36  ;;  %v2343_v5 = vmov 2131351028   ;;  %v2345_v7 = vmov 2102212464  }
  0xb1   :  { %v1224_v17 = vadd.f32 -1.0, %v199_v1  ;;  %v1489_v58 = vor.u32 1065353216, %v193_v48  ;;  %v2361_v22 = vmov 920167782   ;;  %1316 = vlog2.f32 %v220_v53 }
  0xb2   :  { %v1473_v20 = vmul.f32 6.2831855, %v1223_v14  ;;  %v1225_v57 = vadd.f32 -1.0, %v200_v47  ;;  %1318 = vlog2.f32 %v221_v55 }
  0xb3   :  { %v1475_v23 = vmul.f32 6.2831855, %v1224_v17 }
  0xb4   :  { %v321_v25 = vand.u32 2139095040, %v1473_v20  ;;  %v318_v38 = vand.u32 2147483647, %v1473_v20  ;;  %v1503_v1 = vpop.eup %1304 }
  0xb5   :  { %v424_v29 = vand.u32 2139095040, %v1475_v23  ;;  %v2349_v50 = vand.u32 2147483647, %v1475_v23  ;;  %v1508_v17 = vpop.eup %1306 }
  0xb6   :  { %v322_v33 = vshrl.u32 %v321_v25, 23  ;;  %v325_v49 = vand.u32 8388607, %v318_v38  ;;  %v1510_v24 = vpop.eup %1308  ;;  %v233_v44 = vmul.f32 0.6931472, %v1508_v17 }
  0xb7   :  { %v425_v42 = vshrl.u32 %v424_v29, 23  ;;  %v1493_v61 = vand.u32 8388607, %v2349_v50  ;;  %v1512_v27 = vpop.eup %1310 }
  0xb8   :  { %v1231_v39 = vadd.s32 4294967169, %v322_v33  ;;  %v326_v59 = vor.u32 8388608, %v325_v49  ;;  %v1514_v32 = vpop.eup %1312 }
  0xb9   :  { %v1235_v52 = vadd.s32 4294967169, %v425_v42  ;;  %v1517_v37 = vpop.eup %1314 }
  0xba   :  { %v328_v45 = vadd.s32 1, %v1231_v39  ;;  %v366_v41 = vshll.u32 %v326_v59, 8 }
  0xbb   :  { %v431_v62 = vadd.s32 1, %v1235_v52 }
  0xbc   :  { %vm329_vm0 = vcmp.gt.s32.totalorder %v328_v45, 0 }
  0xbd   :  { %v330_v51 = vsel %vm329_vm0, %v328_v45, 0  ;;  %vm432_vm4 = vcmp.gt.s32.totalorder %v431_v62, 0 }
  0xbe   :  { %v332_v54 = vand.u32 31, %v330_v51  ;;  %v331_v56 = vshrl.u32 %v330_v51, 5  ;;  %v433_v36 = vsel %vm432_vm4, %v431_v62, 0 }
  0xbf   :  { %v435_v47 = vand.u32 31, %v433_v36 }
  0xc0   :  { %v333_v60 = vsub.s32 32, %v332_v54  ;;  %v335_v2 = vshll.u32 %v2352_v63, %v332_v54  ;;  %v338_v4 = vshll.u32 %v2347_v3, %v332_v54  ;;  %v341_v6 = vshll.u32 %v2343_v5, %v332_v54 }
  0xc1   :  { %v344_v8 = vshll.u32 %v2345_v7, %v332_v54  ;;  %v347_v12 = vshll.u32 %v2361_v22, %v332_v54  ;;  %vm350_vm1 = vcmp.lt.s32.totalorder %v331_v56, 1  ;;  %vm352_vm2 = vcmp.lt.s32.totalorder %v331_v56, 3 }
  0xc2   :  { %v336_v9 = vshrl.u32 %v2347_v3, %v333_v60  ;;  %v339_v10 = vshrl.u32 %v2343_v5, %v333_v60  ;;  %v342_v11 = vshrl.u32 %v2345_v7, %v333_v60  ;;  %v334_v13 = vshrl.u32 %v2352_v63, %v333_v60 }
  0xc3   :  { %v345_v14 = vshrl.u32 %v2361_v22, %v333_v60  ;;  %v348_v16 = vshrl.u32 %v2354_v15, %v333_v60  ;;  %vm353_vm3 = vcmp.lt.s32.totalorder %v331_v56, 4  ;;  %vm351_vm5 = vcmp.lt.s32.totalorder %v331_v56, 2 }
  0xc4   :  { %v337_v18 = vor.u32 %v336_v9, %v335_v2  ;;  %v340_v19 = vor.u32 %v339_v10, %v338_v4  ;;  %v343_v21 = vor.u32 %v342_v11, %v341_v6  ;;  %v429_v54 = vor.u32 8388608, %v1493_v61 }
  0xc5   :  { %v346_v25 = vor.u32 %v345_v14, %v344_v8  ;;  %v349_v26 = vor.u32 %v348_v16, %v347_v12  ;;  %v434_v60 = vshrl.u32 %v433_v36, 5  ;;  %v436_v62 = vsub.s32 32, %v435_v47 }
  0xc6   :  { %v354_v28 = vsel %vm350_vm1, %v334_v13, %v337_v18  ;;  %v355_v29 = vsel %vm353_vm3, %v343_v21, 2102212464  ;;  %v358_v30 = vsel %vm350_vm1, %v337_v18, %v340_v19  ;;  %v362_v31 = vsel %vm350_vm1, %v340_v19, %v343_v21 }
  0xc7   :  { %v356_v33 = vsel %vm352_vm2, %v340_v19, %v355_v29  ;;  %v359_v34 = vsel %vm353_vm3, %v346_v25, 920167782  ;;  %v363_v35 = vsel %vm353_vm3, %v349_v26, 1326507024  ;;  %v1529_v2 = vmul.f32 6.2831855, %v1225_v57 }
  0xc8   :  { %v360_v39 = vsel %vm352_vm2, %v343_v21, %v359_v34  ;;  %v364_v40 = vsel %vm352_vm2, %v346_v25, %v363_v35  ;;  %v357_v42 = vsel %vm351_vm5, %v354_v28, %v356_v33  ;;  %v438_v59 = vshll.u32 %v2352_v63, %v435_v47 }
  0xc9   :  { %v361_v43 = vsel %vm351_vm5, %v358_v30, %v360_v39  ;;  %v365_v45 = vsel %vm351_vm5, %v362_v31, %v364_v40  ;;  %v373_v56 = vmul.u32 %v366_v41, %v357_v42  ;;  %v441_v4 = vshll.u32 %v2347_v3, %v435_v47 }
  0xca   :  { %v1521_v48 = vmul.u32.u64.low %v366_v41, %v365_v45  ;;  %v1522_v49 = vmul.u32.u64.high %v366_v41, %v365_v45, %v1521_v48  ;;  %v1524_v51 = vmul.u32.u64.low %v366_v41, %v361_v43  ;;  %v1525_v52 = vmul.u32.u64.high %v366_v41, %v361_v43, %v1524_v51 }
  0xcb   :  { %v444_v6 = vshll.u32 %v2343_v5, %v435_v47  ;;  %v439_v8 = vshrl.u32 %v2347_v3, %v436_v62  ;;  %v442_v9 = vshrl.u32 %v2343_v5, %v436_v62  ;;  %v445_v10 = vshrl.u32 %v2345_v7, %v436_v62 }
  0xcc   :  { %v447_v11 = vshll.u32 %v2345_v7, %v435_v47  ;;  %vm375_vm6 = vc.u32 %v1522_v49, %v1524_v51  ;;  %v376_v57 = vadd.s32 1, %v1525_v52  ;;  %v448_v61 = vshrl.u32 %v2361_v22, %v436_v62 }
  0xcd   :  { %v450_v12 = vshll.u32 %v2361_v22, %v435_v47  ;;  %v440_v13 = vor.u32 %v439_v8, %v438_v59  ;;  %v443_v14 = vor.u32 %v442_v9, %v441_v4  ;;  %v446_v16 = vor.u32 %v445_v10, %v444_v6  ;;  %v162_v8 = vrng }
  0xce   :  { %v451_v18 = vshrl.u32 %v2354_v15, %v436_v62  ;;  %v377_v19 = vsel %vm375_vm6, %v376_v57, %v1525_v52  ;;  %v437_v21 = vshrl.u32 %v2352_v63, %v436_v62  ;;  %v449_v25 = vor.u32 %v448_v61, %v447_v11 }
  0xcf   :  { %vm453_vm7 = vcmp.lt.s32.totalorder %v434_v60, 1  ;;  %v378_v26 = vadd.s32 %v377_v19, %v373_v56  ;;  %vm455_vm8 = vcmp.lt.s32.totalorder %v434_v60, 3  ;;  %vm456_vm9 = vcmp.lt.s32.totalorder %v434_v60, 4 }
  0xd0   :  { %v452_v28 = vor.u32 %v451_v18, %v450_v12  ;;  %v458_v29 = vsel %vm456_vm9, %v446_v16, 2102212464  ;;  %v461_v30 = vsel %vm453_vm7, %v440_v13, %v443_v14  ;;  %v462_v31 = vsel %vm456_vm9, %v449_v25, 920167782 }
  0xd1   :  { %v465_v33 = vsel %vm453_vm7, %v443_v14, %v446_v16  ;;  %v379_v34 = vadd.s32 536870912, %v378_v26  ;;  %vm454_vm10 = vcmp.lt.s32.totalorder %v434_v60, 2  ;;  %v463_v35 = vsel %vm455_vm8, %v446_v16, %v462_v31 }
  0xd2   :  { %v466_v36 = vsel %vm456_vm9, %v452_v28, 1326507024  ;;  %v457_v39 = vsel %vm453_vm7, %v437_v21, %v440_v13  ;;  %v464_v40 = vsel %vm454_vm10, %v461_v30, %v463_v35  ;;  %v469_v42 = vshll.u32 %v429_v54, 8 }
  0xd3   :  { %v467_v41 = vsel %vm455_vm8, %v449_v25, %v466_v36  ;;  %v1546_v43 = vshrl.u32 %v379_v34, 30  ;;  %v459_v45 = vsel %vm455_vm8, %v443_v14, %v458_v29  ;;  %v527_v48 = vand.u32 2139095040, %v1529_v2  ;;  %v1317_v36 = vpop.eup %1316 }
  0xd4   :  { %v468_v47 = vsel %vm454_vm10, %v465_v33, %v467_v41  ;;  %v1552_v56 = vmul.u32.u64.low %v469_v42, %v464_v40  ;;  %v1553_v59 = vmul.u32.u64.high %v469_v42, %v464_v40, %v1552_v56  ;;  %v460_v4 = vsel %vm454_vm10, %v457_v39, %v459_v45 }
  0xd5   :  { %v1549_v52 = vmul.u32.u64.low %v469_v42, %v468_v47  ;;  %v1550_v62 = vmul.u32.u64.high %v469_v42, %v468_v47, %v1549_v52  ;;  %v381_v60 = vshll.u32 %v1546_v43, 30  ;;  %v528_v54 = vshrl.u32 %v527_v48, 23 }
  0xd6   :  { %v1226_v6 = vadd.f32 -1.0, %v1489_v58  ;;  %v231_v10 = vmul.f32 0.6931472, %v1503_v1  ;;  %v479_v11 = vadd.s32 1, %v1553_v59  ;;  %v476_v57 = vmul.u32 %v469_v42, %v460_v4  ;;  %v163_v58 = vrng  ;;  %v1319_v42 = vpop.eup %1318 }
  0xd7   :  { %v1562_v9 = vsub.s32 %v378_v26, %v381_v60  ;;  %vm478_vm11 = vc.u32 %v1550_v62, %v1552_v56  ;;  %v1239_v61 = vadd.s32 4294967169, %v528_v54  ;;  %v235_v12 = vmul.f32 0.6931472, %v1510_v24  ;;  %v1581_v24 = vrng }
  0xd8   :  { %v480_v46 = vsel %vm478_vm11, %v479_v11, %v1553_v59  ;;  %v1572_v55 = vmul.f32 6.2831855, %v1226_v6  ;;  %v237_v1 = vmul.f32 0.6931472, %v1512_v27  ;;  %v1576_v18 = vmul.f32 -2.0, %v231_v10 }
  0xd9   :  { %v384_v53 = vsub.s32 0, %v1562_v9  ;;  %v481_v14 = vadd.s32 %v480_v46, %v476_v57  ;;  %v534_v16 = vadd.s32 1, %v1239_v61  ;;  %v194_v17 = vshrl.u32 %v162_v8, 9 }
  0xda   :  { %v195_v19 = vshrl.u32 %v163_v58, 9  ;;  %v1578_v21 = vmul.f32 -2.0, %v233_v44  ;;  %v2342_v26 = vand.u32 2147483647, %v1529_v2  ;;  %v1583_v28 = vmul.f32 -2.0, %v235_v12 }
  0xdb   :  { %v1232_v13 = vmin.u32 %v384_v53, %v1562_v9  ;;  %v482_v25 = vadd.s32 536870912, %v481_v14  ;;  %vm535_vm12 = vcmp.gt.s32.totalorder %v534_v16, 0  ;;  %v630_v30 = vand.u32 2139095040, %v1572_v55 }
  0xdc   :  { %v536_v27 = vsel %vm535_vm12, %v534_v16, 0  ;;  %v1586_v31 = vmul.f32 -2.0, %v237_v1  ;;  %v239_v33 = vmul.f32 0.6931472, %v1514_v32  ;;  %1320 = vrsqrt.f32 %v1576_v18 }
  0xdd   :  { %v386_v29 = vclz %v1232_v13  ;;  %v1589_v34 = vshrl.u32 %v482_v25, 30  ;;  %v538_v35 = vand.u32 31, %v536_v27  ;;  %v241_v39 = vmul.f32 0.6931472, %v1517_v37 }
  0xde   :  { %v1593_v40 = vor.u32 1065353216, %v194_v17  ;;  %1322 = vrsqrt.f32 %v1578_v21  ;;  %v531_v32 = vand.u32 8388607, %v2342_v26  ;;  %v631_v52 = vshrl.u32 %v630_v30, 23 }
  0xdf   :  { %v484_v45 = vshll.u32 %v1589_v34, 30  ;;  %v539_v47 = vsub.s32 32, %v538_v35  ;;  %1324 = vrsqrt.f32 %v1583_v28  ;;  %v1233_v48 = vadd.s32 4294967294, %v386_v29 }
  0xe0   :  { %v1601_v59 = vor.u32 1065353216, %v195_v19  ;;  %1326 = vrsqrt.f32 %v1586_v31  ;;  %v1604_v37 = vmul.f32 -2.0, %v239_v33  ;;  %v243_v60 = vmul.f32 0.6931472, %v1317_v36 }
  0xe1   :  { %v1606_v4 = vsub.s32 %v481_v14, %v484_v45  ;;  %v1608_v54 = vmul.f32 -2.0, %v241_v39  ;;  %v245_v6 = vmul.f32 0.6931472, %v1319_v42  ;;  %v542_v8 = vshrl.u32 %v2347_v3, %v539_v47 }
  0xe2   :  { %2368 = vst [vmem:[#allocation9_spill] sm:$0xff] %v1604_v37  ;;  %v545_v10 = vshrl.u32 %v2343_v5, %v539_v47  ;;  %v532_v44 = vor.u32 8388608, %v531_v32  ;;  %v541_v53 = vshll.u32 %v2352_v63, %v538_v35  ;;  %v544_v57 = vshll.u32 %v2347_v3, %v538_v35 }
  0xe3   :  { %2369 = vst [vmem:[#allocation10_spill] sm:$0xff] %v1608_v54  ;;  %v487_v11 = vsub.s32 0, %v1606_v4  ;;  %vm1234_vm13 = vcmp.lt.s32.totalorder %v1233_v48, 0  ;;  %v537_v61 = vshrl.u32 %v536_v27, 5  ;;  %v548_v58 = vshrl.u32 %v2345_v7, %v539_v47 }
  0xe4   :  { %v1243_v12 = vadd.s32 4294967169, %v631_v52  ;;  %v543_v1 = vor.u32 %v542_v8, %v541_v53  ;;  %v546_v13 = vor.u32 %v545_v10, %v544_v57  ;;  %v547_v14 = vshll.u32 %v2343_v5, %v538_v35 }
  0xe5   :  { %v1236_v46 = vmin.u32 %v487_v11, %v1606_v4  ;;  %v550_v16 = vshll.u32 %v2345_v7, %v538_v35  ;;  %v551_v17 = vshrl.u32 %v2361_v22, %v539_v47  ;;  %v553_v19 = vshll.u32 %v2361_v22, %v538_v35 }
  0xe6   :  { %v554_v25 = vshrl.u32 %v2354_v15, %v539_v47  ;;  %1328 = vrsqrt.f32 %v1604_v37  ;;  %v1623_v29 = vmul.f32 -2.0, %v243_v60  ;;  %v549_v30 = vor.u32 %v548_v58, %v547_v14  ;;  %v1625_v33 = vpop.eup %1320 }
  0xe7   :  { %v489_v27 = vclz %v1236_v46  ;;  %v552_v36 = vor.u32 %v551_v17, %v550_v16  ;;  %v572_v42 = vshll.u32 %v532_v44, 8  ;;  %v2341_v45 = vand.u32 2147483647, %v1572_v55 }
  0xe8   :  { %2370 = vst [vmem:[#allocation11_spill] sm:$0xff] %v1623_v29  ;;  %v555_v39 = vor.u32 %v554_v25, %v553_v19  ;;  %v1628_v32 = vpop.eup %1322  ;;  %v1631_v52 = vsel %vm1234_vm13, 0, %v1233_v48  ;;  %vm556_vm14 = vcmp.lt.s32.totalorder %v537_v61, 1  ;;  %vm559_vm15 = vcmp.lt.s32.totalorder %v537_v61, 4 }
  0xe9   :  { %v637_v35 = vadd.s32 1, %v1243_v12  ;;  %v1633_v8 = vpop.eup %1324  ;;  %v540_v60 = vshrl.u32 %v2352_v63, %v539_v47  ;;  %vm558_vm0 = vcmp.lt.s32.totalorder %v537_v61, 3  ;;  %v564_v10 = vsel %vm556_vm14, %v543_v1, %v546_v13 }
  0xea   :  { %v565_v11 = vsel %vm559_vm15, %v552_v36, 920167782  ;;  %v1637_v53 = vpop.eup %1326  ;;  %v1237_v44 = vadd.s32 4294967294, %v489_v27  ;;  %vm557_vm1 = vcmp.lt.s32.totalorder %v537_v61, 2  ;;  %v561_v57 = vsel %vm559_vm15, %v549_v30, 2102212464 }
  0xeb   :  { %2371 = vst [vmem:[#allocation12_spill] sm:$0xff] %v1637_v53  ;;  %v566_v58 = vsel %vm558_vm0, %v549_v30, %v565_v11  ;;  %v394_v48 = vsub.s32 4294967266, %v1631_v52  ;;  %v568_v12 = vsel %vm556_vm14, %v546_v13, %v549_v30  ;;  %v569_v14 = vsel %vm559_vm15, %v555_v39, 1326507024 }
  0xec   :  { %v567_v46 = vsel %vm557_vm1, %v564_v10, %v566_v58  ;;  %1330 = vrsqrt.f32 %v1608_v54  ;;  %v1644_v47 = vmul.f32 -2.0, %v245_v6  ;;  %v560_v16 = vsel %vm556_vm14, %v540_v60, %v543_v1 }
  0xed   :  { %v1227_v17 = vadd.f32 -1.0, %v1593_v40  ;;  %v562_v19 = vsel %vm558_vm0, %v546_v13, %v561_v57  ;;  %v570_v25 = vsel %vm558_vm0, %v552_v36, %v569_v14  ;;  %v390_v10 = vsub.s32 32, %v1631_v52 }
  0xee   :  { %2372 = vst [vmem:[#allocation13_spill] sm:$0xff] %v1644_v47  ;;  %v1650_v27 = vmul.u32.u64.low %v572_v42, %v567_v46  ;;  %v1651_v11 = vmul.u32.u64.high %v572_v42, %v567_v46, %v1650_v27  ;;  %vm1238_vm2 = vcmp.lt.s32.totalorder %v1237_v44, 0  ;;  %v571_v30 = vsel %vm557_vm1, %v568_v12, %v570_v25 }
  0xef   :  { %v634_v6 = vand.u32 8388607, %v2341_v45  ;;  %v395_v39 = vadd.s32 127, %v394_v48  ;;  %v1658_v1 = vmul.u32.u64.low %v572_v42, %v571_v30  ;;  %v1659_v60 = vmul.u32.u64.high %v572_v42, %v571_v30, %v1658_v1 }
  0xf0   :  { %vm638_vm3 = vcmp.gt.s32.totalorder %v637_v35, 0  ;;  %v1661_v40 = vpop.eup %1328  ;;  %v374_v13 = vadd.s32 %v1524_v51, %v1522_v49  ;;  %v563_v57 = vsel %vm557_vm1, %v560_v16, %v562_v19  ;;  %v1667_v46 = vsel %vm1238_vm2, 0, %v1237_v44 }
  0xf1   :  { %2373 = vst [vmem:[#allocation14_spill] sm:$0xff] %v1661_v40  ;;  %v639_v58 = vsel %vm638_vm3, %v637_v35, 0  ;;  %v582_v12 = vadd.s32 1, %v1651_v11  ;;  %v1228_v48 = vadd.f32 -1.0, %v1601_v59  ;;  %v1673_v30 = vadd.s32 %v1552_v56, %v1550_v62 }
  0xf2   :  { %v641_v14 = vand.u32 31, %v639_v58  ;;  %v392_v25 = vshrl.u32 %v374_v13, %v390_v10  ;;  %v635_v1 = vor.u32 8388608, %v634_v6  ;;  %v1675_v0 = vmul.f32 6.2831855, %v1227_v17 }
  0xf3   :  { %v396_v49 = vshll.u32 %v395_v39, 23  ;;  %v579_v51 = vmul.u32 %v572_v42, %v563_v57  ;;  %vm581_vm4 = vc.u32 %v1659_v60, %v1650_v27  ;;  %v497_v35 = vsub.s32 4294967266, %v1667_v46 }
  0xf4   :  { %v642_v61 = vsub.s32 32, %v641_v14  ;;  %v583_v44 = vsel %vm581_vm4, %v582_v12, %v1651_v11  ;;  %v640_v16 = vshrl.u32 %v639_v58, 5  ;;  %v644_v59 = vshll.u32 %v2352_v63, %v641_v14 }
  0xf5   :  { %v584_v19 = vadd.s32 %v583_v44, %v579_v51  ;;  %v647_v56 = vshll.u32 %v2347_v3, %v641_v14  ;;  %v650_v42 = vshll.u32 %v2343_v5, %v641_v14  ;;  %v653_v39 = vshll.u32 %v2345_v7, %v641_v14 }
  0xf6   :  { %v645_v62 = vshrl.u32 %v2347_v3, %v642_v61  ;;  %v648_v17 = vshrl.u32 %v2343_v5, %v642_v61  ;;  %v1685_v10 = vpop.eup %1330  ;;  %v651_v6 = vshrl.u32 %v2345_v7, %v642_v61  ;;  %v654_v11 = vshrl.u32 %v2361_v22, %v642_v61 }
  0xf7   :  { %2374 = vst [vmem:[#allocation15_spill] sm:$0xff] %v1685_v10  ;;  %v391_v13 = vshll.u32 %v1562_v9, %v1631_v52  ;;  %v585_v57 = vadd.s32 536870912, %v584_v19  ;;  %v656_v45 = vshll.u32 %v2361_v22, %v641_v14  ;;  %v657_v26 = vshrl.u32 %v2354_v15, %v642_v61 }
  0xf8   :  { %v646_v58 = vor.u32 %v645_v62, %v644_v59  ;;  %v649_v12 = vor.u32 %v648_v17, %v647_v56  ;;  %v652_v51 = vor.u32 %v651_v6, %v650_v42  ;;  %v655_v44 = vor.u32 %v654_v11, %v653_v39 }
  0xf9   :  { %vm320_vm5 = vcmp.lt.s32.totalorder %v1473_v20, 0  ;;  %v393_v41 = vor.u32 %v392_v25, %v391_v13  ;;  %v1696_v5 = vshrl.u32 %v585_v57, 30  ;;  %v675_v7 = vshll.u32 %v635_v1, 8 }
  0xfa   :  { %v1698_v3 = vmul.f32 6.2831855, %v1228_v48  ;;  %v397_v50 = vor.u32 4788187, %v396_v49  ;;  %v498_v36 = vadd.s32 127, %v497_v35  ;;  %v658_v9 = vor.u32 %v657_v26, %v656_v45 }
  0xfb   :  { %vm662_vm6 = vcmp.lt.s32.totalorder %v640_v16, 4  ;;  %v587_v52 = vshll.u32 %v1696_v5, 30  ;;  %v643_v59 = vshrl.u32 %v2352_v63, %v642_v61  ;;  %vm659_vm7 = vcmp.lt.s32.totalorder %v640_v16, 1 }
  0xfc   :  { %v664_v14 = vsel %vm662_vm6, %v652_v51, 2102212464  ;;  %v493_v62 = vsub.s32 32, %v1667_v46  ;;  %vm661_vm8 = vcmp.lt.s32.totalorder %v640_v16, 3  ;;  %v667_v25 = vsel %vm659_vm7, %v646_v58, %v649_v12 }
  0xfd   :  { %v668_v56 = vsel %vm662_vm6, %v655_v44, 920167782  ;;  %vm1707_vm9 = vcmp.le.f32.partialorder %v318_v38, 0.7853982  ;;  %vm423_vm10 = vcmp.lt.s32.totalorder %v1475_v23, 0  ;;  %v1712_v26 = vsub.s32 %v584_v19, %v587_v52 }
  0xfe   :  { %v663_v45 = vsel %vm659_vm7, %v643_v59, %v646_v58  ;;  %v665_v1 = vsel %vm661_vm8, %v649_v12, %v664_v14  ;;  %v733_v49 = vand.u32 2139095040, %v1675_v0  ;;  %vm660_vm11 = vcmp.lt.s32.totalorder %v640_v16, 2 }
  0xff   :  { %v669_v61 = vsel %vm661_vm8, %v652_v51, %v668_v56  ;;  %v671_v35 = vsel %vm659_vm7, %v649_v12, %v652_v51  ;;  %v672_v17 = vsel %vm662_vm6, %v658_v9, 1326507024  ;;  %v499_v42 = vshll.u32 %v498_v36, 23 }
 0x100   :  { %v590_v38 = vsub.s32 0, %v1712_v26  ;;  %v670_v6 = vsel %vm660_vm11, %v667_v25, %v669_v61  ;;  %v673_v39 = vsel %vm661_vm8, %v655_v44, %v672_v17  ;;  %v666_v11 = vsel %vm660_vm11, %v663_v45, %v665_v1 }
 0x101   :  { %v674_v19 = vsel %vm660_vm11, %v671_v35, %v673_v39  ;;  %v1720_v13 = vmul.u32.u64.low %v675_v7, %v670_v6  ;;  %v1721_v57 = vmul.u32.u64.high %v675_v7, %v670_v6, %v1720_v13  ;;  %v734_v12 = vshrl.u32 %v733_v49, 23 }
 0x102   :  { %v1240_v58 = vmin.u32 %v590_v38, %v1712_v26  ;;  %v1725_v52 = vmul.u32.u64.low %v675_v7, %v674_v19  ;;  %v1726_v59 = vmul.u32.u64.high %v675_v7, %v674_v19, %v1725_v52  ;;  %v398_v51 = vand.u32 2147483647, %v397_v50 }
 0x103   :  { %v2377_v36 = vsub.s32 4, %v1546_v43  ;;  %v2378_v44 = vand.u32 2147483647, %v1475_v23  ;;  %v507_v14 = vsub.s32 4, %v1589_v34  ;;  %v2351_v25 = vand.u32 2147483647, %v1675_v0 }
 0x104   :  { %v400_v56 = vcvt.s32.f32 %v393_v41  ;;  %v495_v45 = vshrl.u32 %v1673_v30, %v493_v62  ;;  %v592_v50 = vclz %v1240_v58  ;;  %v1247_v1 = vadd.s32 4294967169, %v734_v12 }
 0x105   :  { %v405_v16 = vsel %vm320_vm5, %v2377_v36, %v1546_v43  ;;  %vm1735_vm12 = vcmp.le.f32.partialorder %v2378_v44, 0.7853982  ;;  %v494_v49 = vshll.u32 %v1606_v4, %v1667_v46  ;;  %v500_v61 = vor.u32 4788187, %v499_v42 }
 0x106   :  { %v682_v43 = vmul.u32 %v675_v7, %v666_v11  ;;  %v685_v35 = vadd.s32 1, %v1721_v57  ;;  %v1241_v17 = vadd.s32 4294967294, %v592_v50  ;;  %vm684_vm13 = vc.u32 %v1726_v59, %v1720_v13 }
 0x107   :  { %v740_v38 = vadd.s32 1, %v1247_v1  ;;  %v836_v6 = vand.u32 2139095040, %v1698_v3  ;;  %v1748_v39 = vmul.f32 %v400_v56, %v398_v51  ;;  %v407_v41 = vsel %vm1707_vm9, 0, %v405_v16 }
 0x108   :  { %v1755_v4 = vsel %vm423_vm10, %v507_v14, %v1589_v34  ;;  %v686_v7 = vsel %vm684_vm13, %v685_v35, %v1721_v57  ;;  %v496_v46 = vor.u32 %v495_v45, %v494_v49  ;;  %vm1242_vm14 = vcmp.lt.s32.totalorder %v1241_v17, 0 }
 0x109   :  { %v687_v30 = vadd.s32 %v686_v7, %v682_v43  ;;  %vm741_vm15 = vcmp.gt.s32.totalorder %v740_v38, 0  ;;  %v1758_v62 = vsel %vm1242_vm14, 0, %v1241_v17  ;;  %v737_v42 = vand.u32 8388607, %v2351_v25 }
 0x10a   :  { %v742_v11 = vsel %vm741_vm15, %v740_v38, 0  ;;  %v2350_v19 = vand.u32 2147483647, %v1698_v3  ;;  %1332 = vrsqrt.f32 %v1623_v29  ;;  %v501_v58 = vand.u32 2147483647, %v500_v61 }
 0x10b   :  { %v688_v52 = vadd.s32 536870912, %v687_v30  ;;  %v837_v34 = vshrl.u32 %v836_v6, 23  ;;  %1334 = vrsqrt.f32 %v1644_v47  ;;  %v1765_v57 = vand.u32 3, %v407_v41 }
 0x10c   :  { %v600_v12 = vsub.s32 4294967266, %v1758_v62  ;;  %v744_v51 = vand.u32 31, %v742_v11  ;;  %v503_v16 = vcvt.s32.f32 %v496_v46  ;;  %v580_v56 = vadd.s32 %v1650_v27, %v1659_v60 }
 0x10d   :  { %2381 = vst [vmem:[#allocation16_spill] sm:$0xff] %v1765_v57  ;;  %v1772_v14 = vshrl.u32 %v688_v52, 30  ;;  %v738_v45 = vor.u32 8388608, %v737_v42  ;;  %v1778_v1 = vand.u32 8388607, %v2350_v19  ;;  %v596_v61 = vsub.s32 32, %v1758_v62 }
 0x10e   :  { %v745_v50 = vsub.s32 32, %v744_v51  ;;  %v1780_v49 = vmul.f32 %v503_v16, %v501_v58  ;;  %v1251_v35 = vadd.s32 4294967169, %v837_v34  ;;  %v601_v17 = vadd.s32 127, %v600_v12 }
 0x10f   :  { %v690_v43 = vshll.u32 %v1772_v14, 30  ;;  %v2382_v38 = vmov 2475754826   ;;  %v2383_v41 = vmov 2131351028   ;;  %v747_v42 = vshll.u32 %v2352_v63, %v744_v51 }
 0x110   :  { %v748_v6 = vshrl.u32 %v2382_v38, %v745_v50  ;;  %v751_v7 = vshrl.u32 %v2383_v41, %v745_v50  ;;  %v2384_v46 = vmov 2102212464   ;;  %v750_v52 = vshll.u32 %v2382_v38, %v744_v51 }
 0x111   :  { %v754_v27 = vshrl.u32 %v2384_v46, %v745_v50  ;;  %v1787_v60 = vsub.s32 %v687_v30, %v690_v43  ;;  %v753_v58 = vshll.u32 %v2383_v41, %v744_v51  ;;  %v597_v16 = vshll.u32 %v1712_v26, %v1758_v62 }
 0x112   :  { %v743_v19 = vshrl.u32 %v742_v11, 5  ;;  %v1794_v34 = vshll.u32 %v738_v45, 8  ;;  %v841_v12 = vor.u32 8388608, %v1778_v1  ;;  %v749_v44 = vor.u32 %v748_v6, %v747_v42 }
 0x113   :  { %v693_v25 = vsub.s32 0, %v1787_v60  ;;  %v752_v36 = vor.u32 %v751_v7, %v750_v52  ;;  %v755_v30 = vor.u32 %v754_v27, %v753_v58  ;;  %v756_v43 = vshll.u32 %v2384_v46, %v744_v51 }
 0x114   :  { %v757_v63 = vshrl.u32 %v2361_v22, %v745_v50  ;;  %v759_v15 = vshll.u32 %v2361_v22, %v744_v51  ;;  %v2385_v47 = vmov 1326507024   ;;  %v1802_v57 = vpop.eup %1332  ;;  %v598_v26 = vshrl.u32 %v580_v56, %v596_v61 }
 0x115   :  { %v760_v29 = vshrl.u32 %v2385_v47, %v745_v50  ;;  %2386 = vst [vmem:[#allocation17_spill] sm:$0xff] %v1802_v57  ;;  %v602_v62 = vshll.u32 %v601_v17, 23  ;;  %v1244_v11 = vmin.u32 %v693_v25, %v1787_v60  ;;  %v843_v45 = vadd.s32 1, %v1251_v35  ;;  %v1805_v1 = vpop.eup %1334 }
 0x116   :  { %2387 = vst [vmem:[#allocation18_spill] sm:$0xff] %v1805_v1  ;;  %v2388_v6 = vmov 683565275   ;;  %v758_v27 = vor.u32 %v757_v63, %v756_v43  ;;  %vm765_vm0 = vcmp.lt.s32.totalorder %v743_v19, 4  ;;  %vm762_vm1 = vcmp.lt.s32.totalorder %v743_v19, 1 }
 0x117   :  { %v746_v7 = vshrl.u32 %v2388_v6, %v745_v50  ;;  %v761_v42 = vor.u32 %v760_v29, %v759_v15  ;;  %v695_v52 = vclz %v1244_v11  ;;  %vm764_vm2 = vcmp.lt.s32.totalorder %v743_v19, 3 }
 0x118   :  { %v767_v51 = vsel %vm765_vm0, %v755_v30, 2102212464  ;;  %v770_v58 = vsel %vm762_vm1, %v749_v44, %v752_v36  ;;  %v771_v22 = vsel %vm765_vm0, %v758_v27, 920167782  ;;  %v774_v10 = vsel %vm762_vm1, %v752_v36, %v755_v30 }
 0x119   :  { %v775_v57 = vsel %vm765_vm0, %v761_v42, 1326507024  ;;  %v599_v56 = vor.u32 %v598_v26, %v597_v16  ;;  %v1245_v61 = vadd.s32 4294967294, %v695_v52  ;;  %v772_v17 = vsel %vm764_vm2, %v755_v30, %v771_v22 }
 0x11a   :  { %v2389_v25 = vshrl.u32 %v1581_v24, 9  ;;  %vm763_vm3 = vcmp.lt.s32.totalorder %v743_v19, 2  ;;  %v766_v1 = vsel %vm762_vm1, %v746_v7, %v749_v44  ;;  %v768_v50 = vsel %vm764_vm2, %v752_v36, %v767_v51 }
 0x11b   :  { %v776_v63 = vsel %vm764_vm2, %v758_v27, %v775_v57  ;;  %vm1246_vm4 = vcmp.lt.s32.totalorder %v1245_v61, 0  ;;  %v773_v15 = vsel %vm763_vm3, %v770_v58, %v772_v17  ;;  %vm844_vm6 = vcmp.gt.s32.totalorder %v843_v45, 0 }
 0x11c   :  { %v204_v35 = vor.u32 1065353216, %v2389_v25  ;;  %v777_v29 = vsel %vm763_vm3, %v774_v10, %v776_v63  ;;  %v603_v43 = vor.u32 4788187, %v602_v62  ;;  %v698_v11 = vsel %vm1246_vm4, 0, %v1245_v61 }
 0x11d   :  { %v1811_v54 = vmul.u32.u64.low %v1794_v34, %v777_v29  ;;  %v1812_v40 = vmul.u32.u64.high %v1794_v34, %v777_v29, %v1811_v54  ;;  %v2390_v22 = vxor.u32 2147483648, %v1748_v39  ;;  %v703_v19 = vsub.s32 4294967266, %v698_v11 }
 0x11e   :  { %v769_v36 = vsel %vm763_vm3, %v766_v1, %v768_v50  ;;  %v845_v57 = vsel %vm844_vm6, %v843_v45, 0  ;;  %v1823_v10 = vmul.u32.u64.low %v1794_v34, %v773_v15  ;;  %v1824_v16 = vmul.u32.u64.high %v1794_v34, %v773_v15, %v1823_v10 }
 0x11f   :  { %v1819_v24 = vsel %vm320_vm5, %v2390_v22, %v1748_v39  ;;  %v847_v30 = vand.u32 31, %v845_v57  ;;  %v683_v54 = vadd.s32 %v1720_v13, %v1726_v59  ;;  %v704_v26 = vadd.s32 127, %v703_v19 }
 0x120   :  { %v1829_v62 = vshll.u32 %v841_v12, 8  ;;  %v1229_v7 = vadd.f32 -1.0, %v204_v35  ;;  %v604_v39 = vand.u32 2147483647, %v603_v43  ;;  %v606_v27 = vcvt.s32.f32 %v599_v56 }
 0x121   :  { %v785_v1 = vmul.u32 %v1794_v34, %v769_v36  ;;  %v848_v45 = vsub.s32 32, %v847_v30  ;;  %v699_v42 = vsub.s32 32, %v698_v11  ;;  %vm787_vm5 = vc.u32 %v1812_v40, %v1823_v10 }
 0x122   :  { %v846_v52 = vshrl.u32 %v845_v57, 5  ;;  %v850_v51 = vshll.u32 %v2388_v6, %v847_v30  ;;  %v788_v58 = vadd.s32 1, %v1824_v16  ;;  %v853_v59 = vshll.u32 %v2382_v38, %v847_v30 }
 0x123   :  { %v851_v13 = vshrl.u32 %v2382_v38, %v848_v45  ;;  %v854_v12 = vshrl.u32 %v2383_v41, %v848_v45  ;;  %v705_v61 = vshll.u32 %v704_v26, 23  ;;  %v856_v56 = vshll.u32 %v2383_v41, %v847_v30 }
 0x124   :  { %v857_v34 = vshrl.u32 %v2384_v46, %v848_v45  ;;  %v859_v17 = vshll.u32 %v2384_v46, %v847_v30  ;;  %v789_v25 = vsel %vm787_vm5, %v788_v58, %v1824_v16  ;;  %v2391_v63 = vmov 920167782  }
 0x125   :  { %v852_v35 = vor.u32 %v851_v13, %v850_v51  ;;  %v855_v50 = vor.u32 %v854_v12, %v853_v59  ;;  %v860_v15 = vshrl.u32 %v2391_v63, %v848_v45  ;;  %v1844_v29 = vmul.f32 %v606_v27, %v604_v39 }
 0x126   :  { %v700_v43 = vshll.u32 %v1787_v60, %v698_v11  ;;  %v790_v22 = vadd.s32 %v789_v25, %v785_v1  ;;  %v858_v19 = vor.u32 %v857_v34, %v856_v56  ;;  %v701_v36 = vshrl.u32 %v683_v54, %v699_v42 }
 0x127   :  { %v861_v57 = vor.u32 %v860_v15, %v859_v17  ;;  %v862_v26 = vshll.u32 %v2391_v63, %v847_v30  ;;  %v863_v44 = vshrl.u32 %v2385_v47, %v848_v45  ;;  %v849_v53 = vshrl.u32 %v2388_v6, %v848_v45  ;;  %v165_v45 = vrng }
 0x128   :  { %v791_v37 = vadd.s32 536870912, %v790_v22  ;;  %vm865_vm7 = vcmp.lt.s32.totalorder %v846_v52, 1  ;;  %v1850_v16 = vmul.f32 6.2831855, %v1229_v7  ;;  %v706_v51 = vor.u32 4788187, %v705_v61 }
 0x129   :  { %v864_v58 = vor.u32 %v863_v44, %v862_v26  ;;  %vm868_vm8 = vcmp.lt.s32.totalorder %v846_v52, 4  ;;  %v873_v39 = vsel %vm865_vm7, %v852_v35, %v855_v50  ;;  %vm867_vm11 = vcmp.lt.s32.totalorder %v846_v52, 3 }
 0x12a   :  { %v1853_v60 = vshrl.u32 %v791_v37, 30  ;;  %v870_v11 = vsel %vm868_vm8, %v858_v19, 2102212464  ;;  %v874_v54 = vsel %vm868_vm8, %v861_v57, 920167782  ;;  %vm526_vm13 = vcmp.lt.s32.totalorder %v1529_v2, 0 }
 0x12b   :  { %vm866_vm14 = vcmp.lt.s32.totalorder %v846_v52, 2  ;;  %v875_v30 = vsel %vm867_vm11, %v858_v19, %v874_v54  ;;  %v877_v27 = vsel %vm865_vm7, %v855_v50, %v858_v19  ;;  %v878_v1 = vsel %vm868_vm8, %v864_v58, 1326507024 }
 0x12c   :  { %v702_v7 = vor.u32 %v701_v36, %v700_v43  ;;  %v793_v42 = vshll.u32 %v1853_v60, 30  ;;  %v869_v44 = vsel %vm865_vm7, %v849_v53, %v852_v35  ;;  %v876_v13 = vsel %vm866_vm14, %v873_v39, %v875_v30 }
 0x12d   :  { %v871_v37 = vsel %vm867_vm11, %v855_v50, %v870_v11  ;;  %v879_v59 = vsel %vm867_vm11, %v861_v57, %v878_v1  ;;  %v1861_v12 = vmul.u32.u64.low %v1829_v62, %v876_v13  ;;  %v1862_v61 = vmul.u32.u64.high %v1829_v62, %v876_v13, %v1861_v12 }
 0x12e   :  { %v2392_v56 = vsel %vm1735_vm12, 0, %v1755_v4  ;;  %v1871_v17 = vsub.s32 %v790_v22, %v793_v42  ;;  %v880_v25 = vsel %vm866_vm14, %v877_v27, %v879_v59  ;;  %v197_v53 = vshrl.u32 %v165_v45, 9 }
 0x12f   :  { %v1869_v34 = vand.u32 3, %v2392_v56  ;;  %v406_v35 = vsel %vm1707_vm9, %v1473_v20, %v1819_v24  ;;  %v2393_v50 = vand.u32 2147483647, %v1529_v2  ;;  %v707_v43 = vand.u32 2147483647, %v706_v51 }
 0x130   :  { %v1885_v4 = vmul.u32.u64.low %v1829_v62, %v880_v25  ;;  %v1886_v19 = vmul.u32.u64.high %v1829_v62, %v880_v25, %v1885_v4  ;;  %v2396_v22 = vxor.u32 2147483648, %v1780_v49  ;;  %v610_v48 = vsub.s32 4, %v1696_v5 }
 0x131   :  { %vm1880_vm15 = vcmp.le.f32.partialorder %v2393_v50, 0.7853982  ;;  %vm629_vm9 = vcmp.lt.s32.totalorder %v1572_v55, 0  ;;  %v796_v24 = vsub.s32 0, %v1871_v17  ;;  %v872_v57 = vsel %vm866_vm14, %v869_v44, %v871_v37 }
 0x132   :  { %v506_v36 = vsel %vm423_vm10, %v2396_v22, %v1780_v49  ;;  %v608_v26 = vxor.u32 2147483648, %v1844_v29  ;;  %v709_v51 = vcvt.s32.f32 %v702_v7  ;;  %v891_v58 = vadd.s32 1, %v1862_v61 }
 0x133   :  { %v939_v39 = vand.u32 2139095040, %v1850_v16  ;;  %1336 = vcosq.f32 %v406_v35  ;;  %v1248_v11 = vmin.u32 %v796_v24, %v1871_v17  ;;  %v2367_v49 = vand.u32 2147483647, %v1850_v16 }
 0x134   :  { %v205_v54 = vor.u32 1065353216, %v197_v53  ;;  %v2397_v30 = vand.u32 2147483647, %v1572_v55  ;;  %v710_v52 = vmul.f32 %v709_v51, %v707_v43  ;;  %v888_v1 = vmul.u32 %v1829_v62, %v872_v57 }
 0x135   :  { %vm890_vm0 = vc.u32 %v1886_v19, %v1861_v12  ;;  %v940_v45 = vshrl.u32 %v939_v39, 23  ;;  %v509_v7 = vsel %vm1735_vm12, %v1475_v23, %v506_v36  ;;  %v611_v42 = vsel %vm526_vm13, %v610_v48, %v1696_v5 }
 0x136   :  { %vm1904_vm10 = vcmp.le.f32.partialorder %v2397_v30, 0.7853982  ;;  %v798_v44 = vclz %v1248_v11  ;;  %v892_v13 = vsel %vm890_vm0, %v891_v58, %v1862_v61  ;;  %v609_v37 = vsel %vm526_vm13, %v608_v26, %v1844_v29 }
 0x137   :  { %v713_v62 = vsub.s32 4, %v1772_v14  ;;  %v893_v59 = vadd.s32 %v892_v13, %v888_v1  ;;  %v1255_v56 = vadd.s32 4294967169, %v940_v45  ;;  %1338 = vsinq.f32 %v406_v35 }
 0x138   :  { %v1249_v25 = vadd.s32 4294967294, %v798_v44  ;;  %v943_v9 = vand.u32 8388607, %v2367_v49  ;;  %v1230_v53 = vadd.f32 -1.0, %v205_v54  ;;  %1340 = vcosq.f32 %v509_v7 }
 0x139   :  { %v711_v50 = vxor.u32 2147483648, %v710_v52  ;;  %v894_v5 = vadd.s32 536870912, %v893_v59  ;;  %v946_v43 = vadd.s32 1, %v1255_v56  ;;  %1342 = vsinq.f32 %v509_v7 }
 0x13a   :  { %v612_v61 = vsel %vm1880_vm15, %v1529_v2, %v609_v37  ;;  %v613_v29 = vsel %vm1880_vm15, 0, %v611_v42  ;;  %vm1250_vm12 = vcmp.lt.s32.totalorder %v1249_v25, 0  ;;  %v1932_v35 = vsel %vm629_vm9, %v713_v62, %v1772_v14 }
 0x13b   :  { %v801_v4 = vsel %vm1250_vm12, 0, %v1249_v25  ;;  %v1934_v22 = vshrl.u32 %v894_v5, 30  ;;  %vm947_vm1 = vcmp.gt.s32.totalorder %v946_v43, 0  ;;  %v944_v48 = vor.u32 8388608, %v943_v9 }
 0x13c   :  { %v806_v36 = vsub.s32 4294967266, %v801_v4  ;;  %v948_v24 = vsel %vm947_vm1, %v946_v43, 0  ;;  %v1936_v57 = vmul.f32 6.2831855, %v1230_v53  ;;  %1344 = vcosq.f32 %v612_v61 }
 0x13d   :  { %v712_v15 = vsel %vm629_vm9, %v711_v50, %v710_v52  ;;  %v896_v26 = vshll.u32 %v1934_v22, 30  ;;  %v950_v51 = vand.u32 31, %v948_v24  ;;  %v1941_v58 = vpop.eup %1336  ;;  %1346 = vsinq.f32 %v612_v61 }
 0x13e   :  { %v1943_v14 = vand.u32 3, %v613_v29  ;;  %v802_v11 = vsub.s32 32, %v801_v4  ;;  %v786_v54 = vadd.s32 %v1823_v10, %v1812_v40  ;;  %v807_v30 = vadd.s32 127, %v806_v36 }
 0x13f   :  { %v1950_v1 = vsub.s32 %v893_v59, %v896_v26  ;;  %v951_v52 = vsub.s32 32, %v950_v51  ;;  %v1955_v45 = vsel %vm1904_vm10, %v1572_v55, %v712_v15  ;;  %v1958_v42 = vshll.u32 %v944_v48, 8 }
 0x140   :  { %v1042_v44 = vand.u32 2139095040, %v1936_v57  ;;  %v803_v13 = vshll.u32 %v1871_v17, %v801_v4  ;;  %v1963_v40 = vshrl.u32 %v948_v24, 5  ;;  %v804_v59 = vshrl.u32 %v786_v54, %v802_v11 }
 0x141   :  { %v899_v37 = vsub.s32 0, %v1950_v1  ;;  %v954_v10 = vshrl.u32 %v2382_v38, %v951_v52  ;;  %v1966_v62 = vpop.eup %1338  ;;  %v953_v56 = vshll.u32 %v2388_v6, %v950_v51  ;;  %v956_v25 = vshll.u32 %v2382_v38, %v950_v51 }
 0x142   :  { %v957_v9 = vshrl.u32 %v2383_v41, %v951_v52  ;;  %v1971_v53 = vpop.eup %1340  ;;  %v808_v50 = vshll.u32 %v807_v30, 23  ;;  %v959_v5 = vshll.u32 %v2383_v41, %v950_v51  ;;  %v960_v43 = vshrl.u32 %v2384_v46, %v951_v52 }
 0x143   :  { %v1252_v17 = vmin.u32 %v899_v37, %v1950_v1  ;;  %v1976_v61 = vpop.eup %1342  ;;  %v955_v29 = vor.u32 %v954_v10, %v953_v56  ;;  %v962_v36 = vshll.u32 %v2384_v46, %v950_v51  ;;  %v963_v48 = vshrl.u32 %v2391_v63, %v951_v52 }
 0x144   :  { %v958_v4 = vor.u32 %v957_v9, %v956_v25  ;;  %v961_v15 = vor.u32 %v960_v43, %v959_v5  ;;  %v966_v26 = vshrl.u32 %v2385_v47, %v951_v52  ;;  %v1043_v11 = vshrl.u32 %v1042_v44, 23 }
 0x145   :  { %v901_v24 = vclz %v1252_v17  ;;  %v805_v54 = vor.u32 %v804_v59, %v803_v13  ;;  %v964_v30 = vor.u32 %v963_v48, %v962_v36  ;;  %v965_v37 = vshll.u32 %v2391_v63, %v950_v51 }
 0x146   :  { %v1039_v49 = vand.u32 2147483647, %v1936_v57  ;;  %v1983_v7 = vpop.eup %1344  ;;  %v809_v39 = vor.u32 4788187, %v808_v50  ;;  %vm968_vm2 = vcmp.lt.s32.totalorder %v1963_v40, 1  ;;  %vm971_vm3 = vcmp.lt.s32.totalorder %v1963_v40, 4 }
 0x147   :  { %v1253_v10 = vadd.s32 4294967294, %v901_v24  ;;  %v1987_v56 = vpop.eup %1346  ;;  %v967_v25 = vor.u32 %v966_v26, %v965_v37  ;;  %vm970_vm4 = vcmp.lt.s32.totalorder %v1963_v40, 3  ;;  %v976_v44 = vsel %vm968_vm2, %v955_v29, %v958_v4 }
 0x148   :  { %v977_v51 = vsel %vm971_vm3, %v964_v30, 920167782  ;;  %vm732_vm6 = vcmp.lt.s32.totalorder %v1675_v0, 0  ;;  %vm969_vm7 = vcmp.lt.s32.totalorder %v1963_v40, 2  ;;  %v1259_v59 = vadd.s32 4294967169, %v1043_v11 }
 0x149   :  { %vm1254_vm5 = vcmp.lt.s32.totalorder %v1253_v10, 0  ;;  %v978_v13 = vsel %vm970_vm4, %v961_v15, %v977_v51  ;;  %v952_v50 = vshrl.u32 %v2388_v6, %v951_v52  ;;  %v973_v17 = vsel %vm971_vm3, %v961_v15, 2102212464 }
 0x14a   :  { %v904_v9 = vsel %vm1254_vm5, 0, %v1253_v10  ;;  %v979_v5 = vsel %vm969_vm7, %v976_v44, %v978_v13  ;;  %v810_v43 = vand.u32 2147483647, %v809_v39  ;;  %v812_v36 = vcvt.s32.f32 %v805_v54 }
 0x14b   :  { %v909_v48 = vsub.s32 4294967266, %v904_v9  ;;  %v980_v24 = vsel %vm968_vm2, %v958_v4, %v961_v15  ;;  %v905_v26 = vsub.s32 32, %v904_v9  ;;  %v981_v37 = vsel %vm971_vm3, %v967_v25, 1326507024 }
 0x14c   :  { %v2008_v11 = vmul.u32.u64.low %v1958_v42, %v979_v5  ;;  %v2009_v10 = vmul.u32.u64.high %v1958_v42, %v979_v5, %v2008_v11  ;;  %v972_v51 = vsel %vm968_vm2, %v952_v50, %v955_v29  ;;  %v974_v39 = vsel %vm970_vm4, %v958_v4, %v973_v17 }
 0x14d   :  { %v910_v52 = vadd.s32 127, %v909_v48  ;;  %v982_v54 = vsel %vm970_vm4, %v964_v30, %v981_v37  ;;  %v889_v15 = vadd.s32 %v1861_v12, %v1886_v19  ;;  %v2024_v44 = vand.u32 8388607, %v1039_v49 }
 0x14e   :  { %v983_v25 = vsel %vm969_vm7, %v980_v24, %v982_v54  ;;  %v1049_v13 = vadd.s32 1, %v1259_v59  ;;  %v813_v5 = vmul.f32 %v812_v36, %v810_v43  ;;  %v975_v30 = vsel %vm969_vm7, %v972_v51, %v974_v39 }
 0x14f   :  { %v911_v48 = vshll.u32 %v910_v52, 23  ;;  %v2027_v29 = vmul.u32.u64.low %v1958_v42, %v983_v25  ;;  %v2028_v50 = vmul.u32.u64.high %v1958_v42, %v983_v25, %v2027_v29  ;;  %v907_v4 = vshrl.u32 %v889_v15, %v905_v26 }
 0x150   :  { %v994_v12 = vadd.s32 1, %v2009_v10  ;;  %vm1050_vm8 = vcmp.gt.s32.totalorder %v1049_v13, 0  ;;  %1348 = vcosq.f32 %v1955_v45  ;;  %v2400_v19 = vsel %vm1904_vm10, 0, %v1932_v35 }
 0x151   :  { %v2038_v59 = vand.u32 3, %v2400_v19  ;;  %v2401_v17 = vand.u32 2147483647, %v1675_v0  ;;  %vm835_vm13 = vcmp.lt.s32.totalorder %v1698_v3, 0  ;;  %v912_v40 = vor.u32 4788187, %v911_v48 }
 0x152   :  { %v1051_v36 = vsel %vm1050_vm8, %v1049_v13, 0  ;;  %1350 = vsinq.f32 %v1955_v45  ;;  %v2404_v24 = vsub.s32 4, %v1853_v60  ;;  %v906_v35 = vshll.u32 %v1950_v1, %v904_v9 }
 0x153   :  { %vm2042_vm11 = vcmp.le.f32.partialorder %v2401_v17, 0.7853982  ;;  %v1053_v26 = vand.u32 31, %v1051_v36  ;;  %v919_v37 = vsub.s32 4, %v1934_v22  ;;  %v991_v52 = vmul.u32 %v1958_v42, %v975_v30 }
 0x154   :  { %v2053_v27 = vsel %vm732_vm6, %v2404_v24, %v1853_v60  ;;  %vm993_vm14 = vc.u32 %v2028_v50, %v2008_v11  ;;  %v1047_v51 = vor.u32 8388608, %v2024_v44  ;;  %v814_v45 = vxor.u32 2147483648, %v813_v5 }
 0x155   :  { %v908_v39 = vor.u32 %v907_v4, %v906_v35  ;;  %v995_v54 = vsel %vm993_vm14, %v994_v12, %v2009_v10  ;;  %v1054_v15 = vsub.s32 32, %v1053_v26  ;;  %v913_v25 = vand.u32 2147483647, %v912_v40 }
 0x156   :  { %v996_v60 = vadd.s32 %v995_v54, %v991_v52  ;;  %v1052_v13 = vshrl.u32 %v1051_v36, 5  ;;  %v1056_v1 = vshll.u32 %v2388_v6, %v1053_v26  ;;  %v1059_v48 = vshll.u32 %v2382_v38, %v1053_v26 }
 0x157   :  { %v1057_v9 = vshrl.u32 %v2382_v38, %v1054_v15  ;;  %v1060_v42 = vshrl.u32 %v2383_v41, %v1054_v15  ;;  %v1063_v29 = vshrl.u32 %v2384_v46, %v1054_v15  ;;  %v1062_v44 = vshll.u32 %v2383_v41, %v1053_v26 }
 0x158   :  { %v997_v30 = vadd.s32 536870912, %v996_v60  ;;  %v1065_v4 = vshll.u32 %v2384_v46, %v1053_v26  ;;  %v1066_v10 = vshrl.u32 %v2391_v63, %v1054_v15  ;;  %v915_v12 = vcvt.s32.f32 %v908_v39 }
 0x159   :  { %v1058_v19 = vor.u32 %v1057_v9, %v1056_v1  ;;  %v1061_v17 = vor.u32 %v1060_v42, %v1059_v48  ;;  %v1069_v40 = vshrl.u32 %v2385_v47, %v1054_v15  ;;  %v2405_v36 = vand.u32 2147483647, %v1698_v3 }
 0x15a   :  { %v2077_v24 = vshrl.u32 %v997_v30, 30  ;;  %v1064_v35 = vor.u32 %v1063_v29, %v1062_v44  ;;  %v1067_v52 = vor.u32 %v1066_v10, %v1065_v4  ;;  %v1068_v41 = vshll.u32 %v2391_v63, %v1053_v26  ;;  %v2088_v1 = vpop.eup %1348 }
 0x15b   :  { %vm2073_vm15 = vcmp.le.f32.partialorder %v2405_v36, 0.7853982  ;;  %v819_v46 = vsel %vm2042_vm11, 0, %v2053_v27  ;;  %v916_v39 = vmul.f32 %v915_v12, %v913_v25  ;;  %v920_v47 = vsel %vm835_vm13, %v919_v37, %v1934_v22 }
 0x15c   :  { %v255_v54 = vmul.f32 %v1625_v33, %v1576_v18  ;;  %v815_v9 = vsel %vm732_vm6, %v814_v45, %v813_v5  ;;  %v999_v48 = vshll.u32 %v2077_v24, 30  ;;  %v1070_v63 = vor.u32 %v1069_v40, %v1068_v41  ;;  %v2093_v26 = vpop.eup %1350 }
 0x15d   :  { %vm1071_vm9 = vcmp.lt.s32.totalorder %v1052_v13, 1  ;;  %v1055_v27 = vshrl.u32 %v2388_v6, %v1054_v15  ;;  %vm1074_vm10 = vcmp.lt.s32.totalorder %v1052_v13, 4  ;;  %v1087_v42 = vshll.u32 %v1047_v51, 8 }
 0x15e   :  { %v1079_v25 = vsel %vm1071_vm9, %v1058_v19, %v1061_v17  ;;  %v2096_v22 = vsub.s32 %v996_v60, %v999_v48  ;;  %vm1073_vm0 = vcmp.lt.s32.totalorder %v1052_v13, 3  ;;  %v1076_v33 = vsel %vm1074_vm10, %v1064_v35, 2102212464 }
 0x15f   :  { %v1080_v37 = vsel %vm1074_vm10, %v1067_v52, 920167782  ;;  %v917_v29 = vxor.u32 2147483648, %v916_v39  ;;  %vm1072_vm12 = vcmp.lt.s32.totalorder %v1052_v13, 2  ;;  %v1083_v5 = vsel %vm1071_vm9, %v1061_v17, %v1064_v35 }
 0x160   :  { %v1081_v30 = vsel %vm1073_vm0, %v1064_v35, %v1080_v37  ;;  %v1002_v45 = vsub.s32 0, %v2096_v22  ;;  %v1075_v44 = vsel %vm1071_vm9, %v1055_v27, %v1058_v19  ;;  %v1084_v10 = vsel %vm1074_vm10, %v1070_v63, 1326507024 }
 0x161   :  { %v1082_v4 = vsel %vm1072_vm12, %v1079_v25, %v1081_v30  ;;  %v1077_v12 = vsel %vm1073_vm0, %v1061_v17, %v1076_v33  ;;  %v1085_v6 = vsel %vm1073_vm0, %v1067_v52, %v1084_v10  ;;  %v818_v51 = vsel %vm2042_vm11, %v1675_v0, %v815_v9 }
 0x162   :  { %v2100_v15 = vmul.u32.u64.low %v1087_v42, %v1082_v4  ;;  %v2101_v40 = vmul.u32.u64.high %v1087_v42, %v1082_v4, %v2100_v15  ;;  %v2107_v60 = vand.u32 3, %v819_v46  ;;  %v1256_v36 = vmin.u32 %v1002_v45, %v2096_v22 }
 0x163   :  { %v1086_v35 = vsel %vm1072_vm12, %v1083_v5, %v1085_v6  ;;  %v922_v19 = vsel %vm2073_vm15, 0, %v920_v47  ;;  %vm938_vm1 = vcmp.lt.s32.totalorder %v1850_v16, 0  ;;  %v2408_v41 = vand.u32 2147483647, %v1850_v16  ;;  %v2411_v6 = vld [vmem:[#allocation12_spill] sm:$0xff] }
 0x164   :  { %v2114_v17 = vmul.u32.u64.low %v1087_v42, %v1086_v35  ;;  %v2115_v52 = vmul.u32.u64.high %v1087_v42, %v1086_v35, %v2114_v17  ;;  %v1004_v43 = vclz %v1256_v36  ;;  %v1078_v46 = vsel %vm1072_vm12, %v1075_v44, %v1077_v12 }
 0x165   :  { %vm2119_vm2 = vcmp.le.f32.partialorder %v2408_v41, 0.7853982  ;;  %vm256_vm3 = vcmp.eq.f32.partialorder %v1576_v18, inf  ;;  %vm258_vm4 = vcmp.eq.f32.partialorder %v1576_v18, 0.0  ;;  %1352 = vcosq.f32 %v818_v51 }
 0x166   :  { %v918_v47 = vsel %vm835_vm13, %v917_v29, %v916_v39  ;;  %v1097_v9 = vadd.s32 1, %v2101_v40  ;;  %v257_v63 = vsel %vm256_vm3, %v1576_v18, %v255_v54  ;;  %1354 = vsinq.f32 %v818_v51 }
 0x167   :  { %v2130_v27 = vand.u32 3, %v922_v19  ;;  %v1257_v25 = vadd.s32 4294967294, %v1004_v43  ;;  %v1022_v33 = vsub.s32 4, %v2077_v24  ;;  %v1094_v13 = vmul.u32 %v1087_v42, %v1078_v46  ;;  %v2412_v43 = vld [vmem:[#allocation9_spill] sm:$0xff]  ;;  %v2413_v46 = vld [vmem:[#allocation14_spill] sm:$0xff] }
 0x168   :  { %vm1096_vm6 = vc.u32 %v2115_v52, %v2100_v15  ;;  %v259_v37 = vand.u32 2147483648, %v1576_v18  ;;  %v262_v30 = vmul.f32 %v1628_v32, %v1578_v21  ;;  %v921_v39 = vsel %vm2073_vm15, %v1698_v3, %v918_v47 }
 0x169   :  { %vm1258_vm5 = vcmp.lt.s32.totalorder %v1257_v25, 0  ;;  %v1098_v54 = vsel %vm1096_vm6, %v1097_v9, %v2101_v40  ;;  %vm263_vm7 = vcmp.eq.f32.partialorder %v1578_v21, inf  ;;  %v992_v42 = vadd.s32 %v2008_v11, %v2028_v50 }
 0x16a   :  { %v1007_v29 = vsel %vm1258_vm5, 0, %v1257_v25  ;;  %v1099_v5 = vadd.s32 %v1098_v54, %v1094_v13  ;;  %v2147_v45 = vsel %vm258_vm4, %v259_v37, %v257_v63  ;;  %v2152_v38 = vsel %vm938_vm1, %v1022_v33, %v2077_v24 }
 0x16b   :  { %v1008_v44 = vsub.s32 32, %v1007_v29  ;;  %v1012_v32 = vsub.s32 4294967266, %v1007_v29  ;;  %v269_v4 = vmul.f32 %v1633_v8, %v1583_v28  ;;  %1356 = vcosq.f32 %v921_v39 }
 0x16c   :  { %v1100_v10 = vadd.s32 536870912, %v1099_v5  ;;  %v264_v11 = vsel %vm263_vm7, %v1578_v21, %v262_v30  ;;  %vm265_vm8 = vcmp.eq.f32.partialorder %v1578_v21, 0.0  ;;  %v1009_v18 = vshll.u32 %v2096_v22, %v1007_v29 }
 0x16d   :  { %v1010_v50 = vshrl.u32 %v992_v42, %v1008_v44  ;;  %v1013_v12 = vadd.s32 127, %v1012_v32  ;;  %v276_v40 = vmul.f32 %v2411_v6, %v1586_v31  ;;  %1358 = vsinq.f32 %v921_v39  ;;  %v2414_v32 = vld [vmem:[#allocation10_spill] sm:$0xff] }
 0x16e   :  { %v1025_v24 = vsel %vm2119_vm2, 0, %v2152_v38  ;;  %v2164_v51 = vshrl.u32 %v1100_v10, 30  ;;  %vm270_vm11 = vcmp.eq.f32.partialorder %v1583_v28, inf  ;;  %v266_v35 = vand.u32 2147483648, %v1578_v21 }
 0x16f   :  { %v1011_v8 = vor.u32 %v1010_v50, %v1009_v18  ;;  %v1014_v36 = vshll.u32 %v1013_v12, 23  ;;  %v271_v22 = vsel %vm270_vm11, %v1583_v28, %v269_v4  ;;  %v2169_v19 = vpop.eup %1352  ;;  %v273_v41 = vand.u32 2147483648, %v1583_v28  ;;  %v2415_v4 = vld [vmem:[#allocation15_spill] sm:$0xff] }
 0x170   :  { %v1102_v17 = vshll.u32 %v2164_v51, 30  ;;  %vm277_vm13 = vcmp.eq.f32.partialorder %v1586_v31, inf  ;;  %v283_v47 = vmul.f32 %v2413_v46, %v2412_v43  ;;  %v2176_v9 = vpop.eup %1354  ;;  %v2180_v25 = vsel %vm265_vm8, %v266_v35, %v264_v11 }
 0x171   :  { %v1015_v63 = vor.u32 4788187, %v1014_v36  ;;  %vm272_vm14 = vcmp.eq.f32.partialorder %v1583_v28, 0.0  ;;  %v278_v33 = vsel %vm277_vm13, %v1586_v31, %v276_v40  ;;  %vm279_vm15 = vcmp.eq.f32.partialorder %v1586_v31, 0.0 }
 0x172   :  { %v2184_v13 = vsub.s32 %v1099_v5, %v1102_v17  ;;  %v2186_v37 = vsel %vm272_vm14, %v273_v41, %v271_v22  ;;  %v280_v30 = vand.u32 2147483648, %v1586_v31  ;;  %vm410_vm9 = vweird.f32 %v1473_v20 }
 0x173   :  { %v1016_v39 = vand.u32 2147483647, %v1015_v63  ;;  %v1018_v54 = vcvt.s32.f32 %v1011_v8  ;;  %v1095_v21 = vadd.s32 %v2100_v15, %v2115_v52  ;;  %vm284_vm10 = vcmp.eq.f32.partialorder %v2412_v43, inf  ;;  %v2416_v52 = vld [vmem:[#allocation16_spill] sm:$0xff] }
 0x174   :  { %v1105_v28 = vsub.s32 0, %v2184_v13  ;;  %v2195_v42 = vsel %vm279_vm15, %v280_v30, %v278_v33  ;;  %v285_v29 = vsel %vm284_vm10, %v2412_v43, %v283_v47  ;;  %v414_v5 = vxor.u32 2147483648, %v1966_v62 }
 0x175   :  { %v1019_v44 = vmul.f32 %v1018_v54, %v1016_v39  ;;  %v287_v31 = vand.u32 2147483648, %v2412_v43  ;;  %v290_v10 = vmul.f32 %v2415_v4, %v2414_v32  ;;  %v417_v11 = vxor.u32 2147483648, %v1941_v58  ;;  %v2203_v18 = vpop.eup %1356 }
 0x176   :  { %v1260_v15 = vmin.u32 %v1105_v28, %v2184_v13  ;;  %vm286_vm0 = vcmp.eq.f32.partialorder %v2412_v43, 0.0  ;;  %vm413_vm12 = vcmp.eq.s32.totalorder %v2416_v52, 0  ;;  %vm416_vm3 = vcmp.eq.s32.totalorder %v2416_v52, 2 }
 0x177   :  { %v1020_v50 = vxor.u32 2147483648, %v1019_v44  ;;  %v2209_v12 = vsel %vm286_vm0, %v287_v31, %v285_v29  ;;  %v415_v6 = vsel %vm413_vm12, %v1941_v58, %v414_v5  ;;  %v418_v40 = vsel %vm416_vm3, %v417_v11, %v1966_v62  ;;  %v2213_v8 = vpop.eup %1358 }
 0x178   :  { %vm513_vm4 = vweird.f32 %v1475_v23  ;;  %v1107_v36 = vclz %v1260_v15  ;;  %vm291_vm6 = vcmp.eq.f32.partialorder %v2414_v32, inf  ;;  %vm412_vm5 = vcmp.lt.s32.totalorder %v2416_v52, 2 }
 0x179   :  { %v517_v35 = vxor.u32 2147483648, %v1976_v61  ;;  %v1021_v22 = vsel %vm938_vm1, %v1020_v50, %v1019_v44  ;;  %v2222_v17 = vsel %vm291_vm6, %v2414_v32, %v290_v10  ;;  %v419_v58 = vsel %vm412_vm5, %v415_v6, %v418_v40 }
 0x17a   :  { %v520_v62 = vxor.u32 2147483648, %v1971_v53  ;;  %v1024_v41 = vsel %vm2119_vm2, %v1850_v16, %v1021_v22  ;;  %v1261_v43 = vadd.s32 4294967294, %v1107_v36  ;;  %vm516_vm7 = vcmp.eq.s32.totalorder %v1869_v34, 0 }
 0x17b   :  { %vm519_vm8 = vcmp.eq.s32.totalorder %v1869_v34, 2  ;;  %v294_v46 = vand.u32 2147483648, %v2414_v32  ;;  %v518_v47 = vsel %vm516_vm7, %v1971_v53, %v517_v35  ;;  %v620_v33 = vxor.u32 2147483648, %v1987_v56 }
 0x17c   :  { %v521_v63 = vsel %vm519_vm8, %v520_v62, %v1976_v61  ;;  %1360 = vcosq.f32 %v1024_v41  ;;  %vm1262_vm1 = vcmp.lt.s32.totalorder %v1261_v43, 0  ;;  %v420_v30 = vsel %vm410_vm9, nan, %v419_v58 }
 0x17d   :  { %vm515_vm11 = vcmp.lt.s32.totalorder %v1869_v34, 2  ;;  %1362 = vsinq.f32 %v1024_v41  ;;  %v1110_v39 = vsel %vm1262_vm1, 0, %v1261_v43  ;;  %vm619_vm13 = vcmp.eq.s32.totalorder %v1943_v14, 0 }
 0x17e   :  { %v623_v54 = vxor.u32 2147483648, %v1983_v7  ;;  %vm616_vm14 = vweird.f32 %v1529_v2  ;;  %v1111_v53 = vsub.s32 32, %v1110_v39  ;;  %v1115_v28 = vsub.s32 4294967266, %v1110_v39 }
 0x17f   :  { %v522_v61 = vsel %vm515_vm11, %v518_v47, %v521_v63  ;;  %vm622_vm15 = vcmp.eq.s32.totalorder %v1943_v14, 2  ;;  %vm719_vm10 = vweird.f32 %v1572_v55  ;;  %vm822_vm0 = vweird.f32 %v1675_v0 }
 0x180   :  { %v1112_v20 = vshll.u32 %v2184_v13, %v1110_v39  ;;  %v621_v34 = vsel %vm619_vm13, %v1983_v7, %v620_v33  ;;  %v624_v29 = vsel %vm622_vm15, %v623_v54, %v1987_v56  ;;  %v723_v5 = vxor.u32 2147483648, %v2093_v26 }
 0x181   :  { %v1113_v44 = vshrl.u32 %v1095_v21, %v1111_v53  ;;  %v1116_v31 = vadd.s32 127, %v1115_v28  ;;  %vm722_vm9 = vcmp.eq.s32.totalorder %v2038_v59, 0  ;;  %v726_v4 = vxor.u32 2147483648, %v2088_v1 }
 0x182   :  { %vm925_vm12 = vweird.f32 %v1698_v3  ;;  %v523_v10 = vsel %vm513_vm4, nan, %v522_v61  ;;  %vm618_vm3 = vcmp.lt.s32.totalorder %v1943_v14, 2  ;;  %v724_v13 = vsel %vm722_vm9, %v2088_v1, %v723_v5 }
 0x183   :  { %vm725_vm6 = vcmp.eq.s32.totalorder %v2038_v59, 2  ;;  %v1114_v7 = vor.u32 %v1113_v44, %v1112_v20  ;;  %v1117_v56 = vshll.u32 %v1116_v31, 23  ;;  %v826_v11 = vxor.u32 2147483648, %v2176_v9  ;;  %v2420_v20 = vld [vmem:[#allocation11_spill] sm:$0xff] }
 0x184   :  { %v727_v21 = vsel %vm725_vm6, %v726_v4, %v2093_v26  ;;  %vm1041_vm5 = vcmp.lt.s32.totalorder %v1936_v57, 0  ;;  %v625_v15 = vsel %vm618_vm3, %v621_v34, %v624_v29  ;;  %vm721_vm7 = vcmp.lt.s32.totalorder %v2038_v59, 2  ;;  %v2421_v34 = vld [vmem:[#allocation17_spill] sm:$0xff] }
 0x185   :  { %vm825_vm8 = vcmp.eq.s32.totalorder %v2107_v60, 0  ;;  %v829_v23 = vxor.u32 2147483648, %v2169_v19  ;;  %vm2263_vm4 = vcmp.le.f32.partialorder %v1039_v49, 0.7853982  ;;  %v1118_v1 = vor.u32 4788187, %v1117_v56 }
 0x186   :  { %vm824_vm1 = vcmp.lt.s32.totalorder %v2107_v60, 2  ;;  %v827_v26 = vsel %vm825_vm8, %v2169_v19, %v826_v11  ;;  %vm828_vm11 = vcmp.eq.s32.totalorder %v2107_v60, 2  ;;  %v1121_v52 = vcvt.s32.f32 %v1114_v7  ;;  %v1361_v40 = vpop.eup %1360 }
 0x187   :  { %v728_v50 = vsel %vm721_vm7, %v724_v13, %v727_v21  ;;  %v830_v59 = vsel %vm828_vm11, %v829_v23, %v2176_v9  ;;  %v929_v6 = vxor.u32 2147483648, %v2213_v8  ;;  %v1119_v36 = vand.u32 2147483647, %v1118_v1  ;;  %v1363_v22 = vpop.eup %1362  ;;  %v2422_v1 = vld [vmem:[#allocation13_spill] sm:$0xff] }
 0x188   :  { %v831_v35 = vsel %vm824_vm1, %v827_v26, %v830_v59  ;;  %vm928_vm13 = vcmp.eq.s32.totalorder %v2130_v27, 0  ;;  %v932_v49 = vxor.u32 2147483648, %v2203_v18  ;;  %v626_v58 = vsel %vm616_vm14, nan, %v625_v15  ;;  %v2423_v26 = vld [vmem:[#allocation18_spill] sm:$0xff] }
 0x189   :  { %vm927_vm15 = vcmp.lt.s32.totalorder %v2130_v27, 2  ;;  %v930_v60 = vsel %vm928_vm13, %v2203_v18, %v929_v6  ;;  %vm931_vm9 = vcmp.eq.s32.totalorder %v2130_v27, 2  ;;  %v1122_v19 = vmul.f32 %v1121_v52, %v1119_v36 }
 0x18a   :  { %v729_v9 = vsel %vm719_vm10, nan, %v728_v50  ;;  %v832_v62 = vsel %vm822_vm0, nan, %v831_v35  ;;  %v933_v41 = vsel %vm931_vm9, %v932_v49, %v2213_v8  ;;  %vm293_vm3 = vcmp.eq.f32.partialorder %v2414_v32, 0.0  ;;  %v1150_v50 = vld [vmem:[#allocation3] sm:$0xff] }
 0x18b   :  { %v934_v43 = vsel %vm927_vm15, %v930_v60, %v933_v41  ;;  %v1142_v2 = vmul.f32 %v420_v30, %v2147_v45  ;;  %v1143_v47 = vmul.f32 %v523_v10, %v2180_v25  ;;  %v1123_v63 = vxor.u32 2147483648, %v1122_v19 }
 0x18c   :  { %v295_v27 = vsel %vm293_vm3, %v294_v46, %v2222_v17  ;;  %v935_v55 = vsel %vm925_vm12, nan, %v934_v43  ;;  %v1144_v0 = vmul.f32 %v626_v58, %v2186_v37  ;;  %v1125_v18 = vsub.s32 4, %v2164_v51 }
 0x18d   :  { %v1145_v8 = vmul.f32 %v729_v9, %v2195_v42  ;;  %v1146_v33 = vmul.f32 %v832_v62, %v2209_v12  ;;  %v1147_v39 = vmul.f32 %v935_v55, %v295_v27  ;;  %v1029_v45 = vand.u32 3, %v1025_v24 }
 0x18e   :  { %v1124_v25 = vsel %vm1041_vm5, %v1123_v63, %v1122_v19  ;;  %v1032_v32 = vxor.u32 2147483648, %v1363_v22  ;;  %v1035_v3 = vxor.u32 2147483648, %v1361_v40  ;;  %v1152_v17 = vmul.f32 0.1, %v1142_v2 }
 0x18f   :  { %v1127_v37 = vsel %vm2263_vm4, %v1936_v57, %v1124_v25  ;;  %v1153_v46 = vmul.f32 0.1, %v1143_v47  ;;  %v1154_v42 = vmul.f32 0.1, %v1144_v0  ;;  %v1155_v12 = vmul.f32 0.1, %v1145_v8 }
 0x190   :  { %1364 = vcosq.f32 %v1127_v37  ;;  %v1156_v30 = vmul.f32 0.1, %v1146_v33  ;;  %v1157_v54 = vmul.f32 0.1, %v1147_v39  ;;  %v1126_v48 = vsel %vm1041_vm5, %v1125_v18, %v2164_v51  ;;  %v1151_v18 = vld [vmem:[#allocation3 + $0x8] sm:$0xff] }
 0x191   :  { %1366 = vsinq.f32 %v1127_v37  ;;  %vm1031_vm2 = vcmp.eq.s32.totalorder %v1029_v45, 0  ;;  %v1423_v38 = vmov 1983009808   ;;  %v2419_v53 = vlaneseq }
 0x192   :  { %v1171_v24 = vunpack.c.l.s4 %v1423_v38  ;;  %v1185_v61 = vcombine.low %v1156_v30, %v1157_v54  ;;  %v297_v29 = vmul.f32 %v2421_v34, %v2420_v20  ;;  %v1033_v5 = vsel %vm1031_vm2, %v1361_v40, %v1032_v32 }
 0x193   :  { %v1174_v28 = vshrl.u32 %v2419_v53, 7  ;;  %vm1034_vm14 = vcmp.eq.s32.totalorder %v1029_v45, 2  ;;  %v1168_v31 = vcombine.low %v1152_v17, %v1153_v46  ;;  %v1169_v4 = vcombine.low %v1154_v42, %v1155_v12 }
 0x194   :  { %v1036_v44 = vsel %vm1034_vm14, %v1035_v3, %v1363_v22  ;;  %v1172_v10 = vunpack.c.0.s8 %v1171_v24  ;;  %v1128_v13 = vsel %vm2263_vm4, 0, %v1126_v48  ;;  %vm1030_vm10 = vcmp.lt.s32.totalorder %v1029_v45, 2 }
 0x195   :  { %vm298_vm0 = vcmp.eq.f32.partialorder %v2420_v20, inf  ;;  %v1037_v7 = vsel %vm1030_vm10, %v1033_v5, %v1036_v44  ;;  %v1132_v56 = vand.u32 3, %v1128_v13  ;;  %vm1028_vm12 = vweird.f32 %v1850_v16 }
 0x196   :  { %v1175_v51 = vsub.s32 %v1172_v10, %v1174_v28  ;;  %v299_v21 = vsel %vm298_vm0, %v2420_v20, %v297_v29  ;;  %v301_v23 = vand.u32 2147483648, %v2420_v20  ;;  %v304_v52 = vmul.f32 %v2423_v26, %v2422_v1 }
 0x197   :  { %vm300_vm6 = vcmp.eq.f32.partialorder %v2420_v20, 0.0  ;;  %v1038_v59 = vsel %vm1028_vm12, nan, %v1037_v7  ;;  %vm1137_vm5 = vcmp.eq.s32.totalorder %v1132_v56, 2  ;;  %vm305_vm7 = vcmp.eq.f32.partialorder %v2422_v1, inf }
 0x198   :  { %v1176_v11 = vrot.slane %v1168_v31, %v1175_v51  ;;  %v1183_v15 = vrot.slane %v1169_v4, %v1175_v51  ;;  %v302_v35 = vsel %vm300_vm6, %v301_v23, %v299_v21  ;;  %vm1134_vm8 = vcmp.eq.s32.totalorder %v1132_v56, 0 }
 0x199   :  { %v306_v58 = vsel %vm305_vm7, %v2422_v1, %v304_v52  ;;  %v1148_v60 = vmul.f32 %v1038_v59, %v302_v35  ;;  %vm1133_vm4 = vcmp.lt.s32.totalorder %v1132_v56, 2  ;;  %v308_v9 = vand.u32 2147483648, %v2422_v1 }
 0x19a   :  { %v1365_v14 = vpop.eup %1364  ;;  %v1184_v6 = vcombine.low %v1176_v11, %v1183_v15  ;;  %vm1131_vm1 = vweird.f32 %v1936_v57  ;;  %vm307_vm11 = vcmp.eq.f32.partialorder %v2422_v1, 0.0  ;;  %v1193_v55 = vrot.slane %v1185_v61, %v1175_v51 }
 0x19b   :  { %v1367_v40 = vpop.eup %1366  ;;  %v1138_v36 = vxor.u32 2147483648, %v1365_v14  ;;  %v309_v43 = vsel %vm307_vm11, %v308_v9, %v306_v58  ;;  %v1158_v47 = vmul.f32 0.1, %v1148_v60 }
 0x19c   :  { %v1135_v49 = vxor.u32 2147483648, %v1367_v40  ;;  %v1204_v22 = vadd.f32 %v1184_v6, %v1150_v50 }
 0x19d   :  { %v1139_v16 = vsel %vm1137_vm5, %v1138_v36, %v1367_v40 }
 0x19e   :  { %v1136_v19 = vsel %vm1134_vm8, %v1365_v14, %v1135_v49  ;;  %1206 = vst [vmem:[#allocation6] sm:$0xff] %v1204_v22 }
 0x19f   :  { %v1140_v62 = vsel %vm1133_vm4, %v1136_v19, %v1139_v16 }
 0x1a0   :  { %v1141_v41 = vsel %vm1131_vm1, nan, %v1140_v62 }
 0x1a1   :  { %v1149_v2 = vmul.f32 %v1141_v41, %v309_v43 }
 0x1a3   :  { %v1159_v63 = vmul.f32 0.1, %v1149_v2 }
 0x1a5   :  { %v1186_v27 = vcombine.low %v1158_v47, %v1159_v63 }
 0x1a7   :  { %v1200_v0 = vrot.slane %v1186_v27, %v1175_v51 }
 0x1a9   :  { %v1201_v8 = vcombine.low %v1193_v55, %v1200_v0 }
 0x1ab   :  { %v1205_v33 = vadd.f32 %v1201_v8, %v1151_v18 }
 0x1ad   :  { %1207 = vst [vmem:[#allocation6 + $0x8] sm:$0xff] %v1205_v33 }
 0x1ae   :  { %1401 = shalt.err (!%p1398_p12)
}
 0x1af   :  { %s1402_s26 = scalar_lea.hbm %s2339_s2, 256 }
 0x1b0   :  { %p1403_p13 = scmp.ne.s32.totalorder %s2339_s2, %s1402_s26  ;;  %p1406_p0 = scmp.lt.u32.totalorder %s1402_s26, %s2339_s2 }
 0x1b2   :  { %p1408_p1 = pnand %p1406_p0, %p1403_p13 }
 0x1b4   :  { %1411 = shalt.err (!%p1408_p1)
}
 0x1b5   :  { %1217 = dma.vmem_to_hbm [thread:$0]  %s1215_s1, 256, %s2339_s2, [#allocation5]  }
 0x1b6   :  { %1414 = dma.done.wait [#allocation5], 256  }
 0x1b7   :  { %1415 = vsyncadd [#allocation5], 4294967040 }
 0x1b8   :  { %1221 = vsyncpa [#allocation4], 1 }
 0x1b9   :  { %1222 = vsyncpa [#allocation5], 1 }

// kernel: tpu_custom_call.1
= control target key start
LH: loop header
LB: loop body
LE: loop exit
PB: predicated region body
PF: predicated region fallthrough
CT: control target
= control target key end

     0   :  { %8 = vsyncpa [#allocation4], 0  ;;  %s2408_s0 = inlined_call_operand.<no memory space> [shape: s32[1], index: 0, kind: input, shape index: {}]   ;;  %s2409_s1 = inlined_call_operand.hbm [shape: f32[2,1024], index: 1, kind: input, shape index: {}, may-alias: {1,2}]   ;;  %s2410_s2 = inlined_call_operand.hbm [shape: f32[2,1024], index: 2, kind: output, shape index: {}, may-alias: {1,2}]  }
   0x1   :  { %9 = vsyncpa [#allocation5], 0  ;;  %s1448_s9 = smov [#allocation3]   ;;  %s1400_s13 = scalar_lea.hbm %s2409_s1, 256 }
   0x2   :  { %s18_s10 = sshll.u32 %s1448_s9, 4  ;;  %p1401_p0 = scmp.ne.s32.totalorder %s2409_s1, %s1400_s13  ;;  %s19_s10 = int_to_ptr.vmem [resolvable:$true] %s18_s10 }
   0x3   :  { %p1404_p1 = scmp.lt.u32.totalorder %s1400_s13, %s2409_s1 }
   0x5   :  { %p1406_p2 = pnand %p1404_p1, %p1401_p0 }
   0x7   :  { %1409 = shalt.err (!%p1406_p2)
}
   0x8   :  { %s1410_s18 = scalar_lea.vmem %s19_s10, 256  ;;  %p1415_p4 = scmp.lt.s32.totalorder %s19_s10, %s19_s10 }
   0x9   :  { %p1411_p3 = scmp.ne.s32.totalorder %s19_s10, %s1410_s18  ;;  %p1416_p5 = scmp.lt.s32.totalorder %s1410_s18, %s1410_s18 }
   0xb   :  { %p1417_p6 = por %p1416_p5, %p1415_p4 }
   0xd   :  { %p1418_p7 = pnand %p1417_p6, %p1411_p3 }
   0xf   :  { %1421 = shalt.err (!%p1418_p7)
}
  0x10   :  { %21 = dma.hbm_to_vmem [thread:$0]  %s2409_s1, 256, %s19_s10, [#allocation4]  }
  0x11   :  { %1444 = dma.done.wait [#allocation4], 256  }
  0x12   :  { %1445 = vsyncadd [#allocation4], 4294967040  ;;  %v25_v0 = vlaneseq  ;;  %s123_s23 = sxor.u32 2246822507, %s2408_s0  ;;  %s49_s26 = smul.u32 2654435769, %s2408_s0 }
  0x13   :  { %s124_s24 = smul.u32 2654435769, %s123_s23  ;;  %s1456_s0 = smov [#allocation6]  }
  0x14   :  { %v1484_v1 = vshrl.u32 %v25_v0, 7  ;;  %v28_v2 = vand.u32 127, %v25_v0  ;;  %v50_v27 = vstv %s49_s26  ;;  %s1246_s27 = sshll.u32 %s1456_s0, 4  ;;  %s1247_s27 = int_to_ptr.vmem [resolvable:$true] %s1246_s27 }
  0x15   :  { %v1490_v7 = vstv %s124_s24  ;;  %s1422_s28 = scalar_lea.vmem %s1247_s27, 256  ;;  %p1427_p9 = scmp.lt.s32.totalorder %s1247_s27, %s1247_s27 }
  0x16   :  { %v29_v3 = vadd.s32 128, %v28_v2  ;;  %v39_v4 = vmul.u32 1024, %v1484_v1  ;;  %v30_v8 = vadd.s32 256, %v28_v2  ;;  %v31_v22 = vadd.s32 384, %v28_v2  ;;  %p1423_p8 = scmp.ne.s32.totalorder %s1247_s27, %s1422_s28  ;;  %p1428_p10 = scmp.lt.s32.totalorder %s1422_s28, %s1422_s28 }
  0x17   :  { %v32_v23 = vadd.s32 512, %v28_v2  ;;  %v33_v24 = vadd.s32 640, %v28_v2  ;;  %v34_v25 = vadd.s32 768, %v28_v2  ;;  %v35_v26 = vadd.s32 896, %v28_v2 }
  0x18   :  { %v40_v5 = vadd.s32 %v39_v4, %v28_v2  ;;  %v41_v6 = vadd.s32 %v39_v4, %v29_v3  ;;  %v42_v11 = vadd.s32 %v39_v4, %v30_v8  ;;  %v43_v32 = vadd.s32 %v39_v4, %v31_v22  ;;  %p1429_p11 = por %p1428_p10, %p1427_p9 }
  0x19   :  { %v44_v33 = vadd.s32 %v39_v4, %v32_v23  ;;  %v45_v34 = vadd.s32 %v39_v4, %v33_v24  ;;  %v46_v36 = vadd.s32 %v39_v4, %v34_v25  ;;  %v47_v37 = vadd.s32 %v39_v4, %v35_v26 }
  0x1a   :  { %v126_v9 = vxor.u32 %v1490_v7, %v40_v5  ;;  %v127_v10 = vxor.u32 %v1490_v7, %v41_v6  ;;  %v128_v15 = vxor.u32 %v1490_v7, %v42_v11  ;;  %v51_v35 = vxor.u32 %v50_v27, %v40_v5  ;;  %p1430_p12 = pnand %p1429_p11, %p1423_p8 }
  0x1b   :  { %v52_v38 = vxor.u32 %v50_v27, %v41_v6  ;;  %v53_v39 = vxor.u32 %v50_v27, %v42_v11  ;;  %v54_v40 = vxor.u32 %v50_v27, %v43_v32  ;;  %v55_v41 = vxor.u32 %v50_v27, %v44_v33 }
  0x1c   :  { %v134_v12 = vshrl.u32 %v126_v9, 16  ;;  %v135_v13 = vshrl.u32 %v127_v10, 16  ;;  %v136_v19 = vshrl.u32 %v128_v15, 16  ;;  %v56_v44 = vxor.u32 %v50_v27, %v45_v34 }
  0x1d   :  { %v57_v45 = vxor.u32 %v50_v27, %v46_v36  ;;  %v58_v47 = vxor.u32 %v50_v27, %v47_v37  ;;  %v59_v48 = vshrl.u32 %v51_v35, 16  ;;  %v60_v49 = vshrl.u32 %v52_v38, 16 }
  0x1e   :  { %v142_v14 = vxor.u32 %v134_v12, %v126_v9  ;;  %v143_v16 = vxor.u32 %v135_v13, %v127_v10  ;;  %v144_v29 = vxor.u32 %v136_v19, %v128_v15  ;;  %v61_v50 = vshrl.u32 %v53_v39, 16 }
  0x1f   :  { %v62_v51 = vshrl.u32 %v54_v40, 16  ;;  %v63_v52 = vshrl.u32 %v55_v41, 16  ;;  %v64_v55 = vshrl.u32 %v56_v44, 16  ;;  %v65_v56 = vshrl.u32 %v57_v45, 16 }
  0x20   :  { %v150_v17 = vmul.u32 2146121005, %v142_v14  ;;  %v151_v20 = vmul.u32 2146121005, %v143_v16  ;;  %v129_v57 = vxor.u32 %v1490_v7, %v43_v32  ;;  %v66_v59 = vshrl.u32 %v58_v47, 16 }
  0x21   :  { %v152_v42 = vmul.u32 2146121005, %v144_v29  ;;  %v67_v60 = vxor.u32 %v59_v48, %v51_v35  ;;  %v130_v61 = vxor.u32 %v1490_v7, %v44_v33  ;;  %v131_v62 = vxor.u32 %v1490_v7, %v45_v34 }
  0x22   :  { %v158_v18 = vshrl.u32 %v150_v17, 15  ;;  %v159_v30 = vshrl.u32 %v151_v20, 15  ;;  %v68_v63 = vxor.u32 %v60_v49, %v52_v38  ;;  %v69_v0 = vxor.u32 %v61_v50, %v53_v39 }
  0x23   :  { %v160_v53 = vshrl.u32 %v152_v42, 15  ;;  %v132_v2 = vxor.u32 %v1490_v7, %v46_v36  ;;  %v70_v4 = vxor.u32 %v62_v51, %v54_v40  ;;  %v71_v5 = vxor.u32 %v63_v52, %v55_v41 }
  0x24   :  { %v166_v21 = vxor.u32 %v158_v18, %v150_v17  ;;  %v167_v43 = vxor.u32 %v159_v30, %v151_v20  ;;  %v72_v9 = vxor.u32 %v64_v55, %v56_v44  ;;  %v73_v10 = vxor.u32 %v65_v56, %v57_v45 }
  0x25   :  { %v168_v6 = vxor.u32 %v160_v53, %v152_v42  ;;  %v133_v11 = vxor.u32 %v1490_v7, %v47_v37  ;;  %v137_v12 = vshrl.u32 %v129_v57, 16  ;;  %v74_v13 = vxor.u32 %v66_v59, %v58_v47 }
  0x26   :  { %v174_v28 = vmul.u32 2221713035, %v166_v21  ;;  %v175_v54 = vmul.u32 2221713035, %v167_v43  ;;  %v138_v15 = vshrl.u32 %v130_v61, 16  ;;  %v139_v16 = vshrl.u32 %v131_v62, 16 }
  0x27   :  { %v75_v14 = vmul.u32 2146121005, %v67_v60  ;;  %v76_v17 = vmul.u32 2146121005, %v68_v63  ;;  %v140_v19 = vshrl.u32 %v132_v2, 16  ;;  %v141_v25 = vshrl.u32 %v133_v11, 16 }
  0x28   :  { %v182_v31 = vshrl.u32 %v174_v28, 16  ;;  %v183_v8 = vshrl.u32 %v175_v54, 16  ;;  %v77_v18 = vmul.u32 2146121005, %v69_v0  ;;  %v78_v21 = vmul.u32 2146121005, %v70_v4 }
  0x29   :  { %v176_v22 = vmul.u32 2221713035, %v168_v6  ;;  %v79_v24 = vmul.u32 2146121005, %v71_v5  ;;  %v145_v26 = vxor.u32 %v137_v12, %v129_v57  ;;  %v83_v29 = vshrl.u32 %v75_v14, 15 }
  0x2a   :  { %v190_v46 = vxor.u32 %v182_v31, %v174_v28  ;;  %v191_v23 = vxor.u32 %v183_v8, %v175_v54  ;;  %v80_v28 = vmul.u32 2146121005, %v72_v9  ;;  %v146_v7 = vxor.u32 %v138_v15, %v130_v61 }
  0x2b   :  { %v147_v30 = vxor.u32 %v139_v16, %v131_v62  ;;  %v81_v31 = vmul.u32 2146121005, %v73_v10  ;;  %v82_v32 = vmul.u32 2146121005, %v74_v13  ;;  %v84_v33 = vshrl.u32 %v76_v17, 15 }
  0x2c   :  { %v222_v58 = vshrl.u32 %v190_v46, 9  ;;  %v148_v34 = vxor.u32 %v140_v19, %v132_v2  ;;  %v85_v35 = vshrl.u32 %v77_v18, 15  ;;  %v184_v36 = vshrl.u32 %v176_v22, 16 }
  0x2d   :  { %v223_v37 = vshrl.u32 %v191_v23, 9  ;;  %v86_v39 = vshrl.u32 %v78_v21, 15  ;;  %v87_v40 = vshrl.u32 %v79_v24, 15  ;;  %v149_v41 = vxor.u32 %v141_v25, %v133_v11 }
  0x2e   :  { %v230_v3 = vor.u32 1065353216, %v222_v58  ;;  %v153_v42 = vmul.u32 2146121005, %v145_v26  ;;  %v88_v43 = vshrl.u32 %v80_v28, 15  ;;  %v154_v44 = vmul.u32 2146121005, %v146_v7 }
  0x2f   :  { %v155_v45 = vmul.u32 2146121005, %v147_v30  ;;  %v89_v47 = vshrl.u32 %v81_v31, 15  ;;  %v91_v48 = vxor.u32 %v83_v29, %v75_v14  ;;  %v92_v49 = vxor.u32 %v84_v33, %v76_v17 }
  0x30   :  { %v1255_v20 = vadd.f32 -1.0, %v230_v3  ;;  %v156_v50 = vmul.u32 2146121005, %v148_v34  ;;  %v90_v51 = vshrl.u32 %v82_v32, 15  ;;  %v192_v52 = vxor.u32 %v184_v36, %v176_v22 }
  0x31   :  { %v231_v53 = vor.u32 1065353216, %v223_v37  ;;  %v93_v55 = vxor.u32 %v85_v35, %v77_v18  ;;  %v94_v56 = vxor.u32 %v86_v39, %v78_v21  ;;  %v157_v57 = vmul.u32 2146121005, %v149_v41 }
  0x32   :  { %v1503_v27 = vmul.f32 6.2831855, %v1255_v20  ;;  %v161_v58 = vshrl.u32 %v153_v42, 15  ;;  %v95_v59 = vxor.u32 %v87_v40, %v79_v24  ;;  %v96_v60 = vxor.u32 %v88_v43, %v80_v28 }
  0x33   :  { %v162_v61 = vshrl.u32 %v154_v44, 15  ;;  %v163_v62 = vshrl.u32 %v155_v45, 15  ;;  %v97_v63 = vxor.u32 %v89_v47, %v81_v31  ;;  %v99_v0 = vmul.u32 2221713035, %v91_v48 }
  0x34   :  { %v353_v38 = vand.u32 2139095040, %v1503_v27  ;;  %v100_v2 = vmul.u32 2221713035, %v92_v49  ;;  %v164_v3 = vshrl.u32 %v156_v50, 15  ;;  %v1506_v4 = vxor.u32 %v90_v51, %v82_v32 }
  0x35   :  { %v224_v5 = vshrl.u32 %v192_v52, 9  ;;  %v1256_v6 = vadd.f32 -1.0, %v231_v53  ;;  %v101_v9 = vmul.u32 2221713035, %v93_v55  ;;  %v102_v10 = vmul.u32 2221713035, %v94_v56 }
  0x36   :  { %v354_v46 = vshrl.u32 %v353_v38, 23  ;;  %v165_v11 = vshrl.u32 %v157_v57, 15  ;;  %v169_v12 = vxor.u32 %v161_v58, %v153_v42  ;;  %v103_v13 = vmul.u32 2221713035, %v95_v59 }
  0x37   :  { %v104_v14 = vmul.u32 2221713035, %v96_v60  ;;  %v170_v15 = vxor.u32 %v162_v61, %v154_v44  ;;  %v171_v16 = vxor.u32 %v163_v62, %v155_v45  ;;  %v105_v17 = vmul.u32 2221713035, %v97_v63 }
  0x38   :  { %v1263_v54 = vadd.s32 4294967169, %v354_v46  ;;  %v107_v18 = vshrl.u32 %v99_v0, 16  ;;  %v108_v19 = vshrl.u32 %v100_v2, 16  ;;  %v172_v20 = vxor.u32 %v164_v3, %v156_v50 }
  0x39   :  { %v106_v21 = vmul.u32 2221713035, %v1506_v4  ;;  %v232_v22 = vor.u32 1065353216, %v224_v5  ;;  %v1509_v23 = vmul.f32 6.2831855, %v1256_v6  ;;  %v109_v24 = vshrl.u32 %v101_v9, 16 }
  0x3a   :  { %v360_v8 = vadd.s32 1, %v1263_v54  ;;  %v110_v25 = vshrl.u32 %v102_v10, 16  ;;  %v1511_v26 = vxor.u32 %v165_v11, %v157_v57  ;;  %v177_v28 = vmul.u32 2221713035, %v169_v12 }
  0x3b   :  { %v111_v29 = vshrl.u32 %v103_v13, 16  ;;  %v112_v7 = vshrl.u32 %v104_v14, 16  ;;  %v178_v30 = vmul.u32 2221713035, %v170_v15  ;;  %v179_v31 = vmul.u32 2221713035, %v171_v16 }
  0x3c   :  { %vm361_vm0 = vcmp.gt.s32.totalorder %v360_v8, 0  ;;  %v115_v32 = vxor.u32 %v107_v18, %v99_v0  ;;  %v116_v33 = vxor.u32 %v108_v19, %v100_v2  ;;  %v180_v34 = vmul.u32 2221713035, %v172_v20 }
  0x3d   :  { %v362_v35 = vsel %vm361_vm0, %v360_v8, 0  ;;  %v113_v36 = vshrl.u32 %v105_v17, 16  ;;  %v1515_v37 = vshrl.u32 %v106_v21, 16  ;;  %v1257_v38 = vadd.f32 -1.0, %v232_v22 }
  0x3e   :  { %v456_v39 = vand.u32 2139095040, %v1509_v23  ;;  %v117_v40 = vxor.u32 %v109_v24, %v101_v9  ;;  %v1518_v41 = vxor.u32 %v110_v25, %v102_v10  ;;  %v181_v42 = vmul.u32 2221713035, %v1511_v26 }
  0x3f   :  { %v185_v43 = vshrl.u32 %v177_v28, 16  ;;  %v1521_v44 = vxor.u32 %v111_v29, %v103_v13  ;;  %v186_v45 = vshrl.u32 %v178_v30, 16  ;;  %v187_v46 = vshrl.u32 %v179_v31, 16 }
  0x40   :  { %v364_v47 = vand.u32 31, %v362_v35  ;;  %v1523_v48 = vxor.u32 %v112_v7, %v104_v14  ;;  %v188_v49 = vshrl.u32 %v180_v34, 16  ;;  %v198_v50 = vshrl.u32 %v115_v32, 9 }
  0x41   :  { %v199_v51 = vshrl.u32 %v116_v33, 9  ;;  %v1525_v52 = vxor.u32 %v113_v36, %v105_v17  ;;  %v1527_v53 = vmul.f32 6.2831855, %v1257_v38  ;;  %v2414_v54 = vand.u32 2147483647, %v1503_v27 }
  0x42   :  { %v457_v55 = vshrl.u32 %v456_v39, 23  ;;  %v189_v56 = vshrl.u32 %v181_v42, 16  ;;  %v1530_v57 = vxor.u32 %v185_v43, %v177_v28  ;;  %v200_v58 = vshrl.u32 %v117_v40, 9 }
  0x43   :  { %v201_v59 = vshrl.u32 %v1518_v41, 9  ;;  %v1533_v60 = vxor.u32 %v186_v45, %v178_v30  ;;  %v1535_v61 = vxor.u32 %v187_v46, %v179_v31  ;;  %v202_v62 = vshrl.u32 %v1521_v44, 9 }
  0x44   :  { %v365_v63 = vsub.s32 32, %v364_v47  ;;  %v1538_v0 = vxor.u32 %v188_v49, %v180_v34  ;;  %v203_v2 = vshrl.u32 %v1523_v48, 9  ;;  %v206_v3 = vor.u32 1065353216, %v198_v50 }
  0x45   :  { %v207_v5 = vor.u32 1065353216, %v199_v51  ;;  %v357_v6 = vand.u32 8388607, %v2414_v54  ;;  %v363_v8 = vshrl.u32 %v362_v35, 5  ;;  %v1267_v9 = vadd.s32 4294967169, %v457_v55 }
  0x46   :  { %v559_v10 = vand.u32 2139095040, %v1527_v53  ;;  %v2428_v11 = vmov 683565275   ;;  %v2424_v13 = vmov 2475754826   ;;  %v246_v26 = vsub.f32 2.0, %v206_v3 }
  0x47   :  { %v367_v12 = vshll.u32 %v2428_v11, %v364_v47  ;;  %v368_v14 = vshrl.u32 %v2424_v13, %v365_v63  ;;  %v370_v15 = vshll.u32 %v2424_v13, %v364_v47  ;;  %v2422_v16 = vmov 2131351028  }
  0x48   :  { %v371_v17 = vshrl.u32 %v2422_v16, %v365_v63  ;;  %v373_v18 = vshll.u32 %v2422_v16, %v364_v47  ;;  %v2420_v19 = vmov 2102212464   ;;  %v2417_v24 = vmov 920167782  }
  0x49   :  { %v374_v20 = vshrl.u32 %v2420_v19, %v365_v63  ;;  %v376_v22 = vshll.u32 %v2420_v19, %v364_v47  ;;  %v377_v25 = vshrl.u32 %v2417_v24, %v365_v63  ;;  %v379_v28 = vshll.u32 %v2417_v24, %v364_v47 }
  0x4a   :  { %v2415_v29 = vmov 1326507024   ;;  %v2413_v30 = vand.u32 2147483647, %v1509_v23  ;;  %v1555_v31 = vxor.u32 %v189_v56, %v181_v42  ;;  %v1557_v32 = vor.u32 1065353216, %v200_v58 }
  0x4b   :  { %v380_v7 = vshrl.u32 %v2415_v29, %v365_v63  ;;  %v358_v33 = vor.u32 8388608, %v357_v6  ;;  %v463_v34 = vadd.s32 1, %v1267_v9  ;;  %v247_v35 = vsub.f32 2.0, %v207_v5 }
  0x4c   :  { %v366_v36 = vshrl.u32 %v2428_v11, %v365_v63  ;;  %v369_v38 = vor.u32 %v368_v14, %v367_v12  ;;  %v372_v39 = vor.u32 %v371_v17, %v370_v15  ;;  %v375_v40 = vor.u32 %v374_v20, %v373_v18 }
  0x4d   :  { %v378_v43 = vor.u32 %v377_v25, %v376_v22  ;;  %vm382_vm1 = vcmp.lt.s32.totalorder %v363_v8, 1  ;;  %v560_v45 = vshrl.u32 %v559_v10, 23  ;;  %1336 = vlog2.f32 %v246_v26 }
  0x4e   :  { %v381_v46 = vor.u32 %v380_v7, %v379_v28  ;;  %vm385_vm2 = vcmp.lt.s32.totalorder %v363_v8, 4  ;;  %v460_v42 = vand.u32 8388607, %v2413_v30  ;;  %vm384_vm3 = vcmp.lt.s32.totalorder %v363_v8, 3 }
  0x4f   :  { %v387_v47 = vsel %vm385_vm2, %v375_v40, 2102212464  ;;  %v398_v49 = vshll.u32 %v358_v33, 8  ;;  %vm464_vm4 = vcmp.gt.s32.totalorder %v463_v34, 0  ;;  %vm383_vm5 = vcmp.lt.s32.totalorder %v363_v8, 2 }
  0x50   :  { %v386_v50 = vsel %vm382_vm1, %v366_v36, %v369_v38  ;;  %v388_v51 = vsel %vm384_vm3, %v372_v39, %v387_v47  ;;  %v390_v55 = vsel %vm382_vm1, %v369_v38, %v372_v39  ;;  %v248_v56 = vsub.f32 2.0, %v1557_v32 }
  0x51   :  { %1338 = vlog2.f32 %v247_v35  ;;  %v391_v58 = vsel %vm385_vm2, %v378_v43, 920167782  ;;  %v1271_v63 = vadd.s32 4294967169, %v560_v45  ;;  %v394_v5 = vsel %vm382_vm1, %v372_v39, %v375_v40 }
  0x52   :  { %v392_v3 = vsel %vm384_vm3, %v375_v40, %v391_v58  ;;  %v395_v6 = vsel %vm385_vm2, %v381_v46, 1326507024  ;;  %v461_v9 = vor.u32 8388608, %v460_v42  ;;  %v389_v10 = vsel %vm383_vm5, %v386_v50, %v388_v51 }
  0x53   :  { %v393_v12 = vsel %vm383_vm5, %v390_v55, %v392_v3  ;;  %v396_v14 = vsel %vm384_vm3, %v378_v43, %v395_v6  ;;  %v465_v15 = vsel %vm464_vm4, %v463_v34, 0  ;;  %v566_v7 = vadd.s32 1, %v1271_v63 }
  0x54   :  { %v397_v17 = vsel %vm383_vm5, %v394_v5, %v396_v14  ;;  %v1576_v18 = vmul.u32.u64.low %v398_v49, %v393_v12  ;;  %v1577_v20 = vmul.u32.u64.high %v398_v49, %v393_v12, %v1576_v18  ;;  %v466_v22 = vshrl.u32 %v465_v15, 5 }
  0x55   :  { %v1580_v25 = vmul.u32.u64.low %v398_v49, %v397_v17  ;;  %v1581_v26 = vmul.u32.u64.high %v398_v49, %v397_v17, %v1580_v25  ;;  %v467_v28 = vand.u32 31, %v465_v15  ;;  %v405_v33 = vmul.u32 %v398_v49, %v389_v10 }
  0x56   :  { %vm485_vm6 = vcmp.lt.s32.totalorder %v466_v22, 1  ;;  %vm486_vm7 = vcmp.lt.s32.totalorder %v466_v22, 2  ;;  %v1583_v35 = vshll.u32 %v461_v9, 8  ;;  %vm488_vm8 = vcmp.lt.s32.totalorder %v466_v22, 4 }
  0x57   :  { %v468_v36 = vsub.s32 32, %v467_v28  ;;  %v470_v34 = vshll.u32 %v2428_v11, %v467_v28  ;;  %v473_v8 = vshll.u32 %v2424_v13, %v467_v28  ;;  %v1337_v38 = vpop.eup %1336  ;;  %v408_v39 = vadd.s32 1, %v1577_v20 }
  0x58   :  { %v476_v40 = vshll.u32 %v2422_v16, %v467_v28  ;;  %v479_v43 = vshll.u32 %v2420_v19, %v467_v28  ;;  %vm567_vm9 = vcmp.gt.s32.totalorder %v566_v7, 0  ;;  %vm407_vm10 = vc.u32 %v1581_v26, %v1576_v18 }
  0x59   :  { %v469_v45 = vshrl.u32 %v2428_v11, %v468_v36  ;;  %v471_v46 = vshrl.u32 %v2424_v13, %v468_v36  ;;  %v482_v42 = vshll.u32 %v2417_v24, %v467_v28  ;;  %v409_v47 = vsel %vm407_vm10, %v408_v39, %v1577_v20 }
  0x5a   :  { %v474_v49 = vshrl.u32 %v2422_v16, %v468_v36  ;;  %v477_v50 = vshrl.u32 %v2420_v19, %v468_v36  ;;  %v480_v51 = vshrl.u32 %v2417_v24, %v468_v36  ;;  %v410_v58 = vadd.s32 %v409_v47, %v405_v33 }
  0x5b   :  { %v1339_v55 = vpop.eup %1338  ;;  %v472_v63 = vor.u32 %v471_v46, %v470_v34  ;;  %v483_v3 = vshrl.u32 %v2415_v29, %v468_v36  ;;  %v568_v5 = vsel %vm567_vm9, %v566_v7, 0  ;;  %vm487_vm11 = vcmp.lt.s32.totalorder %v466_v22, 3 }
  0x5c   :  { %v475_v6 = vor.u32 %v474_v49, %v473_v8  ;;  %v478_v9 = vor.u32 %v477_v50, %v476_v40  ;;  %v481_v10 = vor.u32 %v480_v51, %v479_v43  ;;  %v411_v12 = vadd.s32 536870912, %v410_v58 }
  0x5d   :  { %v484_v14 = vor.u32 %v483_v3, %v482_v42  ;;  %v489_v15 = vsel %vm485_vm6, %v469_v45, %v472_v63  ;;  %v570_v17 = vand.u32 31, %v568_v5  ;;  %v225_v39 = vshrl.u32 %v1530_v57, 9 }
  0x5e   :  { %v490_v20 = vsel %vm488_vm8, %v478_v9, 2102212464  ;;  %v493_v25 = vsel %vm485_vm6, %v472_v63, %v475_v6  ;;  %v494_v28 = vsel %vm488_vm8, %v481_v10, 920167782  ;;  %v497_v33 = vsel %vm485_vm6, %v475_v6, %v478_v9 }
  0x5f   :  { %v1605_v34 = vshrl.u32 %v411_v12, 30  ;;  %v491_v7 = vsel %vm487_vm11, %v475_v6, %v490_v20  ;;  %v495_v36 = vsel %vm487_vm11, %v478_v9, %v494_v28  ;;  %v498_v8 = vsel %vm488_vm8, %v484_v14, 1326507024 }
  0x60   :  { %v496_v40 = vsel %vm486_vm7, %v493_v25, %v495_v36  ;;  %v499_v43 = vsel %vm487_vm11, %v481_v10, %v498_v8  ;;  %v571_v45 = vsub.s32 32, %v570_v17  ;;  %1340 = vlog2.f32 %v248_v56 }
  0x61   :  { %v413_v46 = vshll.u32 %v1605_v34, 30  ;;  %v492_v42 = vsel %vm486_vm7, %v489_v15, %v491_v7  ;;  %v500_v47 = vsel %vm486_vm7, %v497_v33, %v499_v43  ;;  %v209_v63 = vor.u32 1065353216, %v201_v59 }
  0x62   :  { %v1616_v49 = vmul.u32.u64.low %v1583_v35, %v500_v47  ;;  %v1617_v50 = vmul.u32.u64.high %v1583_v35, %v500_v47, %v1616_v49  ;;  %v1620_v51 = vmul.u32.u64.low %v1583_v35, %v496_v40  ;;  %v1621_v57 = vmul.u32.u64.high %v1583_v35, %v496_v40, %v1620_v51 }
  0x63   :  { %v226_v32 = vshrl.u32 %v1533_v60, 9  ;;  %v263_v56 = vmul.f32 0.6931472, %v1337_v38  ;;  %v2412_v3 = vand.u32 2147483647, %v1527_v53  ;;  %v233_v6 = vor.u32 1065353216, %v225_v39 }
  0x64   :  { %v1628_v22 = vshrl.u32 %v568_v5, 5  ;;  %v573_v9 = vshll.u32 %v2428_v11, %v570_v17  ;;  %v574_v10 = vshrl.u32 %v2424_v13, %v571_v45  ;;  %v1632_v12 = vsub.s32 %v410_v58, %v413_v46 }
  0x65   :  { %v508_v14 = vmul.u32 %v1583_v35, %v492_v42  ;;  %v576_v15 = vshll.u32 %v2424_v13, %v570_v17  ;;  %v577_v41 = vshrl.u32 %v2422_v16, %v571_v45  ;;  %vm510_vm12 = vc.u32 %v1617_v50, %v1620_v51 }
  0x66   :  { %v511_v59 = vadd.s32 1, %v1621_v57  ;;  %v579_v38 = vshll.u32 %v2422_v16, %v570_v17  ;;  %v580_v5 = vshrl.u32 %v2420_v19, %v571_v45  ;;  %v249_v20 = vsub.f32 2.0, %v209_v63 }
  0x67   :  { %v265_v25 = vmul.f32 0.6931472, %v1339_v55  ;;  %v1642_v28 = vmul.f32 -2.0, %v263_v56  ;;  %v563_v35 = vand.u32 8388607, %v2412_v3  ;;  %v572_v33 = vshrl.u32 %v2428_v11, %v571_v45 }
  0x68   :  { %v512_v58 = vsel %vm510_vm12, %v511_v59, %v1621_v57  ;;  %v575_v7 = vor.u32 %v574_v10, %v573_v9  ;;  %v582_v36 = vshll.u32 %v2420_v19, %v570_v17  ;;  %v578_v39 = vor.u32 %v577_v41, %v576_v15 }
  0x69   :  { %v513_v8 = vadd.s32 %v512_v58, %v508_v14  ;;  %v583_v40 = vshrl.u32 %v2417_v24, %v571_v45  ;;  %v585_v43 = vshll.u32 %v2417_v24, %v570_v17  ;;  %v416_v55 = vsub.s32 0, %v1632_v12 }
  0x6a   :  { %v581_v46 = vor.u32 %v580_v5, %v579_v38  ;;  %v586_v42 = vshrl.u32 %v2415_v29, %v571_v45  ;;  %vm588_vm13 = vcmp.lt.s32.totalorder %v1628_v22, 1  ;;  %v1341_v47 = vpop.eup %1340  ;;  %vm590_vm14 = vcmp.lt.s32.totalorder %v1628_v22, 3 }
  0x6b   :  { %v514_v49 = vadd.s32 536870912, %v513_v8  ;;  %v584_v57 = vor.u32 %v583_v40, %v582_v36  ;;  %vm591_vm15 = vcmp.lt.s32.totalorder %v1628_v22, 4  ;;  %v1258_v63 = vadd.f32 -1.0, %v233_v6 }
  0x6c   :  { %1342 = vlog2.f32 %v249_v20  ;;  %v564_v56 = vor.u32 8388608, %v563_v35  ;;  %v587_v9 = vor.u32 %v586_v42, %v585_v43  ;;  %vm589_vm0 = vcmp.lt.s32.totalorder %v1628_v22, 2 }
  0x6d   :  { %v593_v17 = vsel %vm591_vm15, %v581_v46, 2102212464  ;;  %v596_v45 = vsel %vm588_vm13, %v575_v7, %v578_v39  ;;  %v597_v10 = vsel %vm591_vm15, %v584_v57, 920167782  ;;  %v267_v14 = vmul.f32 0.6931472, %v1341_v47 }
  0x6e   :  { %v1663_v15 = vmul.f32 -2.0, %v265_v25  ;;  %v1665_v41 = vshrl.u32 %v514_v49, 30  ;;  %v598_v6 = vsel %vm590_vm14, %v581_v46, %v597_v10  ;;  %1344 = vrsqrt.f32 %v1642_v28 }
  0x6f   :  { %v1264_v59 = vmin.u32 %v416_v55, %v1632_v12  ;;  %v592_v38 = vsel %vm588_vm13, %v572_v33, %v575_v7  ;;  %v600_v5 = vsel %vm588_vm13, %v578_v39, %v581_v46  ;;  %v594_v20 = vsel %vm590_vm14, %v578_v39, %v593_v17 }
  0x70   :  { %v599_v25 = vsel %vm589_vm0, %v596_v45, %v598_v6  ;;  %v601_v35 = vsel %vm591_vm15, %v587_v9, 1326507024  ;;  %v604_v58 = vshll.u32 %v564_v56, 8  ;;  %v227_v36 = vshrl.u32 %v1535_v61, 9 }
  0x71   :  { %v228_v40 = vshrl.u32 %v1538_v0, 9  ;;  %v229_v43 = vshrl.u32 %v1555_v31, 9  ;;  %v602_v33 = vsel %vm590_vm14, %v584_v57, %v601_v35  ;;  %v516_v7 = vshll.u32 %v1665_v41, 30 }
  0x72   :  { %v603_v39 = vsel %vm589_vm0, %v600_v5, %v602_v33  ;;  %v1689_v55 = vmul.u32.u64.low %v604_v58, %v599_v25  ;;  %v1690_v46 = vmul.u32.u64.high %v604_v58, %v599_v25, %v1689_v55  ;;  %v234_v42 = vor.u32 1065353216, %v226_v32 }
  0x73   :  { %v1695_v61 = vmul.f32 6.2831855, %v1258_v63  ;;  %v418_v0 = vclz %v1264_v59  ;;  %v595_v31 = vsel %vm589_vm0, %v592_v38, %v594_v20  ;;  %v1699_v47 = vmul.f32 -2.0, %v267_v14 }
  0x74   :  { %1346 = vrsqrt.f32 %v1663_v15  ;;  %v1702_v49 = vmul.u32.u64.low %v604_v58, %v603_v39  ;;  %v1703_v57 = vmul.u32.u64.high %v604_v58, %v603_v39, %v1702_v49  ;;  %v1708_v56 = vxor.u32 %v1515_v37, %v106_v21 }
  0x75   :  { %v235_v60 = vor.u32 1065353216, %v227_v36  ;;  %v236_v32 = vor.u32 1065353216, %v228_v40  ;;  %v204_v9 = vshrl.u32 %v1525_v52, 9  ;;  %v1711_v17 = vsub.s32 %v513_v8, %v516_v7 }
  0x76   :  { %v1343_v63 = vpop.eup %1342  ;;  %v611_v22 = vmul.u32 %v604_v58, %v595_v31  ;;  %v614_v45 = vadd.s32 1, %v1690_v46  ;;  %v210_v10 = vor.u32 1065353216, %v202_v62  ;;  %v237_v14 = vor.u32 1065353216, %v229_v43 }
  0x77   :  { %v1265_v6 = vadd.s32 4294967294, %v418_v0  ;;  %v662_v4 = vand.u32 2139095040, %v1695_v61  ;;  %v1719_v21 = vor.u32 1065353216, %v203_v2  ;;  %v1259_v37 = vadd.f32 -1.0, %v234_v42 }
  0x78   :  { %1348 = vrsqrt.f32 %v1699_v47  ;;  %vm613_vm1 = vc.u32 %v1703_v57, %v1689_v55  ;;  %v1345_v52 = vpop.eup %1344  ;;  %v1260_v8 = vadd.f32 -1.0, %v235_v60  ;;  %v1261_v59 = vadd.f32 -1.0, %v236_v32 }
  0x79   :  { %v615_v44 = vsel %vm613_vm1, %v614_v45, %v1690_v46  ;;  %v663_v62 = vshrl.u32 %v662_v4, 23  ;;  %v1726_v5 = vor.u32 1065353216, %v204_v9  ;;  %v519_v48 = vsub.s32 0, %v1711_v17 }
  0x7a   :  { %v616_v2 = vadd.s32 %v615_v44, %v611_v22  ;;  %v1262_v20 = vadd.f32 -1.0, %v237_v14  ;;  %v269_v25 = vmul.f32 0.6931472, %v1343_v63  ;;  %vm1266_vm2 = vcmp.lt.s32.totalorder %v1265_v6, 0 }
  0x7b   :  { %v1275_v35 = vadd.s32 4294967169, %v663_v62  ;;  %v250_v58 = vsub.f32 2.0, %v210_v10  ;;  %v1730_v40 = vmul.f32 6.2831855, %v1259_v37  ;;  %v287_v33 = vmul.f32 %v1345_v52, %v1642_v28 }
  0x7c   :  { %v617_v43 = vadd.s32 536870912, %v616_v2  ;;  %vm288_vm3 = vcmp.eq.f32.partialorder %v1642_v28, inf  ;;  %v1734_v7 = vmul.f32 6.2831855, %v1260_v8  ;;  %v1736_v39 = vmul.f32 6.2831855, %v1261_v59 }
  0x7d   :  { %v421_v42 = vsel %vm1266_vm2, 0, %v1265_v6  ;;  %v1268_v0 = vmin.u32 %v519_v48, %v1711_v17  ;;  %v669_v49 = vadd.s32 1, %v1275_v35  ;;  %v1741_v60 = vmul.f32 -2.0, %v269_v25 }
  0x7e   :  { %2436 = vst [vmem:[#allocation9_spill] sm:$0xff] %v1736_v39  ;;  %v1347_v46 = vpop.eup %1346  ;;  %v1739_v31 = vshrl.u32 %v617_v43, 30  ;;  %vm290_vm4 = vcmp.eq.f32.partialorder %v1642_v28, 0.0  ;;  %v1744_v32 = vmul.f32 6.2831855, %v1262_v20  ;;  %v291_v9 = vand.u32 2147483648, %v1642_v28 }
  0x7f   :  { %v2411_v63 = vand.u32 2147483647, %v1695_v61  ;;  %vm295_vm5 = vcmp.eq.f32.partialorder %v1663_v15, inf  ;;  %vm670_vm6 = vcmp.gt.s32.totalorder %v669_v49, 0  ;;  %v289_v45 = vsel %vm288_vm3, %v1642_v28, %v287_v33 }
  0x80   :  { %v619_v22 = vshll.u32 %v1739_v31, 30  ;;  %v294_v10 = vmul.f32 %v1347_v46, %v1663_v15  ;;  %v426_v14 = vsub.s32 4294967266, %v421_v42  ;;  %v671_v6 = vsel %vm670_vm6, %v669_v49, 0 }
  0x81   :  { %v406_v37 = vadd.s32 %v1576_v18, %v1581_v26  ;;  %v422_v52 = vsub.s32 32, %v421_v42  ;;  %v521_v8 = vclz %v1268_v0  ;;  %v673_v59 = vand.u32 31, %v671_v6 }
  0x82   :  { %v1349_v4 = vpop.eup %1348  ;;  %1350 = vlog2.f32 %v250_v58  ;;  %v298_v44 = vand.u32 2147483648, %v1663_v15  ;;  %v1757_v62 = vsub.s32 %v616_v2, %v619_v22  ;;  %v765_v48 = vand.u32 2139095040, %v1730_v40 }
  0x83   :  { %1352 = vrsqrt.f32 %v1741_v60  ;;  %v674_v35 = vsub.s32 32, %v673_v59  ;;  %v1765_v18 = vsel %vm290_vm4, %v291_v9, %v289_v45  ;;  %v1770_v26 = vsel %vm295_vm5, %v1663_v15, %v294_v10 }
  0x84   :  { %v1773_v2 = vmul.f32 %v1349_v4, %v1699_v47  ;;  %v427_v58 = vadd.s32 127, %v426_v14  ;;  %v423_v43 = vshll.u32 %v1632_v12, %v421_v42  ;;  %v424_v33 = vshrl.u32 %v406_v37, %v422_v52 }
  0x85   :  { %v1269_v46 = vadd.s32 4294967294, %v521_v8  ;;  %v666_v0 = vand.u32 8388607, %v2411_v63  ;;  %v622_v28 = vsub.s32 0, %v1757_v62  ;;  %v676_v49 = vshll.u32 %v2428_v11, %v673_v59 }
  0x86   :  { %v679_v9 = vshll.u32 %v2424_v13, %v673_v59  ;;  %v766_v22 = vshrl.u32 %v765_v48, 23  ;;  %v677_v45 = vshrl.u32 %v2424_v13, %v674_v35  ;;  %v680_v10 = vshrl.u32 %v2422_v16, %v674_v35 }
  0x87   :  { %v685_v14 = vshll.u32 %v2420_v19, %v673_v59  ;;  %v686_v12 = vshrl.u32 %v2417_v24, %v674_v35  ;;  %v428_v42 = vshll.u32 %v427_v58, 23  ;;  %v672_v4 = vshrl.u32 %v671_v6, 5 }
  0x88   :  { %v682_v37 = vshll.u32 %v2422_v16, %v673_v59  ;;  %v683_v52 = vshrl.u32 %v2420_v19, %v674_v35  ;;  %v425_v8 = vor.u32 %v424_v33, %v423_v43  ;;  %v436_v36 = vsub.s32 4, %v1605_v34 }
  0x89   :  { %v688_v38 = vshll.u32 %v2417_v24, %v673_v59  ;;  %v689_v48 = vshrl.u32 %v2415_v29, %v674_v35  ;;  %vm297_vm7 = vcmp.eq.f32.partialorder %v1663_v15, 0.0  ;;  %vm302_vm8 = vcmp.eq.f32.partialorder %v1699_v47, inf }
  0x8a   :  { %v509_v25 = vadd.s32 %v1620_v51, %v1617_v50  ;;  %vm1270_vm9 = vcmp.lt.s32.totalorder %v1269_v46, 0  ;;  %v667_v6 = vor.u32 8388608, %v666_v0  ;;  %v1279_v58 = vadd.s32 4294967169, %v766_v22 }
  0x8b   :  { %v1272_v63 = vmin.u32 %v622_v28, %v1757_v62  ;;  %v678_v3 = vor.u32 %v677_v45, %v676_v49  ;;  %v681_v43 = vor.u32 %v680_v10, %v679_v9  ;;  %v687_v33 = vor.u32 %v686_v12, %v685_v14 }
  0x8c   :  { %v1795_v20 = vpop.eup %1350  ;;  %v429_v59 = vor.u32 4788187, %v428_v42  ;;  %v675_v30 = vshrl.u32 %v2428_v11, %v674_v35  ;;  %v684_v54 = vor.u32 %v683_v52, %v682_v37  ;;  %vm691_vm10 = vcmp.lt.s32.totalorder %v672_v4, 1 }
  0x8d   :  { %v1353_v29 = vpop.eup %1352  ;;  %vm352_vm11 = vcmp.lt.s32.totalorder %v1503_v27, 0  ;;  %v432_v24 = vcvt.s32.f32 %v425_v8  ;;  %v524_v50 = vsel %vm1270_vm9, 0, %v1269_v46  ;;  %v690_v51 = vor.u32 %v689_v48, %v688_v38 }
  0x8e   :  { %vm693_vm12 = vcmp.lt.s32.totalorder %v672_v4, 3  ;;  %vm692_vm13 = vcmp.lt.s32.totalorder %v672_v4, 2  ;;  %vm694_vm14 = vcmp.lt.s32.totalorder %v672_v4, 4  ;;  %v707_v0 = vshll.u32 %v667_v6, 8 }
  0x8f   :  { %v772_v28 = vadd.s32 1, %v1279_v58  ;;  %v624_v49 = vclz %v1272_v63  ;;  %v696_v9 = vsel %vm694_vm14, %v684_v54, 2102212464  ;;  %v699_v22 = vsel %vm691_vm10, %v678_v3, %v681_v43 }
  0x90   :  { %v700_v45 = vsel %vm694_vm14, %v687_v33, 920167782  ;;  %v695_v35 = vsel %vm691_vm10, %v675_v30, %v678_v3  ;;  %v697_v10 = vsel %vm693_vm12, %v681_v43, %v696_v9  ;;  %v703_v12 = vsel %vm691_vm10, %v681_v43, %v684_v54 }
  0x91   :  { %v701_v14 = vsel %vm693_vm12, %v684_v54, %v700_v45  ;;  %v430_v46 = vand.u32 2147483647, %v429_v59  ;;  %v704_v42 = vsel %vm694_vm14, %v690_v51, 1326507024  ;;  %v2419_v37 = vand.u32 2147483647, %v1730_v40 }
  0x92   :  { %v702_v38 = vsel %vm692_vm13, %v699_v22, %v701_v14  ;;  %v529_v52 = vsub.s32 4294967266, %v524_v50  ;;  %v705_v63 = vsel %vm693_vm12, %v687_v33, %v704_v42  ;;  %v525_v30 = vsub.s32 32, %v524_v50 }
  0x93   :  { %v1807_v8 = vmul.u32.u64.low %v707_v0, %v702_v38  ;;  %v1808_v48 = vmul.u32.u64.high %v707_v0, %v702_v38, %v1807_v8  ;;  %v698_v3 = vsel %vm692_vm13, %v695_v35, %v697_v10  ;;  %v706_v6 = vsel %vm692_vm13, %v703_v12, %v705_v63 }
  0x94   :  { %vm773_vm15 = vcmp.gt.s32.totalorder %v772_v28, 0  ;;  %v1273_v54 = vadd.s32 4294967294, %v624_v49  ;;  %v1813_v58 = vmul.u32.u64.low %v707_v0, %v706_v6  ;;  %v1814_v43 = vmul.u32.u64.high %v707_v0, %v706_v6, %v1813_v58 }
  0x95   :  { %v774_v59 = vsel %vm773_vm15, %v772_v28, 0  ;;  %v1821_v33 = vsel %vm297_vm7, %v298_v44, %v1770_v26  ;;  %v1827_v51 = vsel %vm302_vm8, %v1699_v47, %v1773_v2  ;;  %v1830_v4 = vmul.f32 %v1353_v29, %v1741_v60 }
  0x96   :  { %v776_v49 = vand.u32 31, %v774_v59  ;;  %v1835_v28 = vsel %vm352_vm11, %v436_v36, %v1605_v34  ;;  %v530_v9 = vadd.s32 127, %v529_v52  ;;  %v714_v22 = vmul.u32 %v707_v0, %v698_v3 }
  0x97   :  { %v717_v15 = vadd.s32 1, %v1808_v48  ;;  %v1838_v44 = vmul.f32 %v432_v24, %v430_v46  ;;  %v539_v26 = vsub.s32 4, %v1665_v41  ;;  %v769_v2 = vand.u32 8388607, %v2419_v37 }
  0x98   :  { %v777_v45 = vsub.s32 32, %v776_v49  ;;  %v526_v29 = vshll.u32 %v1711_v17, %v524_v50  ;;  %v527_v35 = vshrl.u32 %v509_v25, %v525_v30  ;;  %vm1274_vm0 = vcmp.lt.s32.totalorder %v1273_v54, 0 }
  0x99   :  { %vm716_vm1 = vc.u32 %v1814_v43, %v1807_v8  ;;  %v779_v36 = vshll.u32 %v2428_v11, %v776_v49  ;;  %v782_v0 = vshll.u32 %v2424_v13, %v776_v49  ;;  %v531_v10 = vshll.u32 %v530_v9, 23 }
  0x9a   :  { %v718_v34 = vsel %vm716_vm1, %v717_v15, %v1808_v48  ;;  %v780_v24 = vshrl.u32 %v2424_v13, %v777_v45  ;;  %v612_v14 = vadd.s32 %v1689_v55, %v1703_v57  ;;  %v783_v17 = vshrl.u32 %v2422_v16, %v777_v45 }
  0x9b   :  { %v719_v12 = vadd.s32 %v718_v34, %v714_v22  ;;  %v434_v25 = vxor.u32 2147483648, %v1838_v44  ;;  %v775_v50 = vshrl.u32 %v774_v59, 5  ;;  %v785_v46 = vshll.u32 %v2422_v16, %v776_v49 }
  0x9c   :  { %v786_v38 = vshrl.u32 %v2420_v19, %v777_v45  ;;  %v528_v42 = vor.u32 %v527_v35, %v526_v29  ;;  %v1856_v52 = vsel %vm1274_vm0, 0, %v1273_v54  ;;  %v770_v48 = vor.u32 8388608, %v769_v2 }
  0x9d   :  { %v720_v63 = vadd.s32 536870912, %v719_v12  ;;  %v781_v30 = vor.u32 %v780_v24, %v779_v36  ;;  %v784_v3 = vor.u32 %v783_v17, %v782_v0  ;;  %v788_v6 = vshll.u32 %v2420_v19, %v776_v49 }
  0x9e   :  { %v2437_v55 = vmov 920167782   ;;  %vm304_vm2 = vcmp.eq.f32.partialorder %v1699_v47, 0.0  ;;  %vm455_vm3 = vcmp.lt.s32.totalorder %v1509_v23, 0  ;;  %v532_v58 = vor.u32 4788187, %v531_v10 }
  0x9f   :  { %v789_v57 = vshrl.u32 %v2437_v55, %v777_v45  ;;  %v1862_v59 = vshrl.u32 %v720_v63, 30  ;;  %v791_v9 = vshll.u32 %v2437_v55, %v776_v49  ;;  %v2438_v22 = vmov 1326507024  }
  0xa0   :  { %v792_v54 = vshrl.u32 %v2438_v22, %v777_v45  ;;  %v632_v15 = vsub.s32 4294967266, %v1856_v52  ;;  %v787_v2 = vor.u32 %v786_v38, %v785_v46  ;;  %vm794_vm4 = vcmp.lt.s32.totalorder %v775_v50, 1 }
  0xa1   :  { %v790_v29 = vor.u32 %v789_v57, %v788_v6  ;;  %v722_v35 = vshll.u32 %v1862_v59, 30  ;;  %v778_v34 = vshrl.u32 %v2428_v11, %v777_v45  ;;  %vm796_vm5 = vcmp.lt.s32.totalorder %v775_v50, 3 }
  0xa2   :  { %v793_v36 = vor.u32 %v792_v54, %v791_v9  ;;  %v2439_v24 = vand.u32 2147483647, %v1503_v27  ;;  %vm795_vm7 = vcmp.lt.s32.totalorder %v775_v50, 2  ;;  %vm797_vm8 = vcmp.lt.s32.totalorder %v775_v50, 4 }
  0xa3   :  { %v802_v49 = vsel %vm794_vm4, %v781_v30, %v784_v3  ;;  %v810_v10 = vshll.u32 %v770_v48, 8  ;;  %v2442_v17 = vand.u32 2147483647, %v1509_v23  ;;  %v628_v45 = vsub.s32 32, %v1856_v52 }
  0xa4   :  { %vm1871_vm6 = vcmp.le.f32.partialorder %v2439_v24, 0.7853982  ;;  %v1883_v38 = vsub.s32 %v719_v12, %v722_v35  ;;  %v799_v63 = vsel %vm797_vm8, %v787_v2, 2102212464  ;;  %v803_v6 = vsel %vm797_vm8, %v790_v29, 920167782 }
  0xa5   :  { %vm1878_vm9 = vcmp.le.f32.partialorder %v2442_v17, 0.7853982  ;;  %v535_v57 = vcvt.s32.f32 %v528_v42  ;;  %v633_v9 = vadd.s32 127, %v632_v15  ;;  %v804_v54 = vsel %vm796_vm5, %v787_v2, %v803_v6 }
  0xa6   :  { %v807_v24 = vsel %vm797_vm8, %v793_v36, 1326507024  ;;  %v725_v37 = vsub.s32 0, %v1883_v38  ;;  %v798_v48 = vsel %vm794_vm4, %v778_v34, %v781_v30  ;;  %v805_v17 = vsel %vm795_vm7, %v802_v49, %v804_v54 }
  0xa7   :  { %v806_v19 = vsel %vm794_vm4, %v784_v3, %v787_v2  ;;  %v800_v16 = vsel %vm796_vm5, %v784_v3, %v799_v63  ;;  %v808_v12 = vsel %vm796_vm5, %v790_v29, %v807_v24  ;;  %vm309_vm10 = vcmp.eq.f32.partialorder %v1741_v60, inf }
  0xa8   :  { %v1892_v35 = vmul.u32.u64.low %v810_v10, %v805_v17  ;;  %v1893_v13 = vmul.u32.u64.high %v810_v10, %v805_v17, %v1892_v35  ;;  %v533_v42 = vand.u32 2147483647, %v532_v58  ;;  %v629_v15 = vshll.u32 %v1757_v62, %v1856_v52 }
  0xa9   :  { %v630_v36 = vshrl.u32 %v612_v14, %v628_v45  ;;  %v1276_v30 = vmin.u32 %v725_v37, %v1883_v38  ;;  %v540_v3 = vsel %vm455_vm3, %v539_v26, %v1665_v41  ;;  %v634_v2 = vshll.u32 %v633_v9, 23 }
  0xaa   :  { %v809_v29 = vsel %vm795_vm7, %v806_v19, %v808_v12  ;;  %v868_v34 = vand.u32 2139095040, %v1734_v7  ;;  %v801_v58 = vsel %vm795_vm7, %v798_v48, %v800_v16  ;;  %v2445_v62 = vand.u32 2147483648, %v1699_v47 }
  0xab   :  { %v727_v49 = vclz %v1276_v30  ;;  %v1908_v63 = vmul.u32.u64.low %v810_v10, %v809_v29  ;;  %v1909_v6 = vmul.u32.u64.high %v810_v10, %v809_v29, %v1908_v63  ;;  %v435_v41 = vsel %vm352_vm11, %v434_v25, %v1838_v44 }
  0xac   :  { %v1916_v37 = vsel %vm304_vm2, %v2445_v62, %v1827_v51  ;;  %v820_v19 = vadd.s32 1, %v1893_v13  ;;  %v869_v26 = vshrl.u32 %v868_v34, 23  ;;  %v439_v16 = vsel %vm1871_vm6, 0, %v1835_v28 }
  0xad   :  { %v536_v14 = vmul.f32 %v535_v57, %v533_v42  ;;  %vm558_vm12 = vcmp.lt.s32.totalorder %v1527_v53, 0  ;;  %v631_v50 = vor.u32 %v630_v36, %v629_v15  ;;  %v1277_v52 = vadd.s32 4294967294, %v727_v49 }
  0xae   :  { %v542_v47 = vsel %vm1878_vm9, 0, %v540_v3  ;;  %v635_v51 = vor.u32 4788187, %v634_v2  ;;  %v817_v45 = vmul.u32 %v810_v10, %v801_v58  ;;  %v1283_v9 = vadd.s32 4294967169, %v869_v26 }
  0xaf   :  { %v438_v44 = vsel %vm1871_vm6, %v1503_v27, %v435_v41  ;;  %v715_v25 = vadd.s32 %v1807_v8, %v1814_v43  ;;  %vm1278_vm11 = vcmp.lt.s32.totalorder %v1277_v52, 0  ;;  %vm819_vm13 = vc.u32 %v1909_v6, %v1892_v35 }
  0xb0   :  { %v642_v28 = vsub.s32 4, %v1739_v31  ;;  %v730_v57 = vsel %vm1278_vm11, 0, %v1277_v52  ;;  %v821_v54 = vsel %vm819_vm13, %v820_v19, %v1893_v13  ;;  %v875_v24 = vadd.s32 1, %v1283_v9 }
  0xb1   :  { %v537_v48 = vxor.u32 2147483648, %v536_v14  ;;  %v638_v10 = vcvt.s32.f32 %v631_v50  ;;  %v731_v17 = vsub.s32 32, %v730_v57  ;;  %v735_v12 = vsub.s32 4294967266, %v730_v57 }
  0xb2   :  { %v2446_v0 = vand.u32 2147483647, %v1527_v53  ;;  %v636_v8 = vand.u32 2147483647, %v635_v51  ;;  %v822_v43 = vadd.s32 %v821_v54, %v817_v45  ;;  %v2426_v15 = vand.u32 2147483647, %v1734_v7 }
  0xb3   :  { %vm876_vm15 = vcmp.gt.s32.totalorder %v875_v24, 0  ;;  %v732_v36 = vshll.u32 %v1883_v38, %v730_v57  ;;  %v733_v30 = vshrl.u32 %v715_v25, %v731_v17  ;;  %v736_v13 = vadd.s32 127, %v735_v12 }
  0xb4   :  { %vm1939_vm14 = vcmp.le.f32.partialorder %v2446_v0, 0.7853982  ;;  %v877_v3 = vsel %vm876_vm15, %v875_v24, 0  ;;  %v1949_v2 = vsel %vm309_vm10, %v1741_v60, %v1830_v4  ;;  %1354 = vcosq.f32 %v438_v44 }
  0xb5   :  { %v823_v29 = vadd.s32 536870912, %v822_v43  ;;  %v879_v34 = vand.u32 31, %v877_v3  ;;  %1356 = vsinq.f32 %v438_v44  ;;  %v1951_v49 = vand.u32 3, %v439_v16 }
  0xb6   :  { %v1953_v58 = vand.u32 3, %v542_v47  ;;  %v737_v63 = vshll.u32 %v736_v13, 23  ;;  %v1958_v38 = vsel %vm558_vm12, %v642_v28, %v1739_v31  ;;  %v872_v4 = vand.u32 8388607, %v2426_v15 }
  0xb7   :  { %v1960_v62 = vshrl.u32 %v823_v29, 30  ;;  %v880_v41 = vsub.s32 32, %v879_v34  ;;  %v538_v19 = vsel %vm455_vm3, %v537_v48, %v536_v14  ;;  %v639_v26 = vmul.f32 %v638_v10, %v636_v8 }
  0xb8   :  { %v734_v16 = vor.u32 %v733_v30, %v732_v36  ;;  %v971_v50 = vand.u32 2139095040, %v1736_v39  ;;  %v738_v52 = vor.u32 4788187, %v737_v63  ;;  %v882_v47 = vshll.u32 %v2428_v11, %v879_v34 }
  0xb9   :  { %2449 = vst [vmem:[#allocation10_spill] sm:$0xff] %v1960_v62  ;;  %v2450_v51 = vmov 2475754826   ;;  %v878_v9 = vshrl.u32 %v877_v3, 5  ;;  %v2451_v44 = vmov 2131351028   ;;  %v892_v54 = vshrl.u32 %v2437_v55, %v880_v41 }
  0xba   :  { %v883_v45 = vshrl.u32 %v2450_v51, %v880_v41  ;;  %v885_v31 = vshll.u32 %v2450_v51, %v879_v34  ;;  %v886_v25 = vshrl.u32 %v2451_v44, %v880_v41  ;;  %v2452_v28 = vmov 2102212464  }
  0xbb   :  { %v891_v57 = vshll.u32 %v2452_v28, %v879_v34  ;;  %v825_v14 = vshll.u32 %v1960_v62, 30  ;;  %v873_v24 = vor.u32 8388608, %v872_v4  ;;  %v888_v48 = vshll.u32 %v2451_v44, %v879_v34 }
  0xbc   :  { %v889_v10 = vshrl.u32 %v2452_v28, %v880_v41  ;;  %v645_v17 = vsel %vm1939_vm14, 0, %v1958_v38  ;;  %v741_v12 = vcvt.s32.f32 %v734_v16  ;;  %v894_v0 = vshll.u32 %v2437_v55, %v879_v34 }
  0xbd   :  { %v972_v8 = vshrl.u32 %v971_v50, 23  ;;  %v739_v36 = vand.u32 2147483647, %v738_v52  ;;  %v884_v30 = vor.u32 %v883_v45, %v882_v47  ;;  %v887_v13 = vor.u32 %v886_v25, %v885_v31 }
  0xbe   :  { %v895_v3 = vshrl.u32 %v2438_v22, %v880_v41  ;;  %v541_v29 = vsel %vm1878_vm9, %v1509_v23, %v538_v19  ;;  %v640_v63 = vxor.u32 2147483648, %v639_v26  ;;  %vm661_vm0 = vcmp.lt.s32.totalorder %v1695_v61, 0  ;;  %v1985_v15 = vpop.eup %1354 }
  0xbf   :  { %v893_v4 = vor.u32 %v892_v54, %v891_v57  ;;  %vm897_vm1 = vcmp.lt.s32.totalorder %v878_v9, 1  ;;  %v1987_v38 = vsub.s32 %v822_v43, %v825_v14  ;;  %v881_v34 = vshrl.u32 %v2428_v11, %v880_v41  ;;  %v1992_v52 = vpop.eup %1356 }
  0xc0   :  { %v890_v16 = vor.u32 %v889_v10, %v888_v48  ;;  %v1990_v50 = vshll.u32 %v873_v24, 8  ;;  %vm448_vm2 = vcmp.eq.s32.totalorder %v1951_v49, 2  ;;  %v896_v46 = vor.u32 %v895_v3, %v894_v0 }
  0xc1   :  { %vm899_vm3 = vcmp.lt.s32.totalorder %v878_v9, 3  ;;  %vm900_vm4 = vcmp.lt.s32.totalorder %v878_v9, 4  ;;  %v1287_v19 = vadd.s32 4294967169, %v972_v8  ;;  %v742_v47 = vmul.f32 %v741_v12, %v739_v36 }
  0xc2   :  { %vm898_vm5 = vcmp.lt.s32.totalorder %v878_v9, 2  ;;  %v902_v45 = vsel %vm900_vm4, %v890_v16, 2102212464  ;;  %v905_v43 = vsel %vm897_vm1, %v884_v30, %v887_v13  ;;  %v449_v31 = vxor.u32 2147483648, %v1985_v15 }
  0xc3   :  { %1358 = vcosq.f32 %v541_v29  ;;  %v641_v41 = vsel %vm558_vm12, %v640_v63, %v639_v26  ;;  %v906_v25 = vsel %vm900_vm4, %v893_v4, 920167782  ;;  %v828_v57 = vsub.s32 0, %v1987_v38 }
  0xc4   :  { %v901_v54 = vsel %vm897_vm1, %v881_v34, %v884_v30  ;;  %v907_v14 = vsel %vm899_vm3, %v890_v16, %v906_v25  ;;  %v909_v24 = vsel %vm897_vm1, %v887_v13, %v890_v16  ;;  %v903_v48 = vsel %vm899_vm3, %v887_v13, %v902_v45 }
  0xc5   :  { %v908_v10 = vsel %vm898_vm5, %v905_v43, %v907_v14  ;;  %v910_v12 = vsel %vm900_vm4, %v896_v46, 1326507024  ;;  %v978_v0 = vadd.s32 1, %v1287_v19  ;;  %v743_v8 = vxor.u32 2147483648, %v742_v47 }
  0xc6   :  { %v911_v26 = vsel %vm899_vm3, %v893_v4, %v910_v12  ;;  %v2010_v36 = vmul.u32.u64.low %v1990_v50, %v908_v10  ;;  %v2011_v3 = vmul.u32.u64.high %v1990_v50, %v908_v10, %v2010_v36  ;;  %1360 = vsinq.f32 %v541_v29 }
  0xc7   :  { %v912_v30 = vsel %vm898_vm5, %v909_v24, %v911_v26  ;;  %v2427_v63 = vand.u32 2147483647, %v1736_v39  ;;  %vm979_vm6 = vcmp.gt.s32.totalorder %v978_v0, 0  ;;  %vm445_vm7 = vcmp.eq.s32.totalorder %v1951_v49, 0 }
  0xc8   :  { %v644_v13 = vsel %vm1939_vm14, %v1527_v53, %v641_v41  ;;  %v745_v34 = vsub.s32 4, %v1862_v59  ;;  %v904_v4 = vsel %vm898_vm5, %v901_v54, %v903_v48  ;;  %v980_v16 = vsel %vm979_vm6, %v978_v0, 0 }
  0xc9   :  { %v1280_v46 = vmin.u32 %v828_v57, %v1987_v38  ;;  %v2024_v29 = vmul.u32.u64.low %v1990_v50, %v912_v30  ;;  %v2025_v19 = vmul.u32.u64.high %v1990_v50, %v912_v30, %v2024_v29  ;;  %v982_v45 = vand.u32 31, %v980_v16 }
  0xca   :  { %v2027_v43 = vand.u32 3, %v645_v17  ;;  %v2453_v25 = vand.u32 2147483647, %v1695_v61  ;;  %v744_v42 = vsel %vm661_vm0, %v743_v8, %v742_v47  ;;  %v923_v9 = vadd.s32 1, %v2011_v3 }
  0xcb   :  { %1362 = vcosq.f32 %v644_v13  ;;  %v920_v41 = vmul.u32 %v1990_v50, %v904_v4  ;;  %v975_v57 = vand.u32 8388607, %v2427_v63  ;;  %v983_v54 = vsub.s32 32, %v982_v45 }
  0xcc   :  { %vm2031_vm8 = vcmp.le.f32.partialorder %v2453_v25, 0.7853982  ;;  %v446_v17 = vxor.u32 2147483648, %v1992_v52  ;;  %v450_v24 = vsel %vm448_vm2, %v449_v31, %v1992_v52  ;;  %1364 = vsinq.f32 %v644_v13 }
  0xcd   :  { %v746_v47 = vsel %vm661_vm0, %v745_v34, %v1862_v59  ;;  %v1359_v48 = vpop.eup %1358  ;;  %vm444_vm9 = vcmp.lt.s32.totalorder %v1951_v49, 2  ;;  %vm551_vm10 = vcmp.eq.s32.totalorder %v1953_v58, 2  ;;  %v747_v50 = vsel %vm2031_vm8, %v1695_v61, %v744_v42 }
  0xce   :  { %v830_v10 = vclz %v1280_v46  ;;  %vm922_vm12 = vc.u32 %v2025_v19, %v2010_v36  ;;  %v985_v52 = vshll.u32 %v2428_v11, %v982_v45  ;;  %vm548_vm11 = vcmp.eq.s32.totalorder %v1953_v58, 0 }
  0xcf   :  { %v924_v31 = vsel %vm922_vm12, %v923_v9, %v2011_v3  ;;  %v986_v59 = vshrl.u32 %v2450_v51, %v983_v54  ;;  %v988_v12 = vshll.u32 %v2450_v51, %v982_v45  ;;  %v994_v0 = vshll.u32 %v2452_v28, %v982_v45 }
  0xd0   :  { %v925_v8 = vadd.s32 %v924_v31, %v920_v41  ;;  %v976_v26 = vor.u32 8388608, %v975_v57  ;;  %v2061_v30 = vshrl.u32 %v980_v16, 5  ;;  %v989_v13 = vshrl.u32 %v2451_v44, %v983_v54  ;;  %v1361_v3 = vpop.eup %1360 }
  0xd1   :  { %1366 = vcosq.f32 %v747_v50  ;;  %v991_v34 = vshll.u32 %v2451_v44, %v982_v45  ;;  %v992_v4 = vshrl.u32 %v2452_v28, %v983_v54  ;;  %v995_v46 = vshrl.u32 %v2437_v55, %v983_v54 }
  0xd2   :  { %1368 = vsinq.f32 %v747_v50  ;;  %v1281_v29 = vadd.s32 4294967294, %v830_v10  ;;  %v926_v25 = vadd.s32 536870912, %v925_v8  ;;  %v997_v42 = vshll.u32 %v2437_v55, %v982_v45 }
  0xd3   :  { %v987_v9 = vor.u32 %v986_v59, %v985_v52  ;;  %v990_v41 = vor.u32 %v989_v13, %v988_v12  ;;  %v996_v57 = vor.u32 %v995_v46, %v994_v0  ;;  %v998_v16 = vshrl.u32 %v2438_v22, %v983_v54 }
  0xd4   :  { %v447_v31 = vsel %vm445_vm7, %v1985_v15, %v446_v17  ;;  %v552_v63 = vxor.u32 2147483648, %v1359_v48  ;;  %v2072_v11 = vshrl.u32 %v926_v25, 30  ;;  %vm1000_vm13 = vcmp.lt.s32.totalorder %v2061_v30, 1 }
  0xd5   :  { %v549_v62 = vxor.u32 2147483648, %v1361_v3  ;;  %v748_v50 = vsel %vm2031_vm8, 0, %v746_v47  ;;  %v993_v10 = vor.u32 %v992_v4, %v991_v34  ;;  %vm1003_vm14 = vcmp.lt.s32.totalorder %v2061_v30, 4  ;;  %v1363_v45 = vpop.eup %1362 }
  0xd6   :  { %2456 = vst [vmem:[#allocation11_spill] sm:$0xff] %v2072_v11  ;;  %vm1282_vm15 = vcmp.lt.s32.totalorder %v1281_v29, 0  ;;  %v928_v52 = vshll.u32 %v2072_v11, 30  ;;  %vm1002_vm0 = vcmp.lt.s32.totalorder %v2061_v30, 3  ;;  %v2080_v59 = vshll.u32 %v976_v26, 8  ;;  %v1365_v15 = vpop.eup %1364 }
  0xd7   :  { %vm651_vm1 = vcmp.eq.s32.totalorder %v2027_v43, 0  ;;  %v999_v17 = vor.u32 %v998_v16, %v997_v42  ;;  %vm1001_vm2 = vcmp.lt.s32.totalorder %v2061_v30, 2  ;;  %v1008_v14 = vsel %vm1000_vm13, %v987_v9, %v990_v41 }
  0xd8   :  { %v1009_v47 = vsel %vm1003_vm14, %v996_v57, 920167782  ;;  %vm547_vm3 = vcmp.lt.s32.totalorder %v1953_v58, 2  ;;  %vm654_vm4 = vcmp.eq.s32.totalorder %v2027_v43, 2  ;;  %v2090_v12 = vand.u32 3, %v748_v50 }
  0xd9   :  { %v2092_v0 = vsub.s32 %v925_v8, %v928_v52  ;;  %v2457_v26 = vmov 683565275   ;;  %v2097_v34 = vsel %vm444_vm9, %v447_v31, %v450_v24  ;;  %v553_v4 = vsel %vm551_vm10, %v552_v63, %v1361_v3 }
  0xda   :  { %v984_v13 = vshrl.u32 %v2457_v26, %v983_v54  ;;  %v1005_v46 = vsel %vm1003_vm14, %v993_v10, 2102212464  ;;  %v1010_v25 = vsel %vm1002_vm0, %v993_v10, %v1009_v47  ;;  %v550_v42 = vsel %vm548_vm11, %v1359_v48, %v549_v62 }
  0xdb   :  { %vm650_vm5 = vcmp.lt.s32.totalorder %v2027_v43, 2  ;;  %v2109_v54 = vsel %vm1282_vm15, 0, %v1281_v29  ;;  %v931_v49 = vsub.s32 0, %v2092_v0  ;;  %v1011_v24 = vsel %vm1001_vm2, %v1008_v14, %v1010_v25  ;;  %v1367_v63 = vpop.eup %1366 }
  0xdc   :  { %vm311_vm6 = vcmp.eq.f32.partialorder %v1741_v60, 0.0  ;;  %v1012_v8 = vsel %vm1000_vm13, %v990_v41, %v993_v10  ;;  %v1013_v3 = vsel %vm1003_vm14, %v999_v17, 1326507024  ;;  %v1369_v29 = vpop.eup %1368  ;;  %vm442_vm7 = vweird.f32 %v1503_v27 }
  0xdd   :  { %v2120_v62 = vmul.u32.u64.low %v2080_v59, %v1011_v24  ;;  %v2121_v48 = vmul.u32.u64.high %v2080_v59, %v1011_v24, %v2120_v62  ;;  %vm754_vm8 = vcmp.eq.s32.totalorder %v2090_v12, 0  ;;  %v1284_v16 = vmin.u32 %v931_v49, %v2092_v0 }
  0xde   :  { %v1004_v31 = vsel %vm1000_vm13, %v984_v13, %v987_v9  ;;  %v1006_v50 = vsel %vm1002_vm0, %v990_v41, %v1005_v46  ;;  %vm545_vm9 = vweird.f32 %v1509_v23  ;;  %vm648_vm10 = vweird.f32 %v1527_v53 }
  0xdf   :  { %v655_v10 = vxor.u32 2147483648, %v1363_v45  ;;  %v838_v52 = vsub.s32 4294967266, %v2109_v54  ;;  %v1014_v17 = vsel %vm1002_vm0, %v996_v57, %v1013_v3  ;;  %v1074_v14 = vand.u32 2139095040, %v1744_v32 }
  0xe0   :  { %v652_v47 = vxor.u32 2147483648, %v1365_v15  ;;  %vm757_vm12 = vcmp.eq.s32.totalorder %v2090_v12, 2  ;;  %v933_v25 = vclz %v1284_v16  ;;  %v1015_v9 = vsel %vm1001_vm2, %v1012_v8, %v1014_v17 }
  0xe1   :  { %v1007_v41 = vsel %vm1001_vm2, %v1004_v31, %v1006_v50  ;;  %v2143_v13 = vmul.u32.u64.low %v2080_v59, %v1015_v9  ;;  %v2144_v46 = vmul.u32.u64.high %v2080_v59, %v1015_v9, %v2143_v13  ;;  %v1075_v49 = vshrl.u32 %v1074_v14, 23 }
  0xe2   :  { %v755_v24 = vxor.u32 2147483648, %v1369_v29  ;;  %v758_v11 = vxor.u32 2147483648, %v1367_v63  ;;  %v818_v57 = vadd.s32 %v1892_v35, %v1909_v6  ;;  %v834_v3 = vsub.s32 32, %v2109_v54 }
  0xe3   :  { %v656_v16 = vsel %vm654_vm4, %v655_v10, %v1365_v15  ;;  %v839_v39 = vadd.s32 127, %v838_v52  ;;  %v1026_v8 = vadd.s32 1, %v2121_v48  ;;  %v1291_v30 = vadd.s32 4294967169, %v1075_v49 }
  0xe4   :  { %v653_v31 = vsel %vm651_vm1, %v1363_v45, %v652_v47  ;;  %v1285_v50 = vadd.s32 4294967294, %v933_v25  ;;  %v1023_v17 = vmul.u32 %v2080_v59, %v1007_v41  ;;  %v1071_v14 = vand.u32 2147483647, %v1744_v32 }
  0xe5   :  { %v554_v35 = vsel %vm547_vm3, %v550_v42, %v553_v4  ;;  %vm753_vm11 = vcmp.lt.s32.totalorder %v2090_v12, 2  ;;  %vm1025_vm13 = vc.u32 %v2144_v46, %v2120_v62  ;;  %v1081_v6 = vadd.s32 1, %v1291_v30 }
  0xe6   :  { %v756_v15 = vsel %vm754_vm8, %v1367_v63, %v755_v24  ;;  %v759_v45 = vsel %vm757_vm12, %v758_v11, %v1369_v29  ;;  %v835_v59 = vshll.u32 %v1987_v38, %v2109_v54  ;;  %v836_v10 = vshrl.u32 %v818_v57, %v834_v3 }
  0xe7   :  { %v657_v58 = vsel %vm650_vm5, %v653_v31, %v656_v16  ;;  %v840_v4 = vshll.u32 %v839_v39, 23  ;;  %v1027_v42 = vsel %vm1025_vm13, %v1026_v8, %v2121_v48  ;;  %vm1082_vm14 = vcmp.gt.s32.totalorder %v1081_v6, 0 }
  0xe8   :  { %v2458_v52 = vand.u32 2147483648, %v1741_v60  ;;  %vm1286_vm15 = vcmp.lt.s32.totalorder %v1285_v50, 0  ;;  %v1028_v47 = vadd.s32 %v1027_v42, %v1023_v17  ;;  %v1078_v11 = vand.u32 8388607, %v1071_v14 }
  0xe9   :  { %v452_v38 = vsel %vm442_vm7, nan, %v2097_v34  ;;  %vm751_vm0 = vweird.f32 %v1695_v61  ;;  %v760_v39 = vsel %vm753_vm11, %v756_v15, %v759_v45  ;;  %v1083_v43 = vsel %vm1082_vm14, %v1081_v6, 0 }
  0xea   :  { %v313_v63 = vsel %vm311_vm6, %v2458_v52, %v1949_v2  ;;  %v555_v54 = vsel %vm545_vm9, nan, %v554_v35  ;;  %v658_v60 = vsel %vm648_vm10, nan, %v657_v58  ;;  %v2187_v2 = vor.u32 %v836_v10, %v835_v59 }
  0xeb   :  { %v1029_v48 = vadd.s32 536870912, %v1028_v47  ;;  %v2189_v29 = vor.u32 4788187, %v840_v4  ;;  %v921_v27 = vadd.s32 %v2010_v36, %v2025_v19  ;;  %v2193_v34 = vsel %vm1286_vm15, 0, %v1285_v50 }
  0xec   :  { %v1085_v61 = vand.u32 31, %v1083_v43  ;;  %v761_v12 = vsel %vm751_vm0, nan, %v760_v39  ;;  %v1079_v9 = vor.u32 8388608, %v1078_v11  ;;  %v1174_v23 = vmul.f32 %v452_v38, %v1765_v18 }
  0xed   :  { %v2195_v25 = vshrl.u32 %v1029_v48, 30  ;;  %v1175_v53 = vmul.f32 %v555_v54, %v1821_v33  ;;  %v1176_v13 = vmul.f32 %v658_v60, %v1916_v37  ;;  %v941_v49 = vsub.s32 4294967266, %v2193_v34 }
  0xee   :  { %v1086_v41 = vsub.s32 32, %v1085_v61  ;;  %v1084_v57 = vshrl.u32 %v1083_v43, 5  ;;  %v1088_v36 = vshll.u32 %v2457_v26, %v1085_v61  ;;  %v1091_v3 = vshll.u32 %v2450_v51, %v1085_v61 }
  0xef   :  { %v1031_v24 = vshll.u32 %v2195_v25, 30  ;;  %v1097_v18 = vshll.u32 %v2452_v28, %v1085_v61  ;;  %v1094_v33 = vshll.u32 %v2451_v44, %v1085_v61  ;;  %v2212_v31 = vshll.u32 %v1079_v9, 8 }
  0xf0   :  { %v1089_v19 = vshrl.u32 %v2450_v51, %v1086_v41  ;;  %v1092_v16 = vshrl.u32 %v2451_v44, %v1086_v41  ;;  %v1095_v37 = vshrl.u32 %v2452_v28, %v1086_v41  ;;  %v1098_v30 = vshrl.u32 %v2437_v55, %v1086_v41 }
  0xf1   :  { %v2207_v8 = vsub.s32 %v1028_v47, %v1031_v24  ;;  %v1177_v50 = vmul.f32 %v761_v12, %v313_v63  ;;  %v2214_v17 = vmul.f32 0.1, %v1174_v23  ;;  %v2216_v35 = vmul.f32 0.1, %v1175_v53 }
  0xf2   :  { %v937_v51 = vsub.s32 32, %v2193_v34  ;;  %v938_v6 = vshll.u32 %v2092_v0, %v2193_v34  ;;  %v1090_v45 = vor.u32 %v1089_v19, %v1088_v36  ;;  %v1093_v44 = vor.u32 %v1092_v16, %v1091_v3 }
  0xf3   :  { %v1034_v15 = vsub.s32 0, %v2207_v8  ;;  %v1099_v59 = vor.u32 %v1098_v30, %v1097_v18  ;;  %v1100_v28 = vshll.u32 %v2437_v55, %v1085_v61  ;;  %v1101_v10 = vshrl.u32 %v2438_v22, %v1086_v41 }
  0xf4   :  { %v942_v58 = vadd.s32 127, %v941_v49  ;;  %v1096_v42 = vor.u32 %v1095_v37, %v1094_v33  ;;  %vm1103_vm1 = vcmp.lt.s32.totalorder %v1084_v57, 1  ;;  %v1087_v52 = vshrl.u32 %v2457_v26, %v1086_v41 }
  0xf5   :  { %v1288_v4 = vmin.u32 %v1034_v15, %v2207_v8  ;;  %v1102_v63 = vor.u32 %v1101_v10, %v1100_v28  ;;  %vm1105_vm2 = vcmp.lt.s32.totalorder %v1084_v57, 3  ;;  %v1186_v47 = vmul.f32 0.1, %v1176_v13 }
  0xf6   :  { %v939_v0 = vshrl.u32 %v921_v27, %v937_v51  ;;  %vm1104_vm3 = vcmp.lt.s32.totalorder %v1084_v57, 2  ;;  %vm1106_vm4 = vcmp.lt.s32.totalorder %v1084_v57, 4  ;;  %v1111_v39 = vsel %vm1103_vm1, %v1090_v45, %v1093_v44 }
  0xf7   :  { %v1036_v11 = vclz %v1288_v4  ;;  %v1108_v38 = vsel %vm1106_vm4, %v1096_v42, 2102212464  ;;  %v1112_v55 = vsel %vm1106_vm4, %v1099_v59, 920167782  ;;  %v1187_v43 = vmul.f32 0.1, %v1177_v50 }
  0xf8   :  { %v943_v22 = vshll.u32 %v942_v58, 23  ;;  %v1113_v60 = vsel %vm1105_vm2, %v1096_v42, %v1112_v55  ;;  %v1115_v48 = vsel %vm1103_vm1, %v1093_v44, %v1096_v42  ;;  %v1107_v26 = vsel %vm1103_vm1, %v1087_v52, %v1090_v45 }
  0xf9   :  { %v1289_v54 = vadd.s32 4294967294, %v1036_v11  ;;  %v1109_v34 = vsel %vm1105_vm2, %v1093_v44, %v1108_v38  ;;  %v1114_v27 = vsel %vm1104_vm3, %v1111_v39, %v1113_v60  ;;  %v1116_v61 = vsel %vm1106_vm4, %v1102_v63, 1326507024  ;;  %v1182_v63 = vld [vmem:[#allocation3] sm:$0xff] }
  0xfa   :  { %v1117_v12 = vsel %vm1105_vm2, %v1099_v59, %v1116_v61  ;;  %v2234_v9 = vmul.u32.u64.low %v2212_v31, %v1114_v27  ;;  %v2235_v23 = vmul.u32.u64.high %v2212_v31, %v1114_v27, %v2234_v9  ;;  %v1024_v41 = vadd.s32 %v2120_v62, %v2144_v46 }
  0xfb   :  { %vm1290_vm5 = vcmp.lt.s32.totalorder %v1289_v54, 0  ;;  %v1118_v13 = vsel %vm1104_vm3, %v1115_v48, %v1117_v12  ;;  %v1455_v49 = vmov 1983009808   ;;  %v1110_v3 = vsel %vm1104_vm3, %v1107_v26, %v1109_v34 }
  0xfc   :  { %v1039_v53 = vsel %vm1290_vm5, 0, %v1289_v54  ;;  %v1203_v24 = vunpack.c.l.s4 %v1455_v49  ;;  %v1200_v16 = vcombine.low %v2214_v17, %v2216_v35  ;;  %v940_v18 = vor.u32 %v939_v0, %v938_v6 }
  0xfd   :  { %v1040_v36 = vsub.s32 32, %v1039_v53  ;;  %v1044_v19 = vsub.s32 4294967266, %v1039_v53  ;;  %v2245_v33 = vmul.u32.u64.low %v2212_v31, %v1118_v13  ;;  %v2246_v37 = vmul.u32.u64.high %v2212_v31, %v1118_v13, %v2245_v33 }
  0xfe   :  { %v1204_v30 = vunpack.c.0.s8 %v1203_v24  ;;  %v944_v50 = vor.u32 4788187, %v943_v22  ;;  %v1129_v46 = vadd.s32 1, %v2235_v23  ;;  %v1201_v51 = vcombine.low %v1186_v47, %v1187_v43 }
  0xff   :  { %v1045_v62 = vadd.s32 127, %v1044_v19  ;;  %v1041_v15 = vshll.u32 %v2207_v8, %v1039_v53  ;;  %v1042_v45 = vshrl.u32 %v1024_v41, %v1040_v36  ;;  %v1126_v57 = vmul.u32 %v2212_v31, %v1110_v3 }
 0x100   :  { %v2252_v44 = vsub.s32 %v1204_v30, %v1484_v1  ;;  %v842_v17 = vand.u32 2147483647, %v2189_v29  ;;  %v844_v35 = vcvt.s32.f32 %v2187_v2  ;;  %v2459_v59 = vshrl.u32 %v1708_v56, 9 }
 0x101   :  { %v1046_v6 = vshll.u32 %v1045_v62, 23  ;;  %v2460_v10 = vsub.f32 2.0, %v1719_v21  ;;  %vm1128_vm6 = vc.u32 %v2246_v37, %v2234_v9  ;;  %v252_v31 = vsub.f32 2.0, %v1726_v5 }
 0x102   :  { %v213_v28 = vor.u32 1065353216, %v2459_v59  ;;  %v1208_v8 = vrot.slane %v1200_v16, %v2252_v44  ;;  %v945_v1 = vand.u32 2147483647, %v944_v50  ;;  %v947_v58 = vcvt.s32.f32 %v940_v18  ;;  %v2467_v16 = vld [vmem:[#allocation9_spill] sm:$0xff]  ;;  %v2468_v50 = vld [vmem:[#allocation10_spill] sm:$0xff] }
 0x103   :  { %1370 = vlog2.f32 %v2460_v10  ;;  %v1130_v29 = vsel %vm1128_vm6, %v1129_v46, %v2235_v23  ;;  %v1043_v4 = vor.u32 %v1042_v45, %v1041_v15  ;;  %v1047_v2 = vor.u32 4788187, %v1046_v6  ;;  %v2472_v15 = vld [vmem:[#allocation11_spill] sm:$0xff] }
 0x104   :  { %v1131_v42 = vadd.s32 %v1130_v29, %v1126_v57  ;;  %v1215_v56 = vrot.slane %v1201_v51, %v2252_v44  ;;  %v845_v52 = vmul.f32 %v844_v35, %v842_v17  ;;  %v253_v0 = vsub.f32 2.0, %v213_v28 }
 0x105   :  { %1372 = vlog2.f32 %v252_v31  ;;  %v948_v11 = vmul.f32 %v947_v58, %v945_v1  ;;  %v1048_v38 = vand.u32 2147483647, %v1047_v2  ;;  %v1050_v39 = vcvt.s32.f32 %v1043_v4 }
 0x106   :  { %v1132_v21 = vadd.s32 536870912, %v1131_v42  ;;  %v1216_v47 = vcombine.low %v1208_v8, %v1215_v56  ;;  %v846_v43 = vxor.u32 2147483648, %v845_v52  ;;  %v271_v22 = vmul.f32 0.6931472, %v1795_v20 }
 0x107   :  { %vm764_vm7 = vcmp.lt.s32.totalorder %v1730_v40, 0  ;;  %v949_v60 = vxor.u32 2147483648, %v948_v11  ;;  %1374 = vlog2.f32 %v253_v0  ;;  %vm867_vm8 = vcmp.lt.s32.totalorder %v1734_v7, 0 }
 0x108   :  { %v2266_v55 = vshrl.u32 %v1132_v21, 30  ;;  %v1236_v5 = vadd.f32 %v1216_v47, %v1182_v63  ;;  %v1051_v26 = vmul.f32 %v1050_v39, %v1048_v38  ;;  %v2461_v27 = vand.u32 2147483647, %v1730_v40 }
 0x109   :  { %v847_v20 = vsel %vm764_vm7, %v846_v43, %v845_v52  ;;  %v2280_v12 = vmul.f32 -2.0, %v271_v22  ;;  %v2464_v53 = vand.u32 2147483647, %v1734_v7  ;;  %v950_v49 = vsel %vm867_vm8, %v949_v60, %v948_v11 }
 0x10a   :  { %v1134_v54 = vshll.u32 %v2266_v55, 30  ;;  %1238 = vst [vmem:[#allocation6] sm:$0xff] %v1236_v5  ;;  %vm2274_vm9 = vcmp.le.f32.partialorder %v2461_v27, 0.7853982  ;;  %v1052_v36 = vxor.u32 2147483648, %v1051_v26  ;;  %vm970_vm12 = vcmp.lt.s32.totalorder %v2467_v16, 0 }
 0x10b   :  { %vm2284_vm10 = vcmp.le.f32.partialorder %v2464_v53, 0.7853982  ;;  %v850_v24 = vsel %vm2274_vm9, %v1730_v40, %v847_v20  ;;  %1376 = vrsqrt.f32 %v2280_v12  ;;  %v848_v62 = vsub.s32 4, %v2468_v50 }
 0x10c   :  { %v1135_v34 = vsub.s32 %v1131_v42, %v1134_v54  ;;  %v953_v18 = vsel %vm2284_vm10, %v1734_v7, %v950_v49  ;;  %1378 = vcosq.f32 %v850_v24  ;;  %v2469_v46 = vand.u32 2147483647, %v2467_v16 }
 0x10d   :  { %v1371_v48 = vpop.eup %1370  ;;  %1380 = vsinq.f32 %v850_v24  ;;  %v951_v45 = vsub.s32 4, %v2472_v15  ;;  %v1053_v57 = vsel %vm970_vm12, %v1052_v36, %v1051_v26  ;;  %v1127_v59 = vadd.s32 %v2234_v9, %v2246_v37 }
 0x10e   :  { %v1137_v23 = vsub.s32 0, %v1135_v34  ;;  %v273_v41 = vmul.f32 0.6931472, %v1371_v48  ;;  %vm2303_vm11 = vcmp.le.f32.partialorder %v2469_v46, 0.7853982  ;;  %1382 = vcosq.f32 %v953_v18 }
 0x10f   :  { %v1373_v3 = vpop.eup %1372  ;;  %1384 = vsinq.f32 %v953_v18  ;;  %v849_v28 = vsel %vm764_vm7, %v848_v62, %v2468_v50  ;;  %v1056_v10 = vsel %vm2303_vm11, %v2467_v16, %v1053_v57  ;;  %v952_v31 = vsel %vm867_vm8, %v951_v45, %v2472_v15 }
 0x110   :  { %v1292_v19 = vmin.u32 %v1137_v23, %v1135_v34  ;;  %v2298_v30 = vmul.f32 -2.0, %v273_v41  ;;  %v275_v35 = vmul.f32 0.6931472, %v1373_v3  ;;  %v851_v4 = vsel %vm2274_vm9, 0, %v849_v28 }
 0x111   :  { %v1375_v6 = vpop.eup %1374  ;;  %v954_v56 = vsel %vm2284_vm10, 0, %v952_v31  ;;  %v1054_v52 = vsub.s32 4, %v2195_v25  ;;  %v855_v38 = vand.u32 3, %v851_v4  ;;  %vm316_vm14 = vcmp.eq.f32.partialorder %v2280_v12, inf }
 0x112   :  { %v1139_v33 = vclz %v1292_v19  ;;  %1386 = vrsqrt.f32 %v2298_v30  ;;  %v277_v9 = vmul.f32 0.6931472, %v1375_v6  ;;  %v2322_v37 = vmul.f32 -2.0, %v275_v35 }
 0x113   :  { %1388 = vcosq.f32 %v1056_v10  ;;  %v958_v5 = vand.u32 3, %v954_v56  ;;  %v1055_v60 = vsel %vm970_vm12, %v1054_v52, %v2195_v25  ;;  %v319_v26 = vand.u32 2147483648, %v2280_v12 }
 0x114   :  { %v1293_v17 = vadd.s32 4294967294, %v1139_v33  ;;  %1390 = vsinq.f32 %v1056_v10  ;;  %v2329_v11 = vmul.f32 -2.0, %v277_v9  ;;  %vm323_vm15 = vcmp.eq.f32.partialorder %v2298_v30, inf }
 0x115   :  { %v1377_v63 = vpop.eup %1376  ;;  %1392 = vrsqrt.f32 %v2322_v37  ;;  %vm857_vm0 = vcmp.eq.s32.totalorder %v855_v38, 0  ;;  %vm860_vm1 = vcmp.eq.s32.totalorder %v855_v38, 2  ;;  %vm318_vm2 = vcmp.eq.f32.partialorder %v2280_v12, 0.0 }
 0x116   :  { %vm1294_vm13 = vcmp.lt.s32.totalorder %v1293_v17, 0  ;;  %v1379_v0 = vpop.eup %1378  ;;  %1394 = vrsqrt.f32 %v2329_v11  ;;  %vm960_vm3 = vcmp.eq.s32.totalorder %v958_v5, 0  ;;  %v1057_v25 = vsel %vm2303_vm11, 0, %v1055_v60 }
 0x117   :  { %v1142_v8 = vsel %vm1294_vm13, 0, %v1293_v17  ;;  %v1381_v39 = vpop.eup %1380  ;;  %v861_v61 = vxor.u32 2147483648, %v1379_v0  ;;  %vm1073_vm4 = vcmp.lt.s32.totalorder %v1744_v32, 0  ;;  %vm963_vm5 = vcmp.eq.s32.totalorder %v958_v5, 2 }
 0x118   :  { %v1143_v1 = vsub.s32 32, %v1142_v8  ;;  %v1144_v58 = vshll.u32 %v1135_v34, %v1142_v8  ;;  %v1147_v29 = vsub.s32 4294967266, %v1142_v8  ;;  %v1383_v54 = vpop.eup %1382  ;;  %v858_v23 = vxor.u32 2147483648, %v1381_v39 }
 0x119   :  { %v1385_v48 = vpop.eup %1384  ;;  %v964_v53 = vxor.u32 2147483648, %v1383_v54  ;;  %vm2345_vm6 = vcmp.le.f32.partialorder %v1071_v14, 0.7853982  ;;  %v1157_v36 = vsub.s32 4, %v2266_v55  ;;  %v315_v3 = vmul.f32 %v1377_v63, %v2280_v12 }
 0x11a   :  { %v1145_v2 = vshrl.u32 %v1127_v59, %v1143_v1  ;;  %v1148_v42 = vadd.s32 127, %v1147_v29  ;;  %v961_v41 = vxor.u32 2147483648, %v1385_v48  ;;  %vm325_vm7 = vcmp.eq.f32.partialorder %v2298_v30, 0.0 }
 0x11b   :  { %v1061_v33 = vand.u32 3, %v1057_v25  ;;  %vm856_vm8 = vcmp.lt.s32.totalorder %v855_v38, 2  ;;  %v862_v50 = vsel %vm860_vm1, %v861_v61, %v1381_v39  ;;  %vm959_vm9 = vcmp.lt.s32.totalorder %v958_v5, 2 }
 0x11c   :  { %v1146_v21 = vor.u32 %v1145_v2, %v1144_v58  ;;  %v1149_v47 = vshll.u32 %v1148_v42, 23  ;;  %v1387_v27 = vpop.eup %1386  ;;  %v859_v46 = vsel %vm857_vm0, %v1379_v0, %v858_v23  ;;  %v962_v51 = vsel %vm960_vm3, %v1383_v54, %v961_v41 }
 0x11d   :  { %v1389_v13 = vpop.eup %1388  ;;  %v322_v18 = vmul.f32 %v1387_v27, %v2298_v30  ;;  %v965_v15 = vsel %vm963_vm5, %v964_v53, %v1385_v48  ;;  %v1158_v35 = vsel %vm1073_vm4, %v1157_v36, %v2266_v55  ;;  %v326_v6 = vand.u32 2147483648, %v2298_v30 }
 0x11e   :  { %v1150_v43 = vor.u32 4788187, %v1149_v47  ;;  %v1153_v22 = vcvt.s32.f32 %v1146_v21  ;;  %v1391_v19 = vpop.eup %1390  ;;  %v1067_v17 = vxor.u32 2147483648, %v1389_v13  ;;  %vm1063_vm10 = vcmp.eq.s32.totalorder %v1061_v33, 0 }
 0x11f   :  { %v1393_v62 = vpop.eup %1392  ;;  %v1064_v57 = vxor.u32 2147483648, %v1391_v19  ;;  %vm1066_vm12 = vcmp.eq.s32.totalorder %v1061_v33, 2  ;;  %v317_v59 = vsel %vm316_vm14, %v2280_v12, %v315_v3  ;;  %v324_v28 = vsel %vm323_vm15, %v2298_v30, %v322_v18 }
 0x120   :  { %v1151_v34 = vand.u32 2147483647, %v1150_v43  ;;  %v329_v10 = vmul.f32 %v1393_v62, %v2322_v37  ;;  %vm854_vm11 = vweird.f32 %v1730_v40  ;;  %v1395_v8 = vpop.eup %1394  ;;  %v863_v55 = vsel %vm856_vm8, %v859_v46, %v862_v50 }
 0x121   :  { %vm957_vm13 = vweird.f32 %v1734_v7  ;;  %v966_v31 = vsel %vm959_vm9, %v962_v51, %v965_v15  ;;  %v1160_v1 = vsel %vm2345_vm6, 0, %v1158_v35  ;;  %vm330_vm14 = vcmp.eq.f32.partialorder %v2322_v37, inf }
 0x122   :  { %v1154_v20 = vmul.f32 %v1153_v22, %v1151_v34  ;;  %vm1062_vm0 = vcmp.lt.s32.totalorder %v1061_v33, 2  ;;  %v1065_v58 = vsel %vm1063_vm10, %v1389_v13, %v1064_v57  ;;  %v1068_v29 = vsel %vm1066_vm12, %v1067_v17, %v1391_v19 }
 0x123   :  { %v320_v9 = vsel %vm318_vm2, %v319_v26, %v317_v59  ;;  %vm332_vm15 = vcmp.eq.f32.partialorder %v2322_v37, 0.0  ;;  %v333_v40 = vand.u32 2147483648, %v2322_v37  ;;  %v327_v7 = vsel %vm325_vm7, %v326_v6, %v324_v28 }
 0x124   :  { %v1155_v24 = vxor.u32 2147483648, %v1154_v20  ;;  %v864_v4 = vsel %vm854_vm11, nan, %v863_v55  ;;  %v967_v2 = vsel %vm957_vm13, nan, %v966_v31  ;;  %v1164_v42 = vand.u32 3, %v1160_v1 }
 0x125   :  { %v331_v56 = vsel %vm330_vm14, %v2322_v37, %v329_v10  ;;  %v336_v52 = vmul.f32 %v1395_v8, %v2329_v11  ;;  %vm1060_vm1 = vweird.f32 %v2467_v16  ;;  %v1069_v63 = vsel %vm1062_vm0, %v1065_v58, %v1068_v29 }
 0x126   :  { %v1156_v14 = vsel %vm1073_vm4, %v1155_v24, %v1154_v20  ;;  %vm337_vm3 = vcmp.eq.f32.partialorder %v2329_v11, inf  ;;  %v1178_v12 = vmul.f32 %v864_v4, %v320_v9  ;;  %v1179_v21 = vmul.f32 %v967_v2, %v327_v7 }
 0x127   :  { %v1159_v45 = vsel %vm2345_vm6, %v1744_v32, %v1156_v14  ;;  %v334_v0 = vsel %vm332_vm15, %v333_v40, %v331_v56  ;;  %v340_v38 = vand.u32 2147483648, %v2329_v11  ;;  %v1070_v30 = vsel %vm1060_vm1, nan, %v1069_v63 }
 0x128   :  { %1396 = vcosq.f32 %v1159_v45  ;;  %vm1169_vm2 = vcmp.eq.s32.totalorder %v1164_v42, 2  ;;  %v338_v5 = vsel %vm337_vm3, %v2329_v11, %v336_v52  ;;  %vm339_vm4 = vcmp.eq.f32.partialorder %v2329_v11, 0.0 }
 0x129   :  { %1398 = vsinq.f32 %v1159_v45  ;;  %vm1166_vm5 = vcmp.eq.s32.totalorder %v1164_v42, 0  ;;  %vm1163_vm6 = vweird.f32 %v1744_v32  ;;  %vm1165_vm7 = vcmp.lt.s32.totalorder %v1164_v42, 2  ;;  %v1183_v32 = vld [vmem:[#allocation3 + $0x8] sm:$0xff] }
 0x12a   :  { %v1180_v22 = vmul.f32 %v1070_v30, %v334_v0  ;;  %v1188_v54 = vmul.f32 0.1, %v1178_v12  ;;  %v1189_v60 = vmul.f32 0.1, %v1179_v21  ;;  %v341_v48 = vsel %vm339_vm4, %v340_v38, %v338_v5 }
 0x12c   :  { %v1190_v25 = vmul.f32 0.1, %v1180_v22  ;;  %v1217_v20 = vcombine.low %v1188_v54, %v1189_v60 }
 0x12e   :  { %v1225_v11 = vrot.slane %v1217_v20, %v2252_v44 }
 0x132   :  { %v1397_v47 = vpop.eup %1396 }
 0x133   :  { %v1399_v39 = vpop.eup %1398  ;;  %v1170_v37 = vxor.u32 2147483648, %v1397_v47 }
 0x134   :  { %v1167_v16 = vxor.u32 2147483648, %v1399_v39 }
 0x135   :  { %v1171_v43 = vsel %vm1169_vm2, %v1170_v37, %v1399_v39 }
 0x136   :  { %v1168_v26 = vsel %vm1166_vm5, %v1397_v47, %v1167_v16 }
 0x137   :  { %v1172_v34 = vsel %vm1165_vm7, %v1168_v26, %v1171_v43 }
 0x138   :  { %v1173_v27 = vsel %vm1163_vm6, nan, %v1172_v34 }
 0x139   :  { %v1181_v61 = vmul.f32 %v1173_v27, %v341_v48 }
 0x13b   :  { %v1191_v23 = vmul.f32 0.1, %v1181_v61 }
 0x13d   :  { %v1218_v41 = vcombine.low %v1190_v25, %v1191_v23 }
 0x13f   :  { %v1232_v53 = vrot.slane %v1218_v41, %v2252_v44 }
 0x141   :  { %v1233_v13 = vcombine.low %v1225_v11, %v1232_v53 }
 0x143   :  { %v1237_v49 = vadd.f32 %v1233_v13, %v1183_v32 }
 0x145   :  { %1239 = vst [vmem:[#allocation6 + $0x8] sm:$0xff] %v1237_v49 }
 0x146   :  { %1433 = shalt.err (!%p1430_p12)
}
 0x147   :  { %s1434_s3 = scalar_lea.hbm %s2410_s2, 256 }
 0x148   :  { %p1435_p13 = scmp.ne.s32.totalorder %s2410_s2, %s1434_s3  ;;  %p1438_p0 = scmp.lt.u32.totalorder %s1434_s3, %s2410_s2 }
 0x14a   :  { %p1440_p1 = pnand %p1438_p0, %p1435_p13 }
 0x14c   :  { %1443 = shalt.err (!%p1440_p1)
}
 0x14d   :  { %1249 = dma.vmem_to_hbm [thread:$0]  %s1247_s27, 256, %s2410_s2, [#allocation5]  }
 0x14e   :  { %1446 = dma.done.wait [#allocation5], 256  }
 0x14f   :  { %1447 = vsyncadd [#allocation5], 4294967040 }
 0x150   :  { %1253 = vsyncpa [#allocation4], 1 }
 0x151   :  { %1254 = vsyncpa [#allocation5], 1 }

</bundles_post_ra>
